<compile_context>
chip_gen: v6e
topology: v6e:2x2x1
jax: 0.10.0
libtpu: 0.0.40
codegen_flags: <defaults>
</compile_context>

<pallas_src>
import jax
import jax.numpy as jnp
from jax.experimental import pallas as pl
from jax.experimental.pallas import tpu as pltpu


def _round_up(v, m):
    return ((v + m - 1) // m) * m


def _idg_kernel(x_ref,
                w_in_ref, b_in_ref,
                w_h0_ref, b_h0_ref,
                w_h1_ref, b_h1_ref,
                w_h2_ref, b_h2_ref,
                o_ref):
    """One batch tile: L2-normalize -> 3x(Linear+ReLU) -> Linear -> sigmoid."""
    # F.normalize(x, dim=-1): x / max(||x||_2, 1e-12) == x * rsqrt(max(sumsq, 1e-24)).
    # x arrives as bf16 (halved HBM stream); normalize in f32 (rsqrt -> EUP slot).
    x = x_ref[...].astype(jnp.float32)
    sumsq = jnp.sum(x * x, axis=-1, keepdims=True)
    h = (x * jax.lax.rsqrt(jnp.maximum(sumsq, 1e-24))).astype(jnp.bfloat16)

    def linear(a_bf16, w_ref, b_ref):
        # bf16 operands -> MXU, f32 accumulation, f32 bias add.
        return jnp.dot(a_bf16, w_ref[...],
                       preferred_element_type=jnp.float32) + b_ref[...]

    h = jnp.maximum(linear(h, w_in_ref, b_in_ref), 0.0).astype(jnp.bfloat16)
    h = jnp.maximum(linear(h, w_h0_ref, b_h0_ref), 0.0).astype(jnp.bfloat16)
    h = jnp.maximum(linear(h, w_h1_ref, b_h1_ref), 0.0).astype(jnp.bfloat16)

    # Final Linear(500 -> 1) as (1, H1) contracted with (TB, H1) on the minor
    # dims -> (1, TB): the output row is lane-dense (no last-dim-1 stores).
    logit = jax.lax.dot_general(
        w_h2_ref[...], h,
        dimension_numbers=(((1,), (1,)), ((), ())),
        preferred_element_type=jnp.float32) + b_h2_ref[...]
    o_ref[...] = jax.nn.sigmoid(logit)[None].astype(o_ref.dtype)


def prepare_params(params, *, weight_dtype=jnp.bfloat16):
    """One-time parameter prep — call ONCE and reuse across forward calls.

    * casts weights to bf16 (halves the dominant weight DMA),
    * zero-pads hidden dims to lane multiples (2000 -> 2048, 500 -> 512),
      keeping results bit-identical to the unpadded bf16 path,
    * stores the final weight as a (1, 512) row for the lane-dense output.

    `params`: w_* are (in_features, out_features) f32, b_* are (1, out) f32.
    """
    d_in = params["w_in"].shape[0]
    h0 = params["w_h0"].shape[1]
    h1 = params["w_h1"].shape[1]
    h0p = _round_up(h0, 128)
    h1p = _round_up(h1, 128)

    def pad2(a, rows, cols):
        return jnp.pad(a, ((0, rows - a.shape[0]), (0, cols - a.shape[1])))

    return {
        "input_dim": d_in,
        "w_in": params["w_in"].astype(weight_dtype),
        "b_in": params["b_in"].astype(jnp.float32),
        "w_h0": pad2(params["w_h0"], d_in, h0p).astype(weight_dtype),
        "b_h0": pad2(params["b_h0"], 1, h0p).astype(jnp.float32),
        "w_h1": pad2(params["w_h1"], h0p, h1p).astype(weight_dtype),
        "b_h1": pad2(params["b_h1"], 1, h1p).astype(jnp.float32),
        # (500, 1) -> (1, 512) row for the lane-dense final matmul.
        "w_h2": pad2(params["w_h2"].T, 1, h1p).astype(weight_dtype),
        "b_h2": params["b_h2"].astype(jnp.float32),  # (1, 1)
    }


def instruction_data_guard_forward(x, prepared, *, tile_b=512,
                                   vmem_limit_bytes=48 << 20):
    """x: (B, input_dim). `prepared` = prepare_params(...) output (bf16, padded)."""
    B, D = x.shape
    assert D == prepared["input_dim"], (D, prepared["input_dim"])

    # Stream activations as bf16 (weights are VMEM-resident, so large batches
    # are bound on the x stream); the kernel upcasts to f32 for the normalize.
    if x.dtype != jnp.bfloat16:
        x = x.astype(jnp.bfloat16)

    # Batch tile: >=16 (bf16 sublane packing); multiple of 128 when large
    # (clean MXU M dim); multiple tiles let the "parallel" axis feed both
    # TensorCores on v7x.
    if B <= tile_b:
        TB = _round_up(B, 16)
    else:
        TB = max(16, (min(tile_b, B) // 16) * 16)
        if TB >= 128:
            TB = (TB // 128) * 128
    num_tiles = pl.cdiv(B, TB)
    B_pad = num_tiles * TB
    if B_pad != B:
        x = jnp.pad(x, ((0, B_pad - B), (0, 0)))

    weight_ops = (prepared["w_in"], prepared["b_in"],
                  prepared["w_h0"], prepared["b_h0"],
                  prepared["w_h1"], prepared["b_h1"],
                  prepared["w_h2"], prepared["b_h2"])

    def run(single_buffer_weights):
        def resident(shape):
            # Constant index_map -> DMA'd once, stays VMEM-resident across tiles.
            if single_buffer_weights:
                return pl.BlockSpec(shape, lambda i: (0, 0),
                                    pipeline_mode=pl.Buffered(1))
            return pl.BlockSpec(shape, lambda i: (0, 0))

        in_specs = ([pl.BlockSpec((TB, D), lambda i: (i, 0))] +
                    [resident(op.shape) for op in weight_ops])
        out_specs = pl.BlockSpec((1, 1, TB), lambda i: (i, 0, 0))

        return pl.pallas_call(
            _idg_kernel,
            out_shape=jax.ShapeDtypeStruct((num_tiles, 1, TB), jnp.float32),
            grid=(num_tiles,),
            in_specs=in_specs,
            out_specs=out_specs,
            compiler_params=pltpu.CompilerParams(
                dimension_semantics=("parallel",),
                vmem_limit_bytes=vmem_limit_bytes),
        )(x, *weight_ops)

    try:
        out = run(True)       # single-buffered resident weights (half the VMEM)
    except Exception:
        # pl.Buffered(1) unsupported on this JAX version -> default buffering.
        out = run(False)

    return out.reshape(B_pad, 1)[:B]


def init_params(input_dim, key):
    """Synthetic init matching InstructionDataGuardNet shapes.

    Linear(input_dim, input_dim), Linear(input_dim, 2000),
    Linear(2000, 500), Linear(500, 1).  Weights stored as (in, out) — real
    PyTorch checkpoints (out, in) must be transposed before prepare_params.
    """
    dims = [(input_dim, input_dim), (input_dim, 2000), (2000, 500), (500, 1)]
    names = ["in", "h0", "h1", "h2"]
    params = {}
    for name, (d_in, d_out) in zip(names, dims):
        key, kw, kb = jax.random.split(key, 3)
        bound = 1.0 / (d_in ** 0.5)  # PyTorch Linear default init range
        params[f"w_{name}"] = jax.random.uniform(
            kw, (d_in, d_out), jnp.float32, -bound, bound)
        params[f"b_{name}"] = jax.random.uniform(
            kb, (1, d_out), jnp.float32, -bound, bound)
    return params


def _ref_bf16(x, p):
    """Same-precision reference (bf16 activations/weights, f32 accumulation)."""
    x = x.astype(jnp.bfloat16).astype(jnp.float32)
    sumsq = jnp.sum(x * x, axis=-1, keepdims=True)
    h = (x * jax.lax.rsqrt(jnp.maximum(sumsq, 1e-24))).astype(jnp.bfloat16)

    def lin(a_bf16, w, b):
        return jnp.dot(a_bf16, w.astype(jnp.bfloat16),
                       preferred_element_type=jnp.float32) + b

    h = jax.nn.relu(lin(h, p["w_in"], p["b_in"])).astype(jnp.bfloat16)
    h = jax.nn.relu(lin(h, p["w_h0"], p["b_h0"])).astype(jnp.bfloat16)
    h = jax.nn.relu(lin(h, p["w_h1"], p["b_h1"])).astype(jnp.bfloat16)
    return jax.nn.sigmoid(lin(h, p["w_h2"], p["b_h2"]))


def _ref_f32(x, p):
    """Full-precision reference (loose-tolerance sanity check)."""
    xn = x / jnp.maximum(jnp.linalg.norm(x, axis=-1, keepdims=True), 1e-12)
    h = jax.nn.relu(xn @ p["w_in"] + p["b_in"])
    h = jax.nn.relu(h @ p["w_h0"] + p["b_h0"])
    h = jax.nn.relu(h @ p["w_h1"] + p["b_h1"])
    return jax.nn.sigmoid(h @ p["w_h2"] + p["b_h2"])


if __name__ == "__main__":
    key = jax.random.PRNGKey(0)
    k_x, k_p = jax.random.split(key)

    batch = 8
    input_dim = 32  # small embedding dim for the synthetic test

    x = jax.random.normal(k_x, (batch, input_dim), dtype=jnp.float32)
    params = init_params(input_dim, k_p)
    prepared = prepare_params(params)   # one-time bf16 cast + lane padding

    # Single-tile path.
    out = jax.block_until_ready(instruction_data_guard_forward(x, prepared))
    assert out.shape == (batch, 1), out.shape
    assert bool(jnp.all((out >= 0.0) & (out <= 1.0))), "sigmoid output out of range"

    ref_bf16 = _ref_bf16(x, params)
    assert jnp.allclose(out, ref_bf16, atol=3e-3, rtol=3e-3), (
        float(jnp.max(jnp.abs(out - ref_bf16))))

    ref_f32 = _ref_f32(x, params)
    assert jnp.allclose(out, ref_f32, atol=5e-2, rtol=5e-2), (
        float(jnp.max(jnp.abs(out - ref_f32))))

    # Multi-tile + ragged-batch path (exercises VMEM-resident weights across
    # grid steps, batch padding/unpadding, and the lane-dense output layout).
    batch2 = 20
    x2 = jax.random.normal(jax.random.PRNGKey(7), (batch2, input_dim), jnp.float32)
    out2 = jax.block_until_ready(
        instruction_data_guard_forward(x2, prepared, tile_b=16))
    assert out2.shape == (batch2, 1), out2.shape
    ref2 = _ref_bf16(x2, params)
    assert jnp.allclose(out2, ref2, atol=3e-3, rtol=3e-3), (
        float(jnp.max(jnp.abs(out2 - ref2))))

    print("KERNEL_OK")
</pallas_src>

<mosaic_0001>
module attributes {stable_mosaic.version = 11 : i64} {
  func.func @_idg_kernel(%arg0: i32, %arg1: memref<16x32xbf16, #tpu.memory_space<vmem>>, %arg2: memref<32x32xbf16, #tpu.memory_space<vmem>>, %arg3: memref<1x32xf32, #tpu.memory_space<vmem>>, %arg4: memref<32x2048xbf16, #tpu.memory_space<vmem>>, %arg5: memref<1x2048xf32, #tpu.memory_space<vmem>>, %arg6: memref<2048x512xbf16, #tpu.memory_space<vmem>>, %arg7: memref<1x512xf32, #tpu.memory_space<vmem>>, %arg8: memref<1x512xbf16, #tpu.memory_space<vmem>>, %arg9: memref<1x1xf32, #tpu.memory_space<vmem>>, %arg10: memref<1x1x16xf32, #tpu.memory_space<vmem>>) attributes {dimension_semantics = [#tpu.dimension_semantics<parallel>], iteration_bounds = array<i64: 1>, scalar_prefetch = 0 : i64, scratch_operands = 0 : i64, tpu.core_type = #tpu.core_type<tc>, window_params = [{transform_indices = @transform_0, window_bounds = array<i64: 16, 32>}, {pipeline_mode = #tpu.pipeline_mode<synchronous>, transform_indices = @transform_1, window_bounds = array<i64: 32, 32>}, {pipeline_mode = #tpu.pipeline_mode<synchronous>, transform_indices = @transform_2, window_bounds = array<i64: 1, 32>}, {pipeline_mode = #tpu.pipeline_mode<synchronous>, transform_indices = @transform_3, window_bounds = array<i64: 32, 2048>}, {pipeline_mode = #tpu.pipeline_mode<synchronous>, transform_indices = @transform_4, window_bounds = array<i64: 1, 2048>}, {pipeline_mode = #tpu.pipeline_mode<synchronous>, transform_indices = @transform_5, window_bounds = array<i64: 2048, 512>}, {pipeline_mode = #tpu.pipeline_mode<synchronous>, transform_indices = @transform_6, window_bounds = array<i64: 1, 512>}, {pipeline_mode = #tpu.pipeline_mode<synchronous>, transform_indices = @transform_7, window_bounds = array<i64: 1, 512>}, {pipeline_mode = #tpu.pipeline_mode<synchronous>, transform_indices = @transform_8, window_bounds = array<i64: 1, 1>}, {transform_indices = @transform_9, window_bounds = array<i64: 1, 1, 16>}]} {
    %c0 = arith.constant 0 : index
    %c0_0 = arith.constant 0 : index
    %0 = vector.load %arg1[%c0, %c0_0] : memref<16x32xbf16, #tpu.memory_space<vmem>>, vector<16x32xbf16>
    %1 = arith.extf %0 : vector<16x32xbf16> to vector<16x32xf32>
    %2 = arith.mulf %1, %1 : vector<16x32xf32>
    %cst = arith.constant dense<0.000000e+00> : vector<16xf32>
    %3 = vector.multi_reduction <add>, %2, %cst [1] : vector<16x32xf32> to vector<16xf32>
    %4 = vector.shape_cast %3 : vector<16xf32> to vector<16x1xf32>
    %cst_1 = arith.constant 1.000000e-24 : f32
    %5 = vector.broadcast %cst_1 : f32 to vector<16x1xf32>
    %6 = arith.maximumf %4, %5 : vector<16x1xf32>
    %7 = math.rsqrt %6 : vector<16x1xf32>
    %8 = vector.broadcast %7 : vector<16x1xf32> to vector<16x32xf32>
    %9 = arith.mulf %1, %8 : vector<16x32xf32>
    %10 = arith.truncf %9 : vector<16x32xf32> to vector<16x32xbf16>
    %c0_2 = arith.constant 0 : index
    %c0_3 = arith.constant 0 : index
    %11 = vector.load %arg2[%c0_2, %c0_3] : memref<32x32xbf16, #tpu.memory_space<vmem>>, vector<32x32xbf16>
    %cst_4 = arith.constant dense<0.000000e+00> : vector<16x32xf32>
    %12 = tpu.matmul %10, %11, %cst_4 {dimension_numbers = #tpu.dot_dimension_numbers<[1], [0], [0], [1], [0, 0, 1, 1], [], []>} : vector<16x32xbf16>, vector<32x32xbf16>, vector<16x32xf32> -> vector<16x32xf32>
    %c0_5 = arith.constant 0 : index
    %c0_6 = arith.constant 0 : index
    %13 = vector.load %arg3[%c0_5, %c0_6] : memref<1x32xf32, #tpu.memory_space<vmem>>, vector<1x32xf32>
    %14 = vector.broadcast %13 : vector<1x32xf32> to vector<16x32xf32>
    %15 = arith.addf %12, %14 : vector<16x32xf32>
    %cst_7 = arith.constant 0.000000e+00 : f32
    %16 = vector.broadcast %cst_7 : f32 to vector<16x32xf32>
    %17 = arith.maximumf %15, %16 : vector<16x32xf32>
    %18 = arith.truncf %17 : vector<16x32xf32> to vector<16x32xbf16>
    %c0_8 = arith.constant 0 : index
    %c0_9 = arith.constant 0 : index
    %19 = vector.load %arg4[%c0_8, %c0_9] : memref<32x2048xbf16, #tpu.memory_space<vmem>>, vector<32x2048xbf16>
    %cst_10 = arith.constant dense<0.000000e+00> : vector<16x2048xf32>
    %20 = tpu.matmul %18, %19, %cst_10 {dimension_numbers = #tpu.dot_dimension_numbers<[1], [0], [0], [1], [0, 0, 1, 1], [], []>} : vector<16x32xbf16>, vector<32x2048xbf16>, vector<16x2048xf32> -> vector<16x2048xf32>
    %c0_11 = arith.constant 0 : index
    %c0_12 = arith.constant 0 : index
    %21 = vector.load %arg5[%c0_11, %c0_12] : memref<1x2048xf32, #tpu.memory_space<vmem>>, vector<1x2048xf32>
    %22 = vector.broadcast %21 : vector<1x2048xf32> to vector<16x2048xf32>
    %23 = arith.addf %20, %22 : vector<16x2048xf32>
    %cst_13 = arith.constant 0.000000e+00 : f32
    %24 = vector.broadcast %cst_13 : f32 to vector<16x2048xf32>
    %25 = arith.maximumf %23, %24 : vector<16x2048xf32>
    %26 = arith.truncf %25 : vector<16x2048xf32> to vector<16x2048xbf16>
    %c0_14 = arith.constant 0 : index
    %c0_15 = arith.constant 0 : index
    %27 = vector.load %arg6[%c0_14, %c0_15] : memref<2048x512xbf16, #tpu.memory_space<vmem>>, vector<2048x512xbf16>
    %cst_16 = arith.constant dense<0.000000e+00> : vector<16x512xf32>
    %28 = tpu.matmul %26, %27, %cst_16 {dimension_numbers = #tpu.dot_dimension_numbers<[1], [0], [0], [1], [0, 0, 1, 1], [], []>} : vector<16x2048xbf16>, vector<2048x512xbf16>, vector<16x512xf32> -> vector<16x512xf32>
    %c0_17 = arith.constant 0 : index
    %c0_18 = arith.constant 0 : index
    %29 = vector.load %arg7[%c0_17, %c0_18] : memref<1x512xf32, #tpu.memory_space<vmem>>, vector<1x512xf32>
    %30 = vector.broadcast %29 : vector<1x512xf32> to vector<16x512xf32>
    %31 = arith.addf %28, %30 : vector<16x512xf32>
    %cst_19 = arith.constant 0.000000e+00 : f32
    %32 = vector.broadcast %cst_19 : f32 to vector<16x512xf32>
    %33 = arith.maximumf %31, %32 : vector<16x512xf32>
    %34 = arith.truncf %33 : vector<16x512xf32> to vector<16x512xbf16>
    %c0_20 = arith.constant 0 : index
    %c0_21 = arith.constant 0 : index
    %35 = vector.load %arg8[%c0_20, %c0_21] : memref<1x512xbf16, #tpu.memory_space<vmem>>, vector<1x512xbf16>
    %cst_22 = arith.constant dense<0.000000e+00> : vector<1x16xf32>
    %36 = tpu.matmul %35, %34, %cst_22 {dimension_numbers = #tpu.dot_dimension_numbers<[1], [1], [0], [0], [0, 0, 1, 0], [], []>} : vector<1x512xbf16>, vector<16x512xbf16>, vector<1x16xf32> -> vector<1x16xf32>
    %c0_23 = arith.constant 0 : index
    %c0_24 = arith.constant 0 : index
    %37 = vector.load %arg9[%c0_23, %c0_24] : memref<1x1xf32, #tpu.memory_space<vmem>>, vector<1x1xf32>
    %38 = vector.broadcast %37 : vector<1x1xf32> to vector<1x16xf32>
    %39 = arith.addf %36, %38 : vector<1x16xf32>
    %40 = arith.negf %39 : vector<1x16xf32>
    %41 = math.exp %40 : vector<1x16xf32>
    %cst_25 = arith.constant 1.000000e+00 : f32
    %42 = vector.broadcast %cst_25 : f32 to vector<1x16xf32>
    %43 = arith.addf %42, %41 : vector<1x16xf32>
    %44 = arith.divf %42, %43 : vector<1x16xf32>
    %45 = vector.shape_cast %44 : vector<1x16xf32> to vector<1x1x16xf32>
    %c0_26 = arith.constant 0 : index
    %c0_27 = arith.constant 0 : index
    %c0_28 = arith.constant 0 : index
    %46 = vector.load %arg10[%c0_26, %c0_27, %c0_28] : memref<1x1x16xf32, #tpu.memory_space<vmem>>, vector<1x1x16xf32>
    tpu.vector_store %arg10[%c0_26, %c0_27, %c0_28], %45 {strides = array<i32>} : memref<1x1x16xf32, #tpu.memory_space<vmem>>, vector<1x1x16xf32>,
    return
  }
  func.func @transform_0(%arg0: i32) -> (i32, i32) {
    %c0_i32 = arith.constant 0 : i32
    %c0_i32_0 = arith.constant 0 : i32
    return %arg0, %c0_i32 : i32, i32
  }
  func.func @transform_1(%arg0: i32) -> (i32, i32) {
    %c0_i32 = arith.constant 0 : i32
    %c0_i32_0 = arith.constant 0 : i32
    %c0_i32_1 = arith.constant 0 : i32
    return %c0_i32, %c0_i32_0 : i32, i32
  }
  func.func @transform_2(%arg0: i32) -> (i32, i32) {
    %c0_i32 = arith.constant 0 : i32
    %c0_i32_0 = arith.constant 0 : i32
    %c0_i32_1 = arith.constant 0 : i32
    return %c0_i32, %c0_i32_0 : i32, i32
  }
  func.func @transform_3(%arg0: i32) -> (i32, i32) {
    %c0_i32 = arith.constant 0 : i32
    %c0_i32_0 = arith.constant 0 : i32
    %c0_i32_1 = arith.constant 0 : i32
    return %c0_i32, %c0_i32_0 : i32, i32
  }
  func.func @transform_4(%arg0: i32) -> (i32, i32) {
    %c0_i32 = arith.constant 0 : i32
    %c0_i32_0 = arith.constant 0 : i32
    %c0_i32_1 = arith.constant 0 : i32
    return %c0_i32, %c0_i32_0 : i32, i32
  }
  func.func @transform_5(%arg0: i32) -> (i32, i32) {
    %c0_i32 = arith.constant 0 : i32
    %c0_i32_0 = arith.constant 0 : i32
    %c0_i32_1 = arith.constant 0 : i32
    return %c0_i32, %c0_i32_0 : i32, i32
  }
  func.func @transform_6(%arg0: i32) -> (i32, i32) {
    %c0_i32 = arith.constant 0 : i32
    %c0_i32_0 = arith.constant 0 : i32
    %c0_i32_1 = arith.constant 0 : i32
    return %c0_i32, %c0_i32_0 : i32, i32
  }
  func.func @transform_7(%arg0: i32) -> (i32, i32) {
    %c0_i32 = arith.constant 0 : i32
    %c0_i32_0 = arith.constant 0 : i32
    %c0_i32_1 = arith.constant 0 : i32
    return %c0_i32, %c0_i32_0 : i32, i32
  }
  func.func @transform_8(%arg0: i32) -> (i32, i32) {
    %c0_i32 = arith.constant 0 : i32
    %c0_i32_0 = arith.constant 0 : i32
    %c0_i32_1 = arith.constant 0 : i32
    return %c0_i32, %c0_i32_0 : i32, i32
  }
  func.func @transform_9(%arg0: i32) -> (i32, i32, i32) {
    %c0_i32 = arith.constant 0 : i32
    %c0_i32_0 = arith.constant 0 : i32
    %c0_i32_1 = arith.constant 0 : i32
    return %arg0, %c0_i32, %c0_i32_0 : i32, i32, i32
  }
}

module attributes {stable_mosaic.version = 11 : i64} {
  func.func @_idg_kernel(%arg0: i32, %arg1: memref<16x32xbf16, #tpu.memory_space<vmem>>, %arg2: memref<32x32xbf16, #tpu.memory_space<vmem>>, %arg3: memref<1x32xf32, #tpu.memory_space<vmem>>, %arg4: memref<32x2048xbf16, #tpu.memory_space<vmem>>, %arg5: memref<1x2048xf32, #tpu.memory_space<vmem>>, %arg6: memref<2048x512xbf16, #tpu.memory_space<vmem>>, %arg7: memref<1x512xf32, #tpu.memory_space<vmem>>, %arg8: memref<1x512xbf16, #tpu.memory_space<vmem>>, %arg9: memref<1x1xf32, #tpu.memory_space<vmem>>, %arg10: memref<1x1x16xf32, #tpu.memory_space<vmem>>) attributes {dimension_semantics = [#tpu.dimension_semantics<parallel>], iteration_bounds = array<i64: 1>, scalar_prefetch = 0 : i64, scratch_operands = 0 : i64, tpu.core_type = #tpu.core_type<tc>, window_params = [{transform_indices = @transform_0, window_bounds = array<i64: 16, 32>}, {pipeline_mode = #tpu.pipeline_mode<synchronous>, transform_indices = @transform_1, window_bounds = array<i64: 32, 32>}, {pipeline_mode = #tpu.pipeline_mode<synchronous>, transform_indices = @transform_2, window_bounds = array<i64: 1, 32>}, {pipeline_mode = #tpu.pipeline_mode<synchronous>, transform_indices = @transform_3, window_bounds = array<i64: 32, 2048>}, {pipeline_mode = #tpu.pipeline_mode<synchronous>, transform_indices = @transform_4, window_bounds = array<i64: 1, 2048>}, {pipeline_mode = #tpu.pipeline_mode<synchronous>, transform_indices = @transform_5, window_bounds = array<i64: 2048, 512>}, {pipeline_mode = #tpu.pipeline_mode<synchronous>, transform_indices = @transform_6, window_bounds = array<i64: 1, 512>}, {pipeline_mode = #tpu.pipeline_mode<synchronous>, transform_indices = @transform_7, window_bounds = array<i64: 1, 512>}, {pipeline_mode = #tpu.pipeline_mode<synchronous>, transform_indices = @transform_8, window_bounds = array<i64: 1, 1>}, {transform_indices = @transform_9, window_bounds = array<i64: 1, 1, 16>}]} {
    %c0 = arith.constant 0 : index
    %c0_0 = arith.constant 0 : index
    %0 = vector.load %arg1[%c0, %c0_0] : memref<16x32xbf16, #tpu.memory_space<vmem>>, vector<16x32xbf16>
    %1 = arith.extf %0 : vector<16x32xbf16> to vector<16x32xf32>
    %2 = arith.mulf %1, %1 : vector<16x32xf32>
    %cst = arith.constant dense<0.000000e+00> : vector<16xf32>
    %3 = vector.multi_reduction <add>, %2, %cst [1] : vector<16x32xf32> to vector<16xf32>
    %4 = vector.shape_cast %3 : vector<16xf32> to vector<16x1xf32>
    %cst_1 = arith.constant 1.000000e-24 : f32
    %5 = vector.broadcast %cst_1 : f32 to vector<16x1xf32>
    %6 = arith.maximumf %4, %5 : vector<16x1xf32>
    %7 = math.rsqrt %6 : vector<16x1xf32>
    %8 = vector.broadcast %7 : vector<16x1xf32> to vector<16x32xf32>
    %9 = arith.mulf %1, %8 : vector<16x32xf32>
    %10 = arith.truncf %9 : vector<16x32xf32> to vector<16x32xbf16>
    %c0_2 = arith.constant 0 : index
    %c0_3 = arith.constant 0 : index
    %11 = vector.load %arg2[%c0_2, %c0_3] : memref<32x32xbf16, #tpu.memory_space<vmem>>, vector<32x32xbf16>
    %cst_4 = arith.constant dense<0.000000e+00> : vector<16x32xf32>
    %12 = tpu.matmul %10, %11, %cst_4 {dimension_numbers = #tpu.dot_dimension_numbers<[1], [0], [0], [1], [0, 0, 1, 1], [], []>} : vector<16x32xbf16>, vector<32x32xbf16>, vector<16x32xf32> -> vector<16x32xf32>
    %c0_5 = arith.constant 0 : index
    %c0_6 = arith.constant 0 : index
    %13 = vector.load %arg3[%c0_5, %c0_6] : memref<1x32xf32, #tpu.memory_space<vmem>>, vector<1x32xf32>
    %14 = vector.broadcast %13 : vector<1x32xf32> to vector<16x32xf32>
    %15 = arith.addf %12, %14 : vector<16x32xf32>
    %cst_7 = arith.constant 0.000000e+00 : f32
    %16 = vector.broadcast %cst_7 : f32 to vector<16x32xf32>
    %17 = arith.maximumf %15, %16 : vector<16x32xf32>
    %18 = arith.truncf %17 : vector<16x32xf32> to vector<16x32xbf16>
    %c0_8 = arith.constant 0 : index
    %c0_9 = arith.constant 0 : index
    %19 = vector.load %arg4[%c0_8, %c0_9] : memref<32x2048xbf16, #tpu.memory_space<vmem>>, vector<32x2048xbf16>
    %cst_10 = arith.constant dense<0.000000e+00> : vector<16x2048xf32>
    %20 = tpu.matmul %18, %19, %cst_10 {dimension_numbers = #tpu.dot_dimension_numbers<[1], [0], [0], [1], [0, 0, 1, 1], [], []>} : vector<16x32xbf16>, vector<32x2048xbf16>, vector<16x2048xf32> -> vector<16x2048xf32>
    %c0_11 = arith.constant 0 : index
    %c0_12 = arith.constant 0 : index
    %21 = vector.load %arg5[%c0_11, %c0_12] : memref<1x2048xf32, #tpu.memory_space<vmem>>, vector<1x2048xf32>
    %22 = vector.broadcast %21 : vector<1x2048xf32> to vector<16x2048xf32>
    %23 = arith.addf %20, %22 : vector<16x2048xf32>
    %cst_13 = arith.constant 0.000000e+00 : f32
    %24 = vector.broadcast %cst_13 : f32 to vector<16x2048xf32>
    %25 = arith.maximumf %23, %24 : vector<16x2048xf32>
    %26 = arith.truncf %25 : vector<16x2048xf32> to vector<16x2048xbf16>
    %c0_14 = arith.constant 0 : index
    %c0_15 = arith.constant 0 : index
    %27 = vector.load %arg6[%c0_14, %c0_15] : memref<2048x512xbf16, #tpu.memory_space<vmem>>, vector<2048x512xbf16>
    %cst_16 = arith.constant dense<0.000000e+00> : vector<16x512xf32>
    %28 = tpu.matmul %26, %27, %cst_16 {dimension_numbers = #tpu.dot_dimension_numbers<[1], [0], [0], [1], [0, 0, 1, 1], [], []>} : vector<16x2048xbf16>, vector<2048x512xbf16>, vector<16x512xf32> -> vector<16x512xf32>
    %c0_17 = arith.constant 0 : index
    %c0_18 = arith.constant 0 : index
    %29 = vector.load %arg7[%c0_17, %c0_18] : memref<1x512xf32, #tpu.memory_space<vmem>>, vector<1x512xf32>
    %30 = vector.broadcast %29 : vector<1x512xf32> to vector<16x512xf32>
    %31 = arith.addf %28, %30 : vector<16x512xf32>
    %cst_19 = arith.constant 0.000000e+00 : f32
    %32 = vector.broadcast %cst_19 : f32 to vector<16x512xf32>
    %33 = arith.maximumf %31, %32 : vector<16x512xf32>
    %34 = arith.truncf %33 : vector<16x512xf32> to vector<16x512xbf16>
    %c0_20 = arith.constant 0 : index
    %c0_21 = arith.constant 0 : index
    %35 = vector.load %arg8[%c0_20, %c0_21] : memref<1x512xbf16, #tpu.memory_space<vmem>>, vector<1x512xbf16>
    %cst_22 = arith.constant dense<0.000000e+00> : vector<1x16xf32>
    %36 = tpu.matmul %35, %34, %cst_22 {dimension_numbers = #tpu.dot_dimension_numbers<[1], [1], [0], [0], [0, 0, 1, 0], [], []>} : vector<1x512xbf16>, vector<16x512xbf16>, vector<1x16xf32> -> vector<1x16xf32>
    %c0_23 = arith.constant 0 : index
    %c0_24 = arith.constant 0 : index
    %37 = vector.load %arg9[%c0_23, %c0_24] : memref<1x1xf32, #tpu.memory_space<vmem>>, vector<1x1xf32>
    %38 = vector.broadcast %37 : vector<1x1xf32> to vector<1x16xf32>
    %39 = arith.addf %36, %38 : vector<1x16xf32>
    %40 = arith.negf %39 : vector<1x16xf32>
    %41 = math.exp %40 : vector<1x16xf32>
    %cst_25 = arith.constant 1.000000e+00 : f32
    %42 = vector.broadcast %cst_25 : f32 to vector<1x16xf32>
    %43 = arith.addf %42, %41 : vector<1x16xf32>
    %44 = arith.divf %42, %43 : vector<1x16xf32>
    %45 = vector.shape_cast %44 : vector<1x16xf32> to vector<1x1x16xf32>
    %c0_26 = arith.constant 0 : index
    %c0_27 = arith.constant 0 : index
    %c0_28 = arith.constant 0 : index
    %46 = vector.load %arg10[%c0_26, %c0_27, %c0_28] : memref<1x1x16xf32, #tpu.memory_space<vmem>>, vector<1x1x16xf32>
    tpu.vector_store %arg10[%c0_26, %c0_27, %c0_28], %45 {strides = array<i32>} : memref<1x1x16xf32, #tpu.memory_space<vmem>>, vector<1x1x16xf32>,
    return
  }
  func.func @transform_0(%arg0: i32) -> (i32, i32) {
    %c0_i32 = arith.constant 0 : i32
    %c0_i32_0 = arith.constant 0 : i32
    return %arg0, %c0_i32 : i32, i32
  }
  func.func @transform_1(%arg0: i32) -> (i32, i32) {
    %c0_i32 = arith.constant 0 : i32
    %c0_i32_0 = arith.constant 0 : i32
    %c0_i32_1 = arith.constant 0 : i32
    return %c0_i32, %c0_i32_0 : i32, i32
  }
  func.func @transform_2(%arg0: i32) -> (i32, i32) {
    %c0_i32 = arith.constant 0 : i32
    %c0_i32_0 = arith.constant 0 : i32
    %c0_i32_1 = arith.constant 0 : i32
    return %c0_i32, %c0_i32_0 : i32, i32
  }
  func.func @transform_3(%arg0: i32) -> (i32, i32) {
    %c0_i32 = arith.constant 0 : i32
    %c0_i32_0 = arith.constant 0 : i32
    %c0_i32_1 = arith.constant 0 : i32
    return %c0_i32, %c0_i32_0 : i32, i32
  }
  func.func @transform_4(%arg0: i32) -> (i32, i32) {
    %c0_i32 = arith.constant 0 : i32
    %c0_i32_0 = arith.constant 0 : i32
    %c0_i32_1 = arith.constant 0 : i32
    return %c0_i32, %c0_i32_0 : i32, i32
  }
  func.func @transform_5(%arg0: i32) -> (i32, i32) {
    %c0_i32 = arith.constant 0 : i32
    %c0_i32_0 = arith.constant 0 : i32
    %c0_i32_1 = arith.constant 0 : i32
    return %c0_i32, %c0_i32_0 : i32, i32
  }
  func.func @transform_6(%arg0: i32) -> (i32, i32) {
    %c0_i32 = arith.constant 0 : i32
    %c0_i32_0 = arith.constant 0 : i32
    %c0_i32_1 = arith.constant 0 : i32
    return %c0_i32, %c0_i32_0 : i32, i32
  }
  func.func @transform_7(%arg0: i32) -> (i32, i32) {
    %c0_i32 = arith.constant 0 : i32
    %c0_i32_0 = arith.constant 0 : i32
    %c0_i32_1 = arith.constant 0 : i32
    return %c0_i32, %c0_i32_0 : i32, i32
  }
  func.func @transform_8(%arg0: i32) -> (i32, i32) {
    %c0_i32 = arith.constant 0 : i32
    %c0_i32_0 = arith.constant 0 : i32
    %c0_i32_1 = arith.constant 0 : i32
    return %c0_i32, %c0_i32_0 : i32, i32
  }
  func.func @transform_9(%arg0: i32) -> (i32, i32, i32) {
    %c0_i32 = arith.constant 0 : i32
    %c0_i32_0 = arith.constant 0 : i32
    %c0_i32_1 = arith.constant 0 : i32
    return %arg0, %c0_i32, %c0_i32_0 : i32, i32, i32
  }
}

</mosaic_0001>

<bundles_post_ra>
// kernel: tpu_custom_call.1
= control target key start
LH: loop header
LB: loop body
LE: loop exit
PB: predicated region body
PF: predicated region fallthrough
CT: control target
= control target key end

     0   :  { %s6779_s0 = inlined_call_operand.hbm [shape: bf16[16,32], index: 0, kind: input, shape index: {}]   ;;  %s6780_s1 = inlined_call_operand.hbm [shape: bf16[32,32], index: 1, kind: input, shape index: {}]   ;;  %s6781_s2 = inlined_call_operand.hbm [shape: f32[1,32], index: 2, kind: input, shape index: {}]   ;;  %s6782_s3 = inlined_call_operand.hbm [shape: bf16[32,2048], index: 3, kind: input, shape index: {}]   ;;  %s6783_s4 = inlined_call_operand.hbm [shape: f32[1,2048], index: 4, kind: input, shape index: {}]   ;;  %s6784_s5 = inlined_call_operand.hbm [shape: bf16[2048,512], index: 5, kind: input, shape index: {}]   ;;  %s6785_s6 = inlined_call_operand.hbm [shape: f32[1,512], index: 6, kind: input, shape index: {}]   ;;  %s6786_s7 = inlined_call_operand.hbm [shape: bf16[1,512], index: 7, kind: input, shape index: {}]   ;;  %s6787_s8 = inlined_call_operand.<no memory space> [shape: f32[1,1], index: 8, kind: input, shape index: {}]   ;;  %s6788_s9 = inlined_call_operand.hbm [shape: f32[1,1,16], index: 9, kind: output, shape index: {}]  }
   0x1   :  { %v14_v0 = vstv %s6787_s8 }
   0x2   :  { %15 = vst [vmem:[#allocation2] sm:$0x1] %v14_v0 }
   0x3   :  { %16 = vsyncpa [#allocation4], 0 }
   0x4   :  { %17 = vsyncpa [#allocation7], 0 }
   0x5   :  { %18 = vsyncpa [#allocation10], 0 }
   0x6   :  { %19 = vsyncpa [#allocation13], 0 }
   0x7   :  { %20 = vsyncpa [#allocation16], 0 }
   0x8   :  { %21 = vsyncpa [#allocation5], 0  ;;  %s6402_s11 = smov [#allocation6]   ;;  %s6403_s13 = smov [#allocation9]  }
   0x9   :  { %s39_s12 = sshll.u32 %s6402_s11, 4  ;;  %s61_s14 = sshll.u32 %s6403_s13, 4  ;;  %s40_s12 = int_to_ptr.vmem [resolvable:$true] %s39_s12  ;;  %s62_s14 = int_to_ptr.vmem [resolvable:$true] %s61_s14 }
   0xa   :  { %s6218_s15 = scalar_lea.vmem %s40_s12, 256  ;;  %p6223_p1 = scmp.lt.s32.totalorder %s40_s12, %s40_s12 }
   0xb   :  { %p6219_p0 = scmp.ne.s32.totalorder %s40_s12, %s6218_s15  ;;  %p6224_p2 = scmp.lt.s32.totalorder %s6218_s15, %s6218_s15 }
   0xd   :  { %p6225_p3 = por %p6224_p2, %p6223_p1 }
   0xf   :  { %p6226_p4 = pnand %p6225_p3, %p6219_p0 }
  0x11   :  { %6229 = shalt.err (!%p6226_p4)
}
  0x12   :  { %s6404_s8 = smov 64   ;;  %s6405_s16 = smov 4  }
  0x13   :  { %45 = dma.hbm_to_vmem [thread:$0]  %s6780_s1, 256, %s40_s12, [#allocation7], %s6404_s8, %s6404_s8, %s6405_s16  }
  0x14   :  { %s6238_s19 = scalar_lea.vmem %s62_s14, 4096  ;;  %p6243_p6 = scmp.lt.s32.totalorder %s62_s14, %s62_s14 }
  0x15   :  { %p6239_p5 = scmp.ne.s32.totalorder %s62_s14, %s6238_s19  ;;  %p6244_p7 = scmp.lt.s32.totalorder %s6238_s19, %s6238_s19 }
  0x17   :  { %p6245_p8 = por %p6244_p7, %p6243_p6 }
  0x19   :  { %p6246_p9 = pnand %p6245_p8, %p6239_p5 }
  0x1b   :  { %6249 = shalt.err (!%p6246_p9)
}
  0x1c   :  { %s6406_s20 = smov 1024   ;;  %s6407_s23 = smov [#allocation12]  }
  0x1d   :  { %67 = dma.hbm_to_vmem [thread:$0]  %s6782_s3, 4096, %s62_s14, [#allocation10], %s6406_s20, %s6406_s20, %s6404_s8  }
  0x1e   :  { %s83_s24 = sshll.u32 %s6407_s23, 4  ;;  %s84_s24 = int_to_ptr.vmem [resolvable:$true] %s83_s24 }
  0x1f   :  { %s6258_s25 = scalar_lea.vmem %s84_s24, 65536  ;;  %p6263_p11 = scmp.lt.s32.totalorder %s84_s24, %s84_s24 }
  0x20   :  { %p6259_p10 = scmp.ne.s32.totalorder %s84_s24, %s6258_s25  ;;  %p6264_p12 = scmp.lt.s32.totalorder %s6258_s25, %s6258_s25 }
  0x22   :  { %p6265_p13 = por %p6264_p12, %p6263_p11 }
  0x24   :  { %p6266_p0 = pnand %p6265_p13, %p6259_p10 }
  0x26   :  { %6269 = shalt.err (!%p6266_p0)
}
  0x27   :  { %s6408_s1 = smov 256   ;;  %s6409_s26 = smov 16  }
  0x28   :  { %89 = dma.hbm_to_vmem [thread:$0]  %s6784_s5, 65536, %s84_s24, [#allocation13], %s6408_s1, %s6408_s1, %s6409_s26  }
  0x29   :  { %s6410_s29 = smov [#allocation3]   ;;  %s6411_s10 = smov [#allocation8]  }
  0x2a   :  { %s27_s30 = sshll.u32 %s6410_s29, 4  ;;  %s52_s3 = sshll.u32 %s6411_s10, 4  ;;  %s28_s30 = int_to_ptr.vmem [resolvable:$true] %s27_s30  ;;  %s53_s3 = int_to_ptr.vmem [resolvable:$true] %s52_s3 }
  0x2b   :  { %s6278_s11 = scalar_lea.vmem %s28_s30, 128  ;;  %p6283_p2 = scmp.lt.s32.totalorder %s28_s30, %s28_s30 }
  0x2c   :  { %p6279_p1 = scmp.ne.s32.totalorder %s28_s30, %s6278_s11  ;;  %p6284_p3 = scmp.lt.s32.totalorder %s6278_s11, %s6278_s11 }
  0x2e   :  { %p6285_p4 = por %p6284_p3, %p6283_p2 }
  0x30   :  { %p6286_p5 = pnand %p6285_p4, %p6279_p1 }
  0x32   :  { %6289 = shalt.err (!%p6286_p5)
}
  0x33   :  { %33 = dma.hbm_to_vmem [thread:$0]  %s6779_s0, 128, %s28_s30, [#allocation4], %s6404_s8, %s6404_s8, %s6405_s16  }
  0x34   :  { %s6298_s5 = scalar_lea.vmem %s53_s3, 16  ;;  %s6302_s14 = scalar_lea.vmem %s53_s3, 32 }
  0x35   :  { %p6299_p6 = scmp.ne.s32.totalorder %s53_s3, %s6298_s5  ;;  %p6303_p7 = scmp.lt.s32.totalorder %s53_s3, %s53_s3 }
  0x36   :  { %p6304_p8 = scmp.lt.s32.totalorder %s6302_s14, %s6298_s5 }
  0x38   :  { %p6305_p9 = por %p6304_p8, %p6303_p7 }
  0x3a   :  { %p6306_p10 = pnand %p6305_p9, %p6299_p6 }
  0x3c   :  { %6309 = shalt.err (!%p6306_p10)
}
  0x3d   :  { %55 = dma.hbm_to_vmem [thread:$0]  %s6781_s2, 16, %s53_s3, [#allocation7]  }
  0x3e   :  { %s6412_s18 = smov [#allocation11]   ;;  %s6413_s20 = smov [#allocation14]  }
  0x3f   :  { %s74_s19 = sshll.u32 %s6412_s18, 4  ;;  %s96_s21 = sshll.u32 %s6413_s20, 4  ;;  %s75_s19 = int_to_ptr.vmem [resolvable:$true] %s74_s19  ;;  %s97_s21 = int_to_ptr.vmem [resolvable:$true] %s96_s21 }
  0x40   :  { %s6318_s22 = scalar_lea.vmem %s75_s19, 256  ;;  %p6323_p12 = scmp.lt.s32.totalorder %s75_s19, %s75_s19 }
  0x41   :  { %p6319_p11 = scmp.ne.s32.totalorder %s75_s19, %s6318_s22  ;;  %p6324_p13 = scmp.lt.s32.totalorder %s6318_s22, %s6318_s22 }
  0x43   :  { %p6325_p0 = por %p6324_p13, %p6323_p12 }
  0x45   :  { %p6326_p1 = pnand %p6325_p0, %p6319_p11 }
  0x47   :  { %6329 = shalt.err (!%p6326_p1)
}
  0x48   :  { %77 = dma.hbm_to_vmem [thread:$0]  %s6783_s4, 256, %s75_s19, [#allocation10]  }
  0x49   :  { %s6338_s16 = scalar_lea.vmem %s97_s21, 64  ;;  %p6343_p3 = scmp.lt.s32.totalorder %s97_s21, %s97_s21 }
  0x4a   :  { %p6339_p2 = scmp.ne.s32.totalorder %s97_s21, %s6338_s16  ;;  %p6344_p4 = scmp.lt.s32.totalorder %s6338_s16, %s6338_s16 }
  0x4c   :  { %p6345_p5 = por %p6344_p4, %p6343_p3 }
  0x4e   :  { %p6346_p6 = pnand %p6345_p5, %p6339_p2 }
  0x50   :  { %6349 = shalt.err (!%p6346_p6)
}
  0x51   :  { %99 = dma.hbm_to_vmem [thread:$0]  %s6785_s6, 64, %s97_s21, [#allocation13]  }
  0x52   :  { %s6414_s24 = smov [#allocation15]  }
  0x53   :  { %s106_s25 = sshll.u32 %s6414_s24, 4  ;;  %s107_s25 = int_to_ptr.vmem [resolvable:$true] %s106_s25 }
  0x54   :  { %s6358_s1 = scalar_lea.vmem %s107_s25, 64  ;;  %p6363_p8 = scmp.lt.s32.totalorder %s107_s25, %s107_s25 }
  0x55   :  { %p6359_p7 = scmp.ne.s32.totalorder %s107_s25, %s6358_s1  ;;  %p6364_p9 = scmp.lt.s32.totalorder %s6358_s1, %s6358_s1 }
  0x57   :  { %p6365_p10 = por %p6364_p9, %p6363_p8 }
  0x59   :  { %p6366_p11 = pnand %p6365_p10, %p6359_p7 }
  0x5b   :  { %6369 = shalt.err (!%p6366_p11)
}
  0x5c   :  { %109 = dma.hbm_to_vmem [thread:$0]  %s6786_s7, 64, %s107_s25, [#allocation16]  }
  0x5d   :  { %6390 = dma.done.wait [#allocation4], 128  }
  0x5e   :  { %6391 = vsyncadd [#allocation4], 4294967168 }
  0x5f   :  { %6392 = dma.done.wait [#allocation7], 272  }
  0x60   :  { %6393 = vsyncadd [#allocation7], 4294967024 }
  0x61   :  { %6394 = dma.done.wait [#allocation10], 4352  }
  0x62   :  { %6395 = vsyncadd [#allocation10], 4294962944 }
  0x63   :  { %6396 = dma.done.wait [#allocation13], 65600  }
  0x64   :  { %6397 = vsyncadd [#allocation13], 4294901696 }
  0x65   :  { %6398 = dma.done.wait [#allocation16], 64  }
  0x66   :  { %6399 = vsyncadd [#allocation16], 4294967232  ;;  %v5398_v1 = vld [vmem:[#allocation3] sm:$0xff]   ;;  %vm143_vm0 = vcmask 261120   ;;  %v5432_v8 = vld [vmem:[#allocation6 + $0x8] sm:$0xff]   ;;  %v6415_v10 = vmov 0.0  }
  0x67   :  { %v5399_v2 = vunpack.c.l.bf16 %v5398_v1  ;;  %v5400_v3 = vunpack.c.h.bf16 %v5398_v1  ;;  %v5433_v9 = vld [vmem:[#allocation6] sm:$0xff]   ;;  %5404 = vmatprep.subr.bf16.mxu0 %v6415_v10  ;;  %vm6416_vm1 = vmmov 0   ;;  %v243_v20 = vld [vmem:[#allocation9 + $0x80] sm:$0xff]  ;;  %v246_v38 = vld [vmem:[#allocation9 + $0x98] sm:$0xff]  ;;  %v6417_v41 = vmov 0   ;;  %s6419_s6 = smov [#allocation17]  }
  0x68   :  { %5408 = vmatprep.mubr.msk.bf16.mxu0 %vm6416_vm1, %v6415_v10  ;;  %5405 = vmatpush3.bf16.msra.mxu0 %v5432_v8  ;;  %v251_v21 = vld [vmem:[#allocation9 + $0xc0] sm:$0xff]  ;;  %v244_v22 = vld [vmem:[#allocation9 + $0x88] sm:$0xff]  ;;  %v245_v36 = vld [vmem:[#allocation9 + $0x90] sm:$0xff]  ;;  %s4826_s7 = sshll.u32 %s6419_s6, 4  ;;  %vm4818_vm2 = vcmask 122880   ;;  %s4827_s7 = int_to_ptr.vmem [resolvable:$true] %s4826_s7 }
  0x69   :  { %v141_v4 = vmul.f32 %v5399_v2, %v5399_v2  ;;  %v142_v5 = vmul.f32 %v5400_v3, %v5400_v3  ;;  %5406 = vmatprep.subr.bf16.mxu0 %v6415_v10  ;;  %v4860_v23 = vcombine.high %v243_v20, %v251_v21  ;;  %v252_v24 = vld [vmem:[#allocation9 + $0xc8] sm:$0xff]  ;;  %v4859_v27 = vcombine.low %v243_v20, %v251_v21  ;;  %v227_v28 = vld [vmem:[#allocation9] sm:$0xff]  ;;  %v253_v37 = vld [vmem:[#allocation9 + $0xd0] sm:$0xff]  ;;  %s6370_s27 = scalar_lea.vmem %s4827_s7, 16  ;;  %s6374_s28 = scalar_lea.vmem %s4827_s7, 32 }
  0x6a   :  { %v4861_v25 = vcombine.low %v244_v22, %v252_v24  ;;  %v4862_v26 = vcombine.high %v244_v22, %v252_v24  ;;  %v235_v29 = vld [vmem:[#allocation9 + $0x40] sm:$0xff]  ;;  %v228_v30 = vld [vmem:[#allocation9 + $0x8] sm:$0xff]  ;;  %v4864_v39 = vcombine.high %v245_v36, %v253_v37  ;;  %v254_v40 = vld [vmem:[#allocation9 + $0xd8] sm:$0xff]  ;;  %538 = vmatprep.mubr.bf16.mxu1 %v6417_v41  ;;  %v4863_v42 = vcombine.low %v245_v36, %v253_v37  ;;  %p6371_p12 = scmp.ne.s32.totalorder %s4827_s7, %s6370_s27  ;;  %p6375_p13 = scmp.lt.s32.totalorder %s4827_s7, %s4827_s7 }
  0x6b   :  { %v144_v6 = vsel %vm143_vm0, %v141_v4, 0.0  ;;  %v147_v7 = vsel %vm143_vm0, %v142_v5, 0.0  ;;  %518 = vmatprep.subr.bf16.mxu1 %v4860_v23  ;;  %v4844_v31 = vcombine.high %v227_v28, %v235_v29  ;;  %v236_v32 = vld [vmem:[#allocation9 + $0x48] sm:$0xff]  ;;  %v4843_v35 = vcombine.low %v227_v28, %v235_v29  ;;  %5430 = vset.pattern.permute.xlu1 %v6417_v41  ;;  %v4839_v45 = vld [vmem:[#allocation8] ss:$0 sm:$0xff]  ;;  %v229_v51 = vld [vmem:[#allocation9 + $0x10] sm:$0xff]  ;;  %p6376_p0 = scmp.lt.s32.totalorder %s6374_s28, %s6370_s27 }
  0x6c   :  { %145 = vadd.xlane.f32.xlu0 %v144_v6  ;;  %5407 = vmatpush3.bf16.msra.mxu0 %v5433_v9  ;;  %v4845_v33 = vcombine.low %v228_v30, %v236_v32  ;;  %v4846_v34 = vcombine.high %v228_v30, %v236_v32  ;;  %v4865_v43 = vcombine.low %v246_v38, %v254_v40  ;;  %v237_v53 = vld [vmem:[#allocation9 + $0x50] sm:$0xff]  ;;  %v230_v54 = vld [vmem:[#allocation9 + $0x18] sm:$0xff]  ;;  %v247_v61 = vld [vmem:[#allocation9 + $0xa0] sm:$0xff] }
  0x6d   :  { %561 = vmatprep.subr.bf16.mxu0 %v4862_v26  ;;  %519 = vmatpush1.bf16.msra.mxu1 %v4859_v27  ;;  %v4866_v44 = vcombine.high %v246_v38, %v254_v40  ;;  %v238_v55 = vld [vmem:[#allocation9 + $0x58] sm:$0xff]  ;;  %v4848_v59 = vcombine.high %v229_v51, %v237_v53  ;;  %v255_v62 = vld [vmem:[#allocation9 + $0xe0] sm:$0xff]  ;;  %v248_v63 = vld [vmem:[#allocation9 + $0xa8] sm:$0xff]  ;;  %v4847_v1 = vcombine.low %v229_v51, %v237_v53  ;;  %p6377_p1 = por %p6376_p0, %p6375_p13 }
  0x6e   :  { %520 = vmatprep.subr.bf16.mxu1 %v4844_v31  ;;  %5431 = vset.pattern.permute.xlu0 %v6417_v41  ;;  %v4850_v60 = vcombine.high %v230_v54, %v238_v55  ;;  %v256_v0 = vld [vmem:[#allocation9 + $0xe8] sm:$0xff]  ;;  %v231_v5 = vld [vmem:[#allocation9 + $0x20] sm:$0xff]  ;;  %v4867_v9 = vcombine.low %v247_v61, %v255_v62  ;;  %v233_v21 = vld [vmem:[#allocation9 + $0x30] sm:$0xff] }
  0x6f   :  { %v4870_v4 = vcombine.high %v248_v63, %v256_v0  ;;  %v239_v6 = vld [vmem:[#allocation9 + $0x60] sm:$0xff]  ;;  %v240_v8 = vld [vmem:[#allocation9 + $0x68] sm:$0xff]  ;;  %v4869_v10 = vcombine.low %v248_v63, %v256_v0  ;;  %v241_v22 = vld [vmem:[#allocation9 + $0x70] sm:$0xff]  ;;  %p6378_p2 = pnand %p6377_p1, %p6371_p12 }
  0x70   :  { %148 = vadd.xlane.f32.xlu0 %v147_v7  ;;  %v232_v7 = vld [vmem:[#allocation9 + $0x28] sm:$0xff]  ;;  %v234_v23 = vld [vmem:[#allocation9 + $0x38] sm:$0xff]  ;;  %v4856_v27 = vcombine.high %v233_v21, %v241_v22  ;;  %v4855_v29 = vcombine.low %v233_v21, %v241_v22  ;;  %v5436_v31 = vld [vmem:[#allocation12 + $0xe4] ss:$16 sps:$4 sm:$0xff]  }
  0x71   :  { %521 = vmatpush1.bf16.msra.mxu1 %v4843_v35  ;;  %v242_v24 = vld [vmem:[#allocation9 + $0x78] sm:$0xff]  ;;  %v5439_v32 = vld [vmem:[#allocation12 + $0x2e4] ss:$16 sps:$4 sm:$0xff]   ;;  %v5440_v37 = vld [vmem:[#allocation12 + $0xc0] ss:$16 sps:$4 sm:$0xff]  }
  0x72   :  { %604 = vmatprep.subr.bf16.mxu1 %v4864_v39  ;;  %v4858_v28 = vcombine.high %v234_v23, %v242_v24  ;;  %v4857_v30 = vcombine.low %v234_v23, %v242_v24  ;;  %v5442_v35 = vld [vmem:[#allocation12 + $0xc4] ss:$16 sps:$4 sm:$0xff]   ;;  %v5443_v38 = vld [vmem:[#allocation12 + $0x2c0] ss:$16 sps:$4 sm:$0xff]  }
  0x73   :  { %v5445_v36 = vld [vmem:[#allocation12 + $0x2c4] ss:$16 sps:$4 sm:$0xff]   ;;  %v5464_v53 = vld [vmem:[#allocation12 + $0x40] ss:$16 sps:$4 sm:$0xff]  }
  0x74   :  { %v5448_v39 = vld [vmem:[#allocation12 + $0xa4] ss:$16 sps:$4 sm:$0xff]   ;;  %v5512_v21 = vld [vmem:[#allocation12 + $0x140] ss:$16 sps:$4 sm:$0xff]  }
  0x75   :  { %v5451_v40 = vld [vmem:[#allocation12 + $0x2a4] ss:$16 sps:$4 sm:$0xff]   ;;  %v5515_v22 = vld [vmem:[#allocation12 + $0x340] ss:$16 sps:$4 sm:$0xff]  }
  0x76   :  { %v5466_v51 = vld [vmem:[#allocation12 + $0x44] ss:$16 sps:$4 sm:$0xff]  }
  0x77   :  { %v5484_v63 = vld [vmem:[#allocation12 + $0x1e4] ss:$16 sps:$4 sm:$0xff]  }
  0x78   :  { %v5487_v0 = vld [vmem:[#allocation12 + $0x3e4] ss:$16 sps:$4 sm:$0xff]  }
  0x79   :  { %v5520_v23 = vld [vmem:[#allocation12 + $0x124] ss:$16 sps:$4 sm:$0xff]  }
  0x7a   :  { %v5523_v24 = vld [vmem:[#allocation12 + $0x324] ss:$16 sps:$4 sm:$0xff]  }
  0xf5   :  { %v146_v11 = vpop.xlane.xlu0 %145 }
  0xf6   :  { %v150_v12 = vmax.f32 %v146_v11, 1e-24  ;;  %v4852_v11 = vcombine.high %v231_v5, %v239_v6 }
  0xf8   :  { %6202 = vrsqrt.f32 %v150_v12  ;;  %v4854_v12 = vcombine.high %v232_v7, %v240_v8 }
  0xf9   :  { %v149_v13 = vpop.xlane.xlu0 %148 }
  0xfa   :  { %v151_v14 = vmax.f32 %v149_v13, 1e-24  ;;  %v249_v13 = vld [vmem:[#allocation9 + $0xb0] sm:$0xff] }
  0xfc   :  { %6204 = vrsqrt.f32 %v151_v14  ;;  %v257_v14 = vld [vmem:[#allocation9 + $0xf0] sm:$0xff] }
 0x105   :  { %v6203_v15 = vpop.eup %6202 }
 0x106   :  { %v154_v17 = vmul.f32 %v6203_v15, %v5399_v2  ;;  %v4849_v2 = vcombine.low %v230_v54, %v238_v55  ;;  %v250_v15 = vld [vmem:[#allocation9 + $0xb8] sm:$0xff]  ;;  %v5467_v54 = vld [vmem:[#allocation12 + $0x240] ss:$16 sps:$4 sm:$0xff]   ;;  %v5472_v55 = vld [vmem:[#allocation12 + $0x24] ss:$16 sps:$4 sm:$0xff]  }
 0x109   :  { %v6205_v16 = vpop.eup %6204 }
 0x10a   :  { %v155_v18 = vmul.f32 %v6205_v16, %v5400_v3  ;;  %v4868_v3 = vcombine.high %v247_v61, %v255_v62  ;;  %v258_v16 = vld [vmem:[#allocation9 + $0xf8] sm:$0xff]  ;;  %v5476_v61 = vld [vmem:[#allocation12] ss:$16 sps:$4 sm:$0xff]  }
 0x10b   :  { %v4874_v20 = vcombine.high %v250_v15, %v258_v16  ;;  %v4873_v26 = vcombine.low %v250_v15, %v258_v16  ;;  %v5479_v62 = vld [vmem:[#allocation12 + $0x200] ss:$16 sps:$4 sm:$0xff]   ;;  %v5508_v15 = vld [vmem:[#allocation12 + $0x164] ss:$16 sps:$4 sm:$0xff]  }
 0x10c   :  { %v156_v19 = vpack.c.bf16 %v155_v18, %v154_v17  ;;  %v4851_v17 = vcombine.low %v231_v5, %v239_v6  ;;  %v4853_v18 = vcombine.low %v232_v7, %v240_v8  ;;  %v5488_v5 = vld [vmem:[#allocation12 + $0x1c0] ss:$16 sps:$4 sm:$0xff]   ;;  %v5496_v7 = vld [vmem:[#allocation12 + $0x1a4] ss:$16 sps:$4 sm:$0xff]  }
 0x10d   :  { %v5491_v6 = vld [vmem:[#allocation12 + $0x3c0] ss:$16 sps:$4 sm:$0xff]   ;;  %v5499_v8 = vld [vmem:[#allocation12 + $0x3a4] ss:$16 sps:$4 sm:$0xff]  }
 0x10e   :  { %5409 = vmatmul.mubr.msk.bf16.vlgmr.msra.gmra.mxu0 %vm143_vm0, %v156_v19  ;;  %v4872_v19 = vcombine.high %v249_v13, %v257_v14  ;;  %v5511_v16 = vld [vmem:[#allocation12 + $0x364] ss:$16 sps:$4 sm:$0xff]  }
 0x10f   :  { %562 = vmatpush1.bf16.msra.mxu0 %v4861_v25  ;;  %581 = vmatprep.mubr.bf16.mxu0 %v6417_v41  ;;  %v4871_v25 = vcombine.low %v249_v13, %v257_v14  ;;  %v5500_v13 = vld [vmem:[#allocation12 + $0x180] ss:$16 sps:$4 sm:$0xff]  }
 0x110   :  { %563 = vmatprep.subr.bf16.mxu0 %v4846_v34  ;;  %v5437_v34 = vld [vmem:[#allocation12 + $0x2e0] ss:$16 sps:$4 sm:$0xff]  }
 0x111   :  { %v5503_v14 = vld [vmem:[#allocation12 + $0x380] ss:$16 sps:$4 sm:$0xff]  }
 0x113   :  { %564 = vmatpush1.bf16.msra.mxu0 %v4845_v33  ;;  %v5434_v33 = vld [vmem:[#allocation12 + $0xe0] ss:$16 sps:$4 sm:$0xff]  }
 0x114   :  { %647 = vmatprep.subr.bf16.mxu0 %v4866_v44  ;;  %v5457_v44 = vld [vmem:[#allocation12 + $0x284] ss:$16 sps:$4 sm:$0xff]  }
 0x1ce   :  { %v217_v46 = vpop.f32.mrf.mxu0 }
 0x1cf   :  { %v218_v48 = vadd.f32 %v4839_v45, %v217_v46  ;;  %v5455_v46 = vld [vmem:[#allocation12 + $0x280] ss:$16 sps:$4 sm:$0xff]  }
 0x1d0   :  { %v5410_v47 = vpop.f32.mrf.mxu0 }
 0x1d1   :  { %v224_v56 = vmax.f32 %v218_v48, 0.0  ;;  %v5460_v47 = vld [vmem:[#allocation12 + $0x64] ss:$16 sps:$4 sm:$0xff]  }
 0x1d2   :  { %v220_v49 = vpop.f32.mrf.mxu0  ;;  %v5463_v48 = vld [vmem:[#allocation12 + $0x264] ss:$16 sps:$4 sm:$0xff]  }
 0x1d3   :  { %v221_v50 = vadd.f32 %v4839_v45, %v220_v49  ;;  %v5452_v45 = vld [vmem:[#allocation12 + $0x80] ss:$16 sps:$4 sm:$0xff]  }
 0x1d4   :  { %v5411_v52 = vpop.f32.mrf.mxu0  ;;  %v5458_v49 = vld [vmem:[#allocation12 + $0x60] ss:$16 sps:$4 sm:$0xff]  }
 0x1d5   :  { %v225_v57 = vmax.f32 %v221_v50, 0.0  ;;  %v5461_v50 = vld [vmem:[#allocation12 + $0x260] ss:$16 sps:$4 sm:$0xff]   ;;  %v5469_v52 = vld [vmem:[#allocation12 + $0x244] ss:$16 sps:$4 sm:$0xff]  }
 0x1d7   :  { %v6511_v58 = vpack.c.bf16 %v225_v57, %v224_v56  ;;  %v5475_v56 = vld [vmem:[#allocation12 + $0x224] ss:$16 sps:$4 sm:$0xff]   ;;  %v5470_v57 = vld [vmem:[#allocation12 + $0x20] ss:$16 sps:$4 sm:$0xff]  }
 0x1d9   :  { %4875 = vmatmul.mubr.msk.bf16.vlgmr.msra.gmra.mxu1 %vm143_vm0, %v6511_v58  ;;  %4876 = vmatmul.mubr.msk.bf16.vlgmr.msra.gmra.mxu0 %vm143_vm0, %v6511_v58 }
 0x1da   :  { %605 = vmatpush1.bf16.msra.mxu1 %v4863_v42  ;;  %648 = vmatpush1.bf16.msra.mxu0 %v4865_v43  ;;  %v5449_v42 = vld [vmem:[#allocation12 + $0x2a0] ss:$16 sps:$4 sm:$0xff]   ;;  %v5454_v43 = vld [vmem:[#allocation12 + $0x84] ss:$16 sps:$4 sm:$0xff]  }
 0x1db   :  { %606 = vmatprep.subr.bf16.mxu1 %v4848_v59  ;;  %649 = vmatprep.subr.bf16.mxu0 %v4850_v60  ;;  %v5478_v59 = vld [vmem:[#allocation12 + $0x4] ss:$16 sps:$4 sm:$0xff]  }
 0x1dc   :  { %624 = vmatprep.mubr.bf16.mxu1 %v6417_v41  ;;  %667 = vmatprep.mubr.bf16.mxu0 %v6417_v41  ;;  %v5481_v60 = vld [vmem:[#allocation12 + $0x204] ss:$16 sps:$4 sm:$0xff]  }
 0x1de   :  { %607 = vmatpush1.bf16.msra.mxu1 %v4847_v1  ;;  %650 = vmatpush1.bf16.msra.mxu0 %v4849_v2  ;;  %v5482_v1 = vld [vmem:[#allocation12 + $0x1e0] ss:$16 sps:$4 sm:$0xff]  }
 0x1df   :  { %690 = vmatprep.subr.bf16.mxu1 %v4868_v3  ;;  %733 = vmatprep.subr.bf16.mxu0 %v4870_v4  ;;  %v5485_v2 = vld [vmem:[#allocation12 + $0x3e0] ss:$16 sps:$4 sm:$0xff]   ;;  %v5490_v3 = vld [vmem:[#allocation12 + $0x1c4] ss:$16 sps:$4 sm:$0xff]  }
 0x1e0   :  { %v5493_v4 = vld [vmem:[#allocation12 + $0x3c4] ss:$16 sps:$4 sm:$0xff]  }
 0x1e1   :  { %4877 = vmatmul.mubr.msk.bf16.vlgmr.msra.gmra.mxu1 %vm143_vm0, %v6511_v58  ;;  %4878 = vmatmul.mubr.msk.bf16.vlgmr.msra.gmra.mxu0 %vm143_vm0, %v6511_v58 }
 0x1e2   :  { %691 = vmatpush1.bf16.msra.mxu1 %v4867_v9  ;;  %734 = vmatpush1.bf16.msra.mxu0 %v4869_v10  ;;  %v5494_v9 = vld [vmem:[#allocation12 + $0x1a0] ss:$16 sps:$4 sm:$0xff]  }
 0x1e3   :  { %692 = vmatprep.subr.bf16.mxu1 %v4852_v11  ;;  %735 = vmatprep.subr.bf16.mxu0 %v4854_v12  ;;  %v5497_v10 = vld [vmem:[#allocation12 + $0x3a0] ss:$16 sps:$4 sm:$0xff]   ;;  %v5502_v11 = vld [vmem:[#allocation12 + $0x184] ss:$16 sps:$4 sm:$0xff]  }
 0x1e4   :  { %710 = vmatprep.mubr.bf16.mxu1 %v6417_v41  ;;  %753 = vmatprep.mubr.bf16.mxu0 %v6417_v41  ;;  %v5505_v12 = vld [vmem:[#allocation12 + $0x384] ss:$16 sps:$4 sm:$0xff]  }
 0x1e6   :  { %693 = vmatpush1.bf16.msra.mxu1 %v4851_v17  ;;  %736 = vmatpush1.bf16.msra.mxu0 %v4853_v18  ;;  %v5506_v17 = vld [vmem:[#allocation12 + $0x160] ss:$16 sps:$4 sm:$0xff]  }
 0x1e7   :  { %776 = vmatprep.subr.bf16.mxu1 %v4872_v19  ;;  %819 = vmatprep.subr.bf16.mxu0 %v4874_v20  ;;  %v5509_v18 = vld [vmem:[#allocation12 + $0x360] ss:$16 sps:$4 sm:$0xff]   ;;  %v5514_v19 = vld [vmem:[#allocation12 + $0x144] ss:$16 sps:$4 sm:$0xff]  }
 0x1e8   :  { %v5517_v20 = vld [vmem:[#allocation12 + $0x344] ss:$16 sps:$4 sm:$0xff]  }
 0x1e9   :  { %4879 = vmatmul.mubr.msk.bf16.vlgmr.msra.gmra.mxu1 %vm143_vm0, %v6511_v58  ;;  %4880 = vmatmul.mubr.msk.bf16.vlgmr.msra.gmra.mxu0 %vm143_vm0, %v6511_v58 }
 0x1ea   :  { %777 = vmatpush1.bf16.msra.mxu1 %v4871_v25  ;;  %820 = vmatpush1.bf16.msra.mxu0 %v4873_v26  ;;  %v5518_v25 = vld [vmem:[#allocation12 + $0x120] ss:$16 sps:$4 sm:$0xff]  }
 0x1eb   :  { %778 = vmatprep.subr.bf16.mxu1 %v4856_v27  ;;  %821 = vmatprep.subr.bf16.mxu0 %v4858_v28  ;;  %v5521_v26 = vld [vmem:[#allocation12 + $0x320] ss:$16 sps:$4 sm:$0xff]   ;;  %v5526_v27 = vld [vmem:[#allocation12 + $0x104] ss:$16 sps:$4 sm:$0xff]  }
 0x1ec   :  { %796 = vmatprep.mubr.bf16.mxu1 %v6417_v41  ;;  %839 = vmatprep.mubr.bf16.mxu0 %v6417_v41  ;;  %v5446_v41 = vld [vmem:[#allocation12 + $0xa0] ss:$16 sps:$4 sm:$0xff]   ;;  %v5529_v28 = vld [vmem:[#allocation12 + $0x304] ss:$16 sps:$4 sm:$0xff]  }
 0x1ee   :  { %779 = vmatpush1.bf16.msra.mxu1 %v4855_v29  ;;  %822 = vmatpush1.bf16.msra.mxu0 %v4857_v30  ;;  %v263_v29 = vlaneseq  ;;  %v5524_v30 = vld [vmem:[#allocation12 + $0x100] ss:$16 sps:$4 sm:$0xff]  }
 0x1ef   :  { %3992 = vmatprep.subr.bf16.mxu1 %v5436_v31  ;;  %4035 = vmatprep.subr.bf16.mxu0 %v5439_v32  ;;  %v5527_v31 = vld [vmem:[#allocation12 + $0x300] ss:$16 sps:$4 sm:$0xff]   ;;  %v5532_v32 = vld [vmem:[#allocation12 + $0x4e4] ss:$16 sps:$4 sm:$0xff]  }
 0x1f1   :  { %4881 = vmatmul.mubr.msk.bf16.vlgmr.msra.gmra.mxu1 %vm143_vm0, %v6511_v58  ;;  %4882 = vmatmul.mubr.msk.bf16.vlgmr.msra.gmra.mxu0 %vm143_vm0, %v6511_v58  ;;  %v5473_v58 = vld [vmem:[#allocation12 + $0x220] ss:$16 sps:$4 sm:$0xff]  }
 0x1f2   :  { %3993 = vmatpush1.bf16.msra.mxu1 %v5434_v33  ;;  %4036 = vmatpush1.bf16.msra.mxu0 %v5437_v34  ;;  %v5535_v33 = vld [vmem:[#allocation12 + $0x6e4] ss:$16 sps:$4 sm:$0xff]   ;;  %v6535_v34 = vshrl.u32 %v263_v29, 7 }
 0x1f3   :  { %3994 = vmatprep.subr.bf16.mxu1 %v5442_v35  ;;  %4037 = vmatprep.subr.bf16.mxu0 %v5445_v36 }
 0x1f4   :  { %v281_v35 = vsub.s32 4, %v6535_v34  ;;  %v289_v36 = vsub.s32 6, %v6535_v34 }
 0x1f6   :  { %3995 = vmatpush1.bf16.msra.mxu1 %v5440_v37  ;;  %4038 = vmatpush1.bf16.msra.mxu0 %v5443_v38  ;;  %v6539_v37 = vld [vmem:[#allocation11 + $0x8] sm:$0xff]  ;;  %v285_v38 = vsub.s32 5, %v6535_v34 }
 0x1f7   :  { %3996 = vmatprep.subr.bf16.mxu1 %v5448_v39  ;;  %4039 = vmatprep.subr.bf16.mxu0 %v5451_v40  ;;  %v293_v39 = vsub.s32 7, %v6535_v34  ;;  %v6546_v40 = vrot.slane %v6539_v37, %v281_v35 }
 0x1fa   :  { %3997 = vmatpush1.bf16.msra.mxu1 %v5446_v41  ;;  %4040 = vmatpush1.bf16.msra.mxu0 %v5449_v42  ;;  %v6551_v41 = vrot.slane %v6539_v37, %v289_v36  ;;  %v6554_v42 = vrot.slane %v6539_v37, %v285_v38 }
 0x1fb   :  { %3998 = vmatprep.subr.bf16.mxu1 %v5454_v43  ;;  %4041 = vmatprep.subr.bf16.mxu0 %v5457_v44  ;;  %v6557_v43 = vrot.slane %v6539_v37, %v293_v39  ;;  %v6560_v44 = vsub.s32 1, %v6535_v34 }
 0x1fe   :  { %3999 = vmatpush1.bf16.msra.mxu1 %v5452_v45  ;;  %4042 = vmatpush1.bf16.msra.mxu0 %v5455_v46  ;;  %v6563_v45 = vsub.s32 3, %v6535_v34  ;;  %v6566_v46 = vsub.s32 0, %v6535_v34 }
 0x1ff   :  { %4000 = vmatprep.subr.bf16.mxu1 %v5460_v47  ;;  %4043 = vmatprep.subr.bf16.mxu0 %v5463_v48  ;;  %v6569_v47 = vsub.s32 2, %v6535_v34  ;;  %v6571_v48 = vld [vmem:[#allocation11] sm:$0xff] }
 0x202   :  { %4001 = vmatpush1.bf16.msra.mxu1 %v5458_v49  ;;  %4044 = vmatpush1.bf16.msra.mxu0 %v5461_v50 }
 0x203   :  { %4002 = vmatprep.subr.bf16.mxu1 %v5466_v51  ;;  %4045 = vmatprep.subr.bf16.mxu0 %v5469_v52  ;;  %v270_v51 = vrot.slane %v6571_v48, %v6560_v44  ;;  %v278_v52 = vrot.slane %v6571_v48, %v6563_v45 }
 0x206   :  { %4003 = vmatpush1.bf16.msra.mxu1 %v5464_v53  ;;  %4046 = vmatpush1.bf16.msra.mxu0 %v5467_v54  ;;  %v266_v53 = vrot.slane %v6571_v48, %v6566_v46  ;;  %v274_v54 = vrot.slane %v6571_v48, %v6569_v47 }
 0x207   :  { %4004 = vmatprep.subr.bf16.mxu1 %v5472_v55  ;;  %4047 = vmatprep.subr.bf16.mxu0 %v5475_v56 }
 0x20a   :  { %4005 = vmatpush1.bf16.msra.mxu1 %v5470_v57  ;;  %4048 = vmatpush1.bf16.msra.mxu0 %v5473_v58 }
 0x20b   :  { %4006 = vmatprep.subr.bf16.mxu1 %v5478_v59  ;;  %4049 = vmatprep.subr.bf16.mxu0 %v5481_v60 }
 0x20e   :  { %4007 = vmatpush1.bf16.msra.mxu1 %v5476_v61  ;;  %4050 = vmatpush1.bf16.msra.mxu0 %v5479_v62 }
 0x20f   :  { %4008 = vmatprep.subr.bf16.mxu1 %v5484_v63  ;;  %4051 = vmatprep.subr.bf16.mxu0 %v5487_v0 }
 0x212   :  { %4009 = vmatpush2.bf16.msra.mxu1 %v5482_v1  ;;  %4052 = vmatpush2.bf16.msra.mxu0 %v5485_v2 }
 0x213   :  { %4010 = vmatprep.subr.bf16.mxu1 %v5490_v3  ;;  %4053 = vmatprep.subr.bf16.mxu0 %v5493_v4 }
 0x216   :  { %4011 = vmatpush2.bf16.msra.mxu1 %v5488_v5  ;;  %4054 = vmatpush2.bf16.msra.mxu0 %v5491_v6 }
 0x217   :  { %4012 = vmatprep.subr.bf16.mxu1 %v5496_v7  ;;  %4055 = vmatprep.subr.bf16.mxu0 %v5499_v8 }
 0x21a   :  { %4013 = vmatpush2.bf16.msra.mxu1 %v5494_v9  ;;  %4056 = vmatpush2.bf16.msra.mxu0 %v5497_v10  ;;  %v286_v9 = vrot.slane %v6571_v48, %v285_v38  ;;  %v294_v10 = vrot.slane %v6571_v48, %v293_v39 }
 0x21b   :  { %4014 = vmatprep.subr.bf16.mxu1 %v5502_v11  ;;  %4057 = vmatprep.subr.bf16.mxu0 %v5505_v12 }
 0x21e   :  { %4015 = vmatpush2.bf16.msra.mxu1 %v5500_v13  ;;  %4058 = vmatpush2.bf16.msra.mxu0 %v5503_v14 }
 0x21f   :  { %4016 = vmatprep.subr.bf16.mxu1 %v5508_v15  ;;  %4059 = vmatprep.subr.bf16.mxu0 %v5511_v16 }
 0x222   :  { %4017 = vmatpush2.bf16.msra.mxu1 %v5506_v17  ;;  %4060 = vmatpush2.bf16.msra.mxu0 %v5509_v18 }
 0x223   :  { %4018 = vmatprep.subr.bf16.mxu1 %v5514_v19  ;;  %4061 = vmatprep.subr.bf16.mxu0 %v5517_v20 }
 0x226   :  { %4019 = vmatpush2.bf16.msra.mxu1 %v5512_v21  ;;  %4062 = vmatpush2.bf16.msra.mxu0 %v5515_v22  ;;  %v5530_v21 = vld [vmem:[#allocation12 + $0x4e0] ss:$16 sps:$4 sm:$0xff]  }
 0x227   :  { %4020 = vmatprep.subr.bf16.mxu1 %v5520_v23  ;;  %4063 = vmatprep.subr.bf16.mxu0 %v5523_v24  ;;  %v5533_v22 = vld [vmem:[#allocation12 + $0x6e0] ss:$16 sps:$4 sm:$0xff]  }
 0x22a   :  { %4021 = vmatpush2.bf16.msra.mxu1 %v5518_v25  ;;  %4064 = vmatpush2.bf16.msra.mxu0 %v5521_v26 }
 0x22b   :  { %4022 = vmatprep.subr.bf16.mxu1 %v5526_v27  ;;  %4065 = vmatprep.subr.bf16.mxu0 %v5529_v28  ;;  %v5538_v27 = vld [vmem:[#allocation12 + $0x4c4] ss:$16 sps:$4 sm:$0xff]  }
 0x22c   :  { %v5541_v28 = vld [vmem:[#allocation12 + $0x6c4] ss:$16 sps:$4 sm:$0xff]  }
 0x22e   :  { %4023 = vmatpush2.bf16.msra.mxu1 %v5524_v30  ;;  %4066 = vmatpush2.bf16.msra.mxu0 %v5527_v31 }
 0x22f   :  { %4078 = vmatprep.subr.bf16.mxu1 %v5532_v32  ;;  %4121 = vmatprep.subr.bf16.mxu0 %v5535_v33  ;;  %v298_v33 = vrot.slane %v6539_v37, %v6566_v46 }
 0x299   :  { %v540_v49 = vpop.f32.mrf.mxu1  ;;  %v583_v50 = vpop.f32.mrf.mxu0 }
 0x29a   :  { %v541_v63 = vadd.f32 %v540_v49, %v266_v53  ;;  %v584_v0 = vadd.f32 %v583_v50, %v274_v54  ;;  %v306_v49 = vrot.slane %v6539_v37, %v6569_v47  ;;  %v5536_v50 = vld [vmem:[#allocation12 + $0x4c0] ss:$16 sps:$4 sm:$0xff]  }
 0x29b   :  { %v542_v55 = vpop.f32.mrf.mxu1  ;;  %v585_v56 = vpop.f32.mrf.mxu0 }
 0x29c   :  { %v543_v59 = vadd.f32 %v542_v55, %v270_v51  ;;  %v586_v60 = vadd.f32 %v585_v56, %v278_v52  ;;  %v850_v15 = vmax.f32 %v541_v63, 0.0  ;;  %v852_v16 = vmax.f32 %v584_v0, 0.0 }
 0x29d   :  { %v544_v57 = vpop.f32.mrf.mxu1  ;;  %v587_v58 = vpop.f32.mrf.mxu0 }
 0x29e   :  { %v545_v61 = vadd.f32 %v544_v57, %v266_v53  ;;  %v588_v62 = vadd.f32 %v587_v58, %v274_v54  ;;  %v851_v11 = vmax.f32 %v543_v59, 0.0  ;;  %v853_v12 = vmax.f32 %v586_v60, 0.0  ;;  %v5539_v53 = vld [vmem:[#allocation12 + $0x6c0] ss:$16 sps:$4 sm:$0xff]   ;;  %v5544_v54 = vld [vmem:[#allocation12 + $0x4a4] ss:$16 sps:$4 sm:$0xff]  }
 0x29f   :  { %v546_v1 = vpop.f32.mrf.mxu1  ;;  %v589_v2 = vpop.f32.mrf.mxu0  ;;  %v5547_v59 = vld [vmem:[#allocation12 + $0x6a4] ss:$16 sps:$4 sm:$0xff]  }
 0x2a0   :  { %v547_v3 = vadd.f32 %v546_v1, %v270_v51  ;;  %v590_v4 = vadd.f32 %v589_v2, %v278_v52  ;;  %v866_v5 = vmax.f32 %v545_v61, 0.0  ;;  %v868_v6 = vmax.f32 %v588_v62, 0.0  ;;  %v5542_v2 = vld [vmem:[#allocation12 + $0x4a0] ss:$16 sps:$4 sm:$0xff]  }
 0x2a1   :  { %v6581_v7 = vpop.f32.mrf.mxu1  ;;  %v6583_v8 = vpop.f32.mrf.mxu0 }
 0x2a2   :  { %v867_v13 = vmax.f32 %v547_v3, 0.0  ;;  %v869_v14 = vmax.f32 %v590_v4, 0.0  ;;  %v6591_v23 = vpack.c.bf16 %v866_v5, %v850_v15  ;;  %v6593_v24 = vpack.c.bf16 %v868_v6, %v852_v16  ;;  %v5545_v5 = vld [vmem:[#allocation12 + $0x6a0] ss:$16 sps:$4 sm:$0xff]   ;;  %v5550_v6 = vld [vmem:[#allocation12 + $0x484] ss:$16 sps:$4 sm:$0xff]  }
 0x2a3   :  { %v628_v17 = vpop.f32.mrf.mxu1  ;;  %v671_v18 = vpop.f32.mrf.mxu0 }
 0x2a4   :  { %v6587_v19 = vpack.c.bf16 %v867_v13, %v851_v11  ;;  %v6589_v20 = vpack.c.bf16 %v869_v14, %v853_v12  ;;  %v629_v29 = vadd.f32 %v628_v17, %v286_v9  ;;  %v672_v30 = vadd.f32 %v671_v18, %v294_v10  ;;  %v5553_v11 = vld [vmem:[#allocation12 + $0x684] ss:$16 sps:$4 sm:$0xff]   ;;  %v5548_v18 = vld [vmem:[#allocation12 + $0x480] ss:$16 sps:$4 sm:$0xff]  }
 0x2a5   :  { %v6595_v25 = vpop.f32.mrf.mxu1  ;;  %v6597_v26 = vpop.f32.mrf.mxu0 }
 0x2a6   :  { %4024 = vmatprep.mubr.bf16.mxu1 %v6587_v19  ;;  %4067 = vmatprep.mubr.bf16.mxu0 %v6589_v20  ;;  %v855_v55 = vmax.f32 %v629_v29, 0.0  ;;  %v857_v56 = vmax.f32 %v672_v30, 0.0 }
 0x2a7   :  { %v632_v31 = vpop.f32.mrf.mxu1  ;;  %v675_v32 = vpop.f32.mrf.mxu0  ;;  %4025 = vmatmul.mubr.bf16.vlgmr.msra.gmra.mxu1 %v6591_v23  ;;  %4068 = vmatmul.mubr.bf16.vlgmr.msra.gmra.mxu0 %v6593_v24 }
 0x2a8   :  { %v633_v38 = vadd.f32 %v632_v31, %v286_v9  ;;  %v676_v39 = vadd.f32 %v675_v32, %v294_v10  ;;  %4079 = vmatpush1.bf16.msra.mxu1 %v5530_v21  ;;  %4122 = vmatpush1.bf16.msra.mxu0 %v5533_v22  ;;  %v5559_v31 = vld [vmem:[#allocation12 + $0x664] ss:$16 sps:$4 sm:$0xff]  }
 0x2a9   :  { %v712_v51 = vpop.f32.mrf.mxu1  ;;  %v755_v52 = vpop.f32.mrf.mxu0  ;;  %4080 = vmatprep.subr.bf16.mxu1 %v5538_v27  ;;  %4123 = vmatprep.subr.bf16.mxu0 %v5541_v28  ;;  %v5551_v27 = vld [vmem:[#allocation12 + $0x680] ss:$16 sps:$4 sm:$0xff]   ;;  %v5556_v28 = vld [vmem:[#allocation12 + $0x464] ss:$16 sps:$4 sm:$0xff]  }
 0x2aa   :  { %v871_v57 = vmax.f32 %v633_v38, 0.0  ;;  %v873_v58 = vmax.f32 %v676_v39, 0.0  ;;  %v713_v0 = vadd.f32 %v712_v51, %v298_v33  ;;  %v756_v1 = vadd.f32 %v755_v52, %v306_v49  ;;  %v5557_v52 = vld [vmem:[#allocation12 + $0x660] ss:$16 sps:$4 sm:$0xff]  }
 0x2ab   :  { %v6607_v60 = vpop.f32.mrf.mxu1  ;;  %v6609_v61 = vpop.f32.mrf.mxu0 }
 0x2ac   :  { %v6611_v62 = vpack.c.bf16 %v871_v57, %v855_v55  ;;  %v6613_v63 = vpack.c.bf16 %v873_v58, %v857_v56  ;;  %4081 = vmatpush1.bf16.msra.mxu1 %v5536_v50  ;;  %4124 = vmatpush1.bf16.msra.mxu0 %v5539_v53  ;;  %v858_v14 = vmax.f32 %v713_v0, 0.0  ;;  %v860_v15 = vmax.f32 %v756_v1, 0.0  ;;  %v5562_v53 = vld [vmem:[#allocation12 + $0x444] ss:$16 sps:$4 sm:$0xff]   ;;  %v5560_v1 = vld [vmem:[#allocation12 + $0x440] ss:$16 sps:$4 sm:$0xff]  }
 0x2ad   :  { %v716_v3 = vpop.f32.mrf.mxu1  ;;  %v759_v4 = vpop.f32.mrf.mxu0  ;;  %4082 = vmatprep.subr.bf16.mxu1 %v5544_v54  ;;  %4125 = vmatprep.subr.bf16.mxu0 %v5547_v59  ;;  %v5565_v56 = vld [vmem:[#allocation12 + $0x644] ss:$16 sps:$4 sm:$0xff]  }
 0x2ae   :  { %v717_v9 = vadd.f32 %v716_v3, %v298_v33  ;;  %v760_v10 = vadd.f32 %v759_v4, %v306_v49  ;;  %4110 = vmatprep.mubr.bf16.mxu1 %v6611_v62  ;;  %4153 = vmatprep.mubr.bf16.mxu0 %v6613_v63  ;;  %v5554_v49 = vld [vmem:[#allocation12 + $0x460] ss:$16 sps:$4 sm:$0xff]   ;;  %v5568_v3 = vld [vmem:[#allocation12 + $0x424] ss:$16 sps:$4 sm:$0xff]  }
 0x2af   :  { %v6617_v12 = vpop.f32.mrf.mxu1  ;;  %v6619_v13 = vpop.f32.mrf.mxu0 }
 0x2b0   :  { %v874_v16 = vmax.f32 %v717_v9, 0.0  ;;  %v876_v17 = vmax.f32 %v760_v10, 0.0  ;;  %4083 = vmatpush1.bf16.msra.mxu1 %v5542_v2  ;;  %4126 = vmatpush1.bf16.msra.mxu0 %v5545_v5  ;;  %v5563_v2 = vld [vmem:[#allocation12 + $0x640] ss:$16 sps:$4 sm:$0xff]   ;;  %v5574_v9 = vld [vmem:[#allocation12 + $0x404] ss:$16 sps:$4 sm:$0xff]  }
 0x2b1   :  { %v798_v21 = vpop.f32.mrf.mxu1  ;;  %v841_v22 = vpop.f32.mrf.mxu0  ;;  %4084 = vmatprep.subr.bf16.mxu1 %v5550_v6  ;;  %4127 = vmatprep.subr.bf16.mxu0 %v5553_v11  ;;  %v5569_v6 = vld [vmem:[#allocation12 + $0x620] ss:$16 sps:$4 sm:$0xff]   ;;  %v5577_v10 = vld [vmem:[#allocation12 + $0x604] ss:$16 sps:$4 sm:$0xff]  }
 0x2b2   :  { %v6621_v29 = vpack.c.bf16 %v874_v16, %v858_v14  ;;  %v6623_v30 = vpack.c.bf16 %v876_v17, %v860_v15  ;;  %v799_v32 = vadd.f32 %v798_v21, %v6546_v40  ;;  %v842_v33 = vadd.f32 %v841_v22, %v6551_v41  ;;  %v5572_v11 = vld [vmem:[#allocation12 + $0x400] ss:$16 sps:$4 sm:$0xff]   ;;  %v5580_v15 = vld [vmem:[#allocation12 + $0x5e4] ss:$16 sps:$4 sm:$0xff]  }
 0x2b3   :  { %v6627_v38 = vpop.f32.mrf.mxu1  ;;  %v6629_v39 = vpop.f32.mrf.mxu0  ;;  %v5575_v14 = vld [vmem:[#allocation12 + $0x600] ss:$16 sps:$4 sm:$0xff]   ;;  %v5583_v16 = vld [vmem:[#allocation12 + $0x7e4] ss:$16 sps:$4 sm:$0xff]  }
 0x2b4   :  { %4085 = vmatpush1.bf16.msra.mxu1 %v5548_v18  ;;  %4128 = vmatpush1.bf16.msra.mxu0 %v5551_v27  ;;  %v862_v57 = vmax.f32 %v799_v32, 0.0  ;;  %v864_v58 = vmax.f32 %v842_v33, 0.0  ;;  %v5578_v17 = vld [vmem:[#allocation12 + $0x5e0] ss:$16 sps:$4 sm:$0xff]   ;;  %v5586_v21 = vld [vmem:[#allocation12 + $0x5c4] ss:$16 sps:$4 sm:$0xff]  }
 0x2b5   :  { %v802_v50 = vpop.f32.mrf.mxu1  ;;  %v845_v51 = vpop.f32.mrf.mxu0  ;;  %4086 = vmatprep.subr.bf16.mxu1 %v5556_v28  ;;  %4129 = vmatprep.subr.bf16.mxu0 %v5559_v31  ;;  %v5581_v18 = vld [vmem:[#allocation12 + $0x7e0] ss:$16 sps:$4 sm:$0xff]   ;;  %v5589_v22 = vld [vmem:[#allocation12 + $0x7c4] ss:$16 sps:$4 sm:$0xff]  }
 0x2b6   :  { %v803_v54 = vadd.f32 %v802_v50, %v6546_v40  ;;  %v846_v55 = vadd.f32 %v845_v51, %v6551_v41  ;;  %v5571_v40 = vld [vmem:[#allocation12 + $0x624] ss:$16 sps:$4 sm:$0xff]   ;;  %v5566_v41 = vld [vmem:[#allocation12 + $0x420] ss:$16 sps:$4 sm:$0xff]  }
 0x2b7   :  { %v5584_v27 = vld [vmem:[#allocation12 + $0x5c0] ss:$16 sps:$4 sm:$0xff]   ;;  %v5592_v31 = vld [vmem:[#allocation12 + $0x5a4] ss:$16 sps:$4 sm:$0xff]  }
 0x2b8   :  { %v878_v59 = vmax.f32 %v803_v54, 0.0  ;;  %v880_v0 = vmax.f32 %v846_v55, 0.0  ;;  %4087 = vmatpush1.bf16.msra.mxu1 %v5554_v49  ;;  %4130 = vmatpush1.bf16.msra.mxu0 %v5557_v52  ;;  %v5587_v28 = vld [vmem:[#allocation12 + $0x7c0] ss:$16 sps:$4 sm:$0xff]   ;;  %v5595_v32 = vld [vmem:[#allocation12 + $0x7a4] ss:$16 sps:$4 sm:$0xff]  }
 0x2b9   :  { %4088 = vmatprep.subr.bf16.mxu1 %v5562_v53  ;;  %4131 = vmatprep.subr.bf16.mxu0 %v5565_v56  ;;  %v5590_v33 = vld [vmem:[#allocation12 + $0x5a0] ss:$16 sps:$4 sm:$0xff]   ;;  %v5598_v50 = vld [vmem:[#allocation12 + $0x584] ss:$16 sps:$4 sm:$0xff]  }
 0x2ba   :  { %v6633_v4 = vpack.c.bf16 %v878_v59, %v862_v57  ;;  %v6635_v5 = vpack.c.bf16 %v880_v0, %v864_v58  ;;  %v5593_v49 = vld [vmem:[#allocation12 + $0x7a0] ss:$16 sps:$4 sm:$0xff]   ;;  %v5601_v51 = vld [vmem:[#allocation12 + $0x784] ss:$16 sps:$4 sm:$0xff]  }
 0x2bb   :  { %v5596_v52 = vld [vmem:[#allocation12 + $0x580] ss:$16 sps:$4 sm:$0xff]   ;;  %v5604_v54 = vld [vmem:[#allocation12 + $0x564] ss:$16 sps:$4 sm:$0xff]  }
 0x2bc   :  { %4089 = vmatpush1.bf16.msra.mxu1 %v5560_v1  ;;  %4132 = vmatpush1.bf16.msra.mxu0 %v5563_v2  ;;  %v5599_v53 = vld [vmem:[#allocation12 + $0x780] ss:$16 sps:$4 sm:$0xff]   ;;  %v5607_v55 = vld [vmem:[#allocation12 + $0x764] ss:$16 sps:$4 sm:$0xff]  }
 0x2bd   :  { %4090 = vmatprep.subr.bf16.mxu1 %v5568_v3  ;;  %4133 = vmatprep.subr.bf16.mxu0 %v5571_v40  ;;  %v5602_v56 = vld [vmem:[#allocation12 + $0x560] ss:$16 sps:$4 sm:$0xff]   ;;  %v5610_v58 = vld [vmem:[#allocation12 + $0x544] ss:$16 sps:$4 sm:$0xff]   ;;  %v282_v40 = vrot.slane %v6571_v48, %v281_v35  ;;  %v310_v35 = vrot.slane %v6539_v37, %v6563_v45 }
 0x2be   :  { %v5605_v57 = vld [vmem:[#allocation12 + $0x760] ss:$16 sps:$4 sm:$0xff]   ;;  %v5613_v59 = vld [vmem:[#allocation12 + $0x744] ss:$16 sps:$4 sm:$0xff]  }
 0x2bf   :  { %v5608_v0 = vld [vmem:[#allocation12 + $0x540] ss:$16 sps:$4 sm:$0xff]   ;;  %v5616_v2 = vld [vmem:[#allocation12 + $0x524] ss:$16 sps:$4 sm:$0xff]  }
 0x2c0   :  { %4091 = vmatpush1.bf16.msra.mxu1 %v5566_v41  ;;  %4134 = vmatpush1.bf16.msra.mxu0 %v5569_v6  ;;  %v5611_v1 = vld [vmem:[#allocation12 + $0x740] ss:$16 sps:$4 sm:$0xff]   ;;  %v5619_v3 = vld [vmem:[#allocation12 + $0x724] ss:$16 sps:$4 sm:$0xff]   ;;  %v290_v41 = vrot.slane %v6571_v48, %v289_v36  ;;  %v627_v36 = vadd.f32 %v6581_v7, %v282_v40 }
 0x2c1   :  { %4092 = vmatprep.subr.bf16.mxu1 %v5574_v9  ;;  %4135 = vmatprep.subr.bf16.mxu0 %v5577_v10  ;;  %v5614_v6 = vld [vmem:[#allocation12 + $0x520] ss:$16 sps:$4 sm:$0xff]   ;;  %v631_v9 = vadd.f32 %v6595_v25, %v282_v40  ;;  %v302_v10 = vrot.slane %v6539_v37, %v6560_v44  ;;  %v5631_v7 = vld [vmem:[#allocation12 + $0xae4] ss:$16 sps:$4 sm:$0xff]  }
 0x2c2   :  { %v670_v25 = vadd.f32 %v6583_v8, %v290_v41  ;;  %v5647_v40 = vld [vmem:[#allocation12 + $0xa80] ss:$16 sps:$4 sm:$0xff]  }
 0x2c3   :  { %v719_v48 = vadd.f32 %v6617_v12, %v302_v10 }
 0x2c4   :  { %4093 = vmatpush1.bf16.msra.mxu1 %v5572_v11  ;;  %4136 = vmatpush1.bf16.msra.mxu0 %v5575_v14  ;;  %v5617_v11 = vld [vmem:[#allocation12 + $0x720] ss:$16 sps:$4 sm:$0xff]   ;;  %v5622_v14 = vld [vmem:[#allocation12 + $0x504] ss:$16 sps:$4 sm:$0xff]  }
 0x2c5   :  { %4094 = vmatprep.subr.bf16.mxu1 %v5580_v15  ;;  %4137 = vmatprep.subr.bf16.mxu0 %v5583_v16  ;;  %v674_v15 = vadd.f32 %v6597_v26, %v290_v41  ;;  %v5625_v16 = vld [vmem:[#allocation12 + $0x704] ss:$16 sps:$4 sm:$0xff]   ;;  %v5623_v26 = vld [vmem:[#allocation12 + $0x700] ss:$16 sps:$4 sm:$0xff]   ;;  %v875_v12 = vmax.f32 %v719_v48, 0.0 }
 0x2c6   :  { %v5652_v41 = vld [vmem:[#allocation12 + $0x864] ss:$16 sps:$4 sm:$0xff]   ;;  %v5662_v48 = vld [vmem:[#allocation12 + $0x820] ss:$16 sps:$4 sm:$0xff]  }
 0x2c7   :  { %v872_v37 = vmax.f32 %v674_v15, 0.0  ;;  %v5656_v15 = vld [vmem:[#allocation12 + $0x840] ss:$16 sps:$4 sm:$0xff]  }
 0x2c8   :  { %4095 = vmatpush2.bf16.msra.mxu1 %v5578_v17  ;;  %4138 = vmatpush2.bf16.msra.mxu0 %v5581_v18  ;;  %v762_v17 = vadd.f32 %v6619_v13, %v310_v35  ;;  %v5620_v18 = vld [vmem:[#allocation12 + $0x500] ss:$16 sps:$4 sm:$0xff]  }
 0x2c9   :  { %4096 = vmatprep.subr.bf16.mxu1 %v5586_v21  ;;  %4139 = vmatprep.subr.bf16.mxu0 %v5589_v22  ;;  %v870_v21 = vmax.f32 %v631_v9, 0.0  ;;  %v715_v22 = vadd.f32 %v6607_v60, %v302_v10  ;;  %v5626_v13 = vld [vmem:[#allocation12 + $0x8e0] ss:$16 sps:$4 sm:$0xff]  }
 0x2ca   :  { %v877_v8 = vmax.f32 %v762_v17, 0.0  ;;  %v5629_v60 = vld [vmem:[#allocation12 + $0xae0] ss:$16 sps:$4 sm:$0xff]   ;;  %v5670_v17 = vld [vmem:[#allocation12 + $0x804] ss:$16 sps:$4 sm:$0xff]  }
 0x2cb   :  { %v5650_v9 = vld [vmem:[#allocation12 + $0x860] ss:$16 sps:$4 sm:$0xff]  }
 0x2cc   :  { %4097 = vmatpush2.bf16.msra.mxu1 %v5584_v27  ;;  %4140 = vmatpush2.bf16.msra.mxu0 %v5587_v28  ;;  %v5628_v27 = vld [vmem:[#allocation12 + $0x8e4] ss:$16 sps:$4 sm:$0xff]   ;;  %v758_v28 = vadd.f32 %v6609_v61, %v310_v35  ;;  %v5653_v10 = vld [vmem:[#allocation12 + $0xa60] ss:$16 sps:$4 sm:$0xff]  }
 0x2cd   :  { %4098 = vmatprep.subr.bf16.mxu1 %v5592_v31  ;;  %4141 = vmatprep.subr.bf16.mxu0 %v5595_v32  ;;  %v854_v31 = vmax.f32 %v627_v36, 0.0  ;;  %v856_v32 = vmax.f32 %v670_v25, 0.0  ;;  %v5659_v35 = vld [vmem:[#allocation12 + $0xa40] ss:$16 sps:$4 sm:$0xff]   ;;  %v5667_v36 = vld [vmem:[#allocation12 + $0xa24] ss:$16 sps:$4 sm:$0xff]  }
 0x2ce   :  { %v5665_v25 = vld [vmem:[#allocation12 + $0xa20] ss:$16 sps:$4 sm:$0xff]  }
 0x2d0   :  { %4099 = vmatpush2.bf16.msra.mxu1 %v5590_v33  ;;  %4142 = vmatpush2.bf16.msra.mxu0 %v5593_v49  ;;  %v6655_v33 = vpack.c.bf16 %v870_v21, %v854_v31  ;;  %v859_v49 = vmax.f32 %v715_v22, 0.0  ;;  %v5668_v21 = vld [vmem:[#allocation12 + $0x800] ss:$16 sps:$4 sm:$0xff]   ;;  %v5685_v31 = vld [vmem:[#allocation12 + $0xbc4] ss:$16 sps:$4 sm:$0xff]  }
 0x2d1   :  { %4100 = vmatprep.subr.bf16.mxu1 %v5598_v50  ;;  %4143 = vmatprep.subr.bf16.mxu0 %v5601_v51  ;;  %v6657_v50 = vpack.c.bf16 %v872_v37, %v856_v32  ;;  %v861_v51 = vmax.f32 %v758_v28, 0.0  ;;  %v5671_v22 = vld [vmem:[#allocation12 + $0xa00] ss:$16 sps:$4 sm:$0xff]  }
 0x2d2   :  { %v6659_v61 = vpack.c.bf16 %v875_v12, %v859_v49  ;;  %v5674_v37 = vld [vmem:[#allocation12 + $0x9e0] ss:$16 sps:$4 sm:$0xff]  }
 0x2d3   :  { %v5677_v28 = vld [vmem:[#allocation12 + $0xbe0] ss:$16 sps:$4 sm:$0xff]  }
 0x2d4   :  { %4101 = vmatpush2.bf16.msra.mxu1 %v5596_v52  ;;  %4144 = vmatpush2.bf16.msra.mxu0 %v5599_v53  ;;  %v5634_v52 = vld [vmem:[#allocation12 + $0x8c4] ss:$16 sps:$4 sm:$0xff]   ;;  %v5680_v12 = vld [vmem:[#allocation12 + $0x9c0] ss:$16 sps:$4 sm:$0xff]  }
 0x2d5   :  { %4102 = vmatprep.subr.bf16.mxu1 %v5604_v54  ;;  %4145 = vmatprep.subr.bf16.mxu0 %v5607_v55  ;;  %v5637_v53 = vld [vmem:[#allocation12 + $0xac4] ss:$16 sps:$4 sm:$0xff]   ;;  %v6662_v54 = vpack.c.bf16 %v877_v8, %v861_v51  ;;  %v5632_v55 = vld [vmem:[#allocation12 + $0x8c0] ss:$16 sps:$4 sm:$0xff]  }
 0x2d6   :  { %v5683_v32 = vld [vmem:[#allocation12 + $0xbc0] ss:$16 sps:$4 sm:$0xff]   ;;  %v5688_v8 = vld [vmem:[#allocation12 + $0x9a4] ss:$16 sps:$4 sm:$0xff]  }
 0x2d7   :  { %v5686_v49 = vld [vmem:[#allocation12 + $0x9a0] ss:$16 sps:$4 sm:$0xff]   ;;  %v5694_v51 = vld [vmem:[#allocation12 + $0x984] ss:$16 sps:$4 sm:$0xff]  }
 0x2d8   :  { %4103 = vmatpush2.bf16.msra.mxu1 %v5602_v56  ;;  %4146 = vmatpush2.bf16.msra.mxu0 %v5605_v57  ;;  %v5635_v56 = vld [vmem:[#allocation12 + $0xac0] ss:$16 sps:$4 sm:$0xff]   ;;  %v5640_v57 = vld [vmem:[#allocation12 + $0x8a4] ss:$16 sps:$4 sm:$0xff]  }
 0x2d9   :  { %4104 = vmatprep.subr.bf16.mxu1 %v5610_v58  ;;  %4147 = vmatprep.subr.bf16.mxu0 %v5613_v59  ;;  %v5643_v58 = vld [vmem:[#allocation12 + $0xaa4] ss:$16 sps:$4 sm:$0xff]   ;;  %v5638_v59 = vld [vmem:[#allocation12 + $0x8a0] ss:$16 sps:$4 sm:$0xff]  }
 0x2dc   :  { %4105 = vmatpush2.bf16.msra.mxu1 %v5608_v0  ;;  %4148 = vmatpush2.bf16.msra.mxu0 %v5611_v1  ;;  %v5641_v0 = vld [vmem:[#allocation12 + $0xaa0] ss:$16 sps:$4 sm:$0xff]   ;;  %v5646_v1 = vld [vmem:[#allocation12 + $0x884] ss:$16 sps:$4 sm:$0xff]  }
 0x2dd   :  { %4106 = vmatprep.subr.bf16.mxu1 %v5616_v2  ;;  %4149 = vmatprep.subr.bf16.mxu0 %v5619_v3  ;;  %v5649_v2 = vld [vmem:[#allocation12 + $0xa84] ss:$16 sps:$4 sm:$0xff]   ;;  %v5644_v3 = vld [vmem:[#allocation12 + $0x880] ss:$16 sps:$4 sm:$0xff]  }
 0x2e0   :  { %4107 = vmatpush2.bf16.msra.mxu1 %v5614_v6  ;;  %4150 = vmatpush2.bf16.msra.mxu0 %v5617_v11  ;;  %v5655_v6 = vld [vmem:[#allocation12 + $0xa64] ss:$16 sps:$4 sm:$0xff]  }
 0x2e1   :  { %4108 = vmatprep.subr.bf16.mxu1 %v5622_v14  ;;  %4151 = vmatprep.subr.bf16.mxu0 %v5625_v16  ;;  %v5658_v11 = vld [vmem:[#allocation12 + $0x844] ss:$16 sps:$4 sm:$0xff]  }
 0x2e2   :  { %v5661_v14 = vld [vmem:[#allocation12 + $0xa44] ss:$16 sps:$4 sm:$0xff]  }
 0x2e3   :  { %v5664_v16 = vld [vmem:[#allocation12 + $0x824] ss:$16 sps:$4 sm:$0xff]  }
 0x2e4   :  { %4109 = vmatpush2.bf16.msra.mxu1 %v5620_v18  ;;  %4152 = vmatpush2.bf16.msra.mxu0 %v5623_v26  ;;  %v5673_v18 = vld [vmem:[#allocation12 + $0xa04] ss:$16 sps:$4 sm:$0xff]  }
 0x2e5   :  { %4164 = vmatprep.subr.bf16.mxu1 %v5628_v27  ;;  %4207 = vmatprep.subr.bf16.mxu0 %v5631_v7  ;;  %v5676_v26 = vld [vmem:[#allocation12 + $0x9e4] ss:$16 sps:$4 sm:$0xff]  }
 0x2e6   :  { %v5679_v27 = vld [vmem:[#allocation12 + $0xbe4] ss:$16 sps:$4 sm:$0xff]  }
 0x2e7   :  { %4111 = vmatmul.mubr.bf16.vlgmr.msra.gmra.mxu1 %v6655_v33  ;;  %4154 = vmatmul.mubr.bf16.vlgmr.msra.gmra.mxu0 %v6657_v50  ;;  %v5682_v7 = vld [vmem:[#allocation12 + $0x9c4] ss:$16 sps:$4 sm:$0xff]  }
 0x2e8   :  { %4165 = vmatpush1.bf16.msra.mxu1 %v5626_v13  ;;  %4196 = vmatprep.mubr.bf16.mxu1 %v6659_v61  ;;  %v5691_v13 = vld [vmem:[#allocation12 + $0xba4] ss:$16 sps:$4 sm:$0xff]  }
 0x2e9   :  { %4208 = vmatpush1.bf16.msra.mxu0 %v5629_v60  ;;  %4239 = vmatprep.mubr.bf16.mxu0 %v6662_v54  ;;  %v5689_v60 = vld [vmem:[#allocation12 + $0xba0] ss:$16 sps:$4 sm:$0xff]  }
 0x2ea   :  { %4166 = vmatprep.subr.bf16.mxu1 %v5634_v52  ;;  %4209 = vmatprep.subr.bf16.mxu0 %v5637_v53  ;;  %v5697_v52 = vld [vmem:[#allocation12 + $0xb84] ss:$16 sps:$4 sm:$0xff]   ;;  %v5692_v53 = vld [vmem:[#allocation12 + $0x980] ss:$16 sps:$4 sm:$0xff]  }
 0x2ec   :  { %4167 = vmatpush1.bf16.msra.mxu1 %v5632_v55  ;;  %v5695_v55 = vld [vmem:[#allocation12 + $0xb80] ss:$16 sps:$4 sm:$0xff]  }
 0x2ed   :  { %4210 = vmatpush1.bf16.msra.mxu0 %v5635_v56  ;;  %4168 = vmatprep.subr.bf16.mxu1 %v5640_v57  ;;  %v5700_v56 = vld [vmem:[#allocation12 + $0x964] ss:$16 sps:$4 sm:$0xff]  }
 0x2ee   :  { %4211 = vmatprep.subr.bf16.mxu0 %v5643_v58  ;;  %v5703_v57 = vld [vmem:[#allocation12 + $0xb64] ss:$16 sps:$4 sm:$0xff]   ;;  %v5698_v58 = vld [vmem:[#allocation12 + $0x960] ss:$16 sps:$4 sm:$0xff]  }
 0x2f0   :  { %4169 = vmatpush1.bf16.msra.mxu1 %v5638_v59  ;;  %v5701_v59 = vld [vmem:[#allocation12 + $0xb60] ss:$16 sps:$4 sm:$0xff]  }
 0x2f1   :  { %4212 = vmatpush1.bf16.msra.mxu0 %v5641_v0  ;;  %4170 = vmatprep.subr.bf16.mxu1 %v5646_v1  ;;  %v5706_v0 = vld [vmem:[#allocation12 + $0x944] ss:$16 sps:$4 sm:$0xff]  }
 0x2f2   :  { %4213 = vmatprep.subr.bf16.mxu0 %v5649_v2  ;;  %v5709_v1 = vld [vmem:[#allocation12 + $0xb44] ss:$16 sps:$4 sm:$0xff]   ;;  %v5704_v2 = vld [vmem:[#allocation12 + $0x940] ss:$16 sps:$4 sm:$0xff]  }
 0x2f4   :  { %4171 = vmatpush1.bf16.msra.mxu1 %v5644_v3  ;;  %v5707_v3 = vld [vmem:[#allocation12 + $0xb40] ss:$16 sps:$4 sm:$0xff]  }
 0x2f5   :  { %4214 = vmatpush1.bf16.msra.mxu0 %v5647_v40  ;;  %4172 = vmatprep.subr.bf16.mxu1 %v5652_v41  ;;  %v5712_v40 = vld [vmem:[#allocation12 + $0x924] ss:$16 sps:$4 sm:$0xff]  }
 0x2f6   :  { %4215 = vmatprep.subr.bf16.mxu0 %v5655_v6  ;;  %v5715_v41 = vld [vmem:[#allocation12 + $0xb24] ss:$16 sps:$4 sm:$0xff]   ;;  %v804_v6 = vpop.f32.mrf.mxu1 }
 0x2f8   :  { %4173 = vmatpush1.bf16.msra.mxu1 %v5650_v9  ;;  %v5710_v9 = vld [vmem:[#allocation12 + $0x920] ss:$16 sps:$4 sm:$0xff]  }
 0x2f9   :  { %4216 = vmatpush1.bf16.msra.mxu0 %v5653_v10  ;;  %4174 = vmatprep.subr.bf16.mxu1 %v5658_v11  ;;  %v847_v10 = vpop.f32.mrf.mxu0  ;;  %v5713_v11 = vld [vmem:[#allocation12 + $0xb20] ss:$16 sps:$4 sm:$0xff]  }
 0x2fa   :  { %4217 = vmatprep.subr.bf16.mxu0 %v5661_v14  ;;  %v5718_v14 = vld [vmem:[#allocation12 + $0x904] ss:$16 sps:$4 sm:$0xff]  }
 0x2fc   :  { %4175 = vmatpush1.bf16.msra.mxu1 %v5656_v15  ;;  %v5721_v15 = vld [vmem:[#allocation12 + $0xb04] ss:$16 sps:$4 sm:$0xff]  }
 0x2fd   :  { %4218 = vmatpush1.bf16.msra.mxu0 %v5659_v35  ;;  %4176 = vmatprep.subr.bf16.mxu1 %v5664_v16  ;;  %v805_v35 = vadd.f32 %v804_v6, %v6554_v42  ;;  %v848_v16 = vadd.f32 %v847_v10, %v6557_v43  ;;  %v5761_v6 = vld [vmem:[#allocation12 + $0xe20] ss:$16 sps:$4 sm:$0xff]   ;;  %v5769_v10 = vld [vmem:[#allocation12 + $0xe04] ss:$16 sps:$4 sm:$0xff]  }
 0x2fe   :  { %4219 = vmatprep.subr.bf16.mxu0 %v5667_v36  ;;  %v5716_v36 = vld [vmem:[#allocation12 + $0x900] ss:$16 sps:$4 sm:$0xff]  }
 0x300   :  { %4177 = vmatpush1.bf16.msra.mxu1 %v5662_v48  ;;  %v801_v48 = vadd.f32 %v6627_v38, %v6554_v42  ;;  %v5730_v42 = vld [vmem:[#allocation12 + $0xcc4] ss:$16 sps:$4 sm:$0xff]  }
 0x301   :  { %4220 = vmatpush1.bf16.msra.mxu0 %v5665_v25  ;;  %4178 = vmatprep.subr.bf16.mxu1 %v5670_v17  ;;  %v5719_v25 = vld [vmem:[#allocation12 + $0xb00] ss:$16 sps:$4 sm:$0xff]   ;;  %v5724_v17 = vld [vmem:[#allocation12 + $0xce4] ss:$16 sps:$4 sm:$0xff]  }
 0x302   :  { %4221 = vmatprep.subr.bf16.mxu0 %v5673_v18  ;;  %v844_v18 = vadd.f32 %v6629_v39, %v6557_v43  ;;  %v5728_v43 = vld [vmem:[#allocation12 + $0xcc0] ss:$16 sps:$4 sm:$0xff]  }
 0x303   :  { %v5731_v39 = vld [vmem:[#allocation12 + $0xec0] ss:$16 sps:$4 sm:$0xff]  }
 0x304   :  { %4179 = vmatpush1.bf16.msra.mxu1 %v5668_v21  ;;  %v5727_v21 = vld [vmem:[#allocation12 + $0xee4] ss:$16 sps:$4 sm:$0xff]  }
 0x305   :  { %4222 = vmatpush1.bf16.msra.mxu0 %v5671_v22  ;;  %4180 = vmatprep.subr.bf16.mxu1 %v5676_v26  ;;  %v879_v22 = vmax.f32 %v805_v35, 0.0  ;;  %v881_v26 = vmax.f32 %v848_v16, 0.0  ;;  %v5775_v35 = vld [vmem:[#allocation12 + $0xfe4] ss:$16 sps:$4 sm:$0xff]   ;;  %v5770_v16 = vld [vmem:[#allocation12 + $0xde0] ss:$16 sps:$4 sm:$0xff]  }
 0x306   :  { %4223 = vmatprep.subr.bf16.mxu0 %v5679_v27  ;;  %v5722_v27 = vld [vmem:[#allocation12 + $0xce0] ss:$16 sps:$4 sm:$0xff]  }
 0x308   :  { %4181 = vmatpush2.bf16.msra.mxu1 %v5674_v37  ;;  %v863_v37 = vmax.f32 %v801_v48, 0.0  ;;  %v5778_v48 = vld [vmem:[#allocation12 + $0xdc4] ss:$16 sps:$4 sm:$0xff]  }
 0x309   :  { %4224 = vmatpush2.bf16.msra.mxu0 %v5677_v28  ;;  %4182 = vmatprep.subr.bf16.mxu1 %v5682_v7  ;;  %v5725_v28 = vld [vmem:[#allocation12 + $0xee0] ss:$16 sps:$4 sm:$0xff]   ;;  %v865_v7 = vmax.f32 %v844_v18, 0.0 }
 0x30a   :  { %4225 = vmatprep.subr.bf16.mxu0 %v5685_v31  ;;  %v6673_v38 = vpack.c.bf16 %v879_v22, %v863_v37  ;;  %v5733_v31 = vld [vmem:[#allocation12 + $0xec4] ss:$16 sps:$4 sm:$0xff]   ;;  %v5779_v18 = vld [vmem:[#allocation12 + $0xfc0] ss:$16 sps:$4 sm:$0xff]  }
 0x30b   :  { %v5787_v22 = vld [vmem:[#allocation12 + $0xfa4] ss:$16 sps:$4 sm:$0xff]  }
 0x30c   :  { %4183 = vmatpush2.bf16.msra.mxu1 %v5680_v12  ;;  %v6676_v12 = vpack.c.bf16 %v881_v26, %v865_v7  ;;  %v5782_v26 = vld [vmem:[#allocation12 + $0xda0] ss:$16 sps:$4 sm:$0xff]   ;;  %v5790_v37 = vld [vmem:[#allocation12 + $0xd84] ss:$16 sps:$4 sm:$0xff]  }
 0x30d   :  { %4226 = vmatpush2.bf16.msra.mxu0 %v5683_v32  ;;  %4184 = vmatprep.subr.bf16.mxu1 %v5688_v8  ;;  %v5736_v32 = vld [vmem:[#allocation12 + $0xca4] ss:$16 sps:$4 sm:$0xff]   ;;  %v5788_v7 = vld [vmem:[#allocation12 + $0xd80] ss:$16 sps:$4 sm:$0xff]  }
 0x30e   :  { %4227 = vmatprep.subr.bf16.mxu0 %v5691_v13  ;;  %v5739_v8 = vld [vmem:[#allocation12 + $0xea4] ss:$16 sps:$4 sm:$0xff]   ;;  %v5734_v13 = vld [vmem:[#allocation12 + $0xca0] ss:$16 sps:$4 sm:$0xff]  }
 0x310   :  { %4185 = vmatpush2.bf16.msra.mxu1 %v5686_v49  ;;  %v5737_v49 = vld [vmem:[#allocation12 + $0xea0] ss:$16 sps:$4 sm:$0xff]  }
 0x311   :  { %4228 = vmatpush2.bf16.msra.mxu0 %v5689_v60  ;;  %4186 = vmatprep.subr.bf16.mxu1 %v5694_v51  ;;  %v5742_v60 = vld [vmem:[#allocation12 + $0xc84] ss:$16 sps:$4 sm:$0xff]  }
 0x312   :  { %4229 = vmatprep.subr.bf16.mxu0 %v5697_v52  ;;  %v5745_v51 = vld [vmem:[#allocation12 + $0xe84] ss:$16 sps:$4 sm:$0xff]   ;;  %v5740_v52 = vld [vmem:[#allocation12 + $0xc80] ss:$16 sps:$4 sm:$0xff]  }
 0x314   :  { %4187 = vmatpush2.bf16.msra.mxu1 %v5692_v53  ;;  %v5743_v53 = vld [vmem:[#allocation12 + $0xe80] ss:$16 sps:$4 sm:$0xff]  }
 0x315   :  { %4230 = vmatpush2.bf16.msra.mxu0 %v5695_v55  ;;  %4188 = vmatprep.subr.bf16.mxu1 %v5700_v56  ;;  %v5748_v55 = vld [vmem:[#allocation12 + $0xc64] ss:$16 sps:$4 sm:$0xff]  }
 0x316   :  { %4231 = vmatprep.subr.bf16.mxu0 %v5703_v57  ;;  %v5751_v56 = vld [vmem:[#allocation12 + $0xe64] ss:$16 sps:$4 sm:$0xff]   ;;  %v5746_v57 = vld [vmem:[#allocation12 + $0xc60] ss:$16 sps:$4 sm:$0xff]  }
 0x318   :  { %4189 = vmatpush2.bf16.msra.mxu1 %v5698_v58  ;;  %v5749_v58 = vld [vmem:[#allocation12 + $0xe60] ss:$16 sps:$4 sm:$0xff]  }
 0x319   :  { %4232 = vmatpush2.bf16.msra.mxu0 %v5701_v59  ;;  %4190 = vmatprep.subr.bf16.mxu1 %v5706_v0  ;;  %v5754_v59 = vld [vmem:[#allocation12 + $0xc44] ss:$16 sps:$4 sm:$0xff]  }
 0x31a   :  { %4233 = vmatprep.subr.bf16.mxu0 %v5709_v1  ;;  %v5757_v0 = vld [vmem:[#allocation12 + $0xe44] ss:$16 sps:$4 sm:$0xff]   ;;  %v5752_v1 = vld [vmem:[#allocation12 + $0xc40] ss:$16 sps:$4 sm:$0xff]  }
 0x31c   :  { %4191 = vmatpush2.bf16.msra.mxu1 %v5704_v2  ;;  %v5755_v2 = vld [vmem:[#allocation12 + $0xe40] ss:$16 sps:$4 sm:$0xff]  }
 0x31d   :  { %4234 = vmatpush2.bf16.msra.mxu0 %v5707_v3  ;;  %4192 = vmatprep.subr.bf16.mxu1 %v5712_v40  ;;  %v5760_v3 = vld [vmem:[#allocation12 + $0xc24] ss:$16 sps:$4 sm:$0xff]  }
 0x31e   :  { %4235 = vmatprep.subr.bf16.mxu0 %v5715_v41  ;;  %v5763_v40 = vld [vmem:[#allocation12 + $0xe24] ss:$16 sps:$4 sm:$0xff]   ;;  %v5758_v41 = vld [vmem:[#allocation12 + $0xc20] ss:$16 sps:$4 sm:$0xff]  }
 0x320   :  { %4193 = vmatpush2.bf16.msra.mxu1 %v5710_v9  ;;  %v5766_v9 = vld [vmem:[#allocation12 + $0xc04] ss:$16 sps:$4 sm:$0xff]  }
 0x321   :  { %4236 = vmatpush2.bf16.msra.mxu0 %v5713_v11  ;;  %4194 = vmatprep.subr.bf16.mxu1 %v5718_v14  ;;  %v5764_v11 = vld [vmem:[#allocation12 + $0xc00] ss:$16 sps:$4 sm:$0xff]  }
 0x322   :  { %4237 = vmatprep.subr.bf16.mxu0 %v5721_v15  ;;  %v5767_v14 = vld [vmem:[#allocation12 + $0xe00] ss:$16 sps:$4 sm:$0xff]   ;;  %v5772_v15 = vld [vmem:[#allocation12 + $0xde4] ss:$16 sps:$4 sm:$0xff]  }
 0x324   :  { %4195 = vmatpush2.bf16.msra.mxu1 %v5716_v36  ;;  %v5773_v36 = vld [vmem:[#allocation12 + $0xfe0] ss:$16 sps:$4 sm:$0xff]  }
 0x325   :  { %4238 = vmatpush2.bf16.msra.mxu0 %v5719_v25  ;;  %4250 = vmatprep.subr.bf16.mxu1 %v5724_v17  ;;  %v5781_v25 = vld [vmem:[#allocation12 + $0xfc4] ss:$16 sps:$4 sm:$0xff]   ;;  %v5776_v17 = vld [vmem:[#allocation12 + $0xdc0] ss:$16 sps:$4 sm:$0xff]  }
 0x326   :  { %4293 = vmatprep.subr.bf16.mxu0 %v5727_v21  ;;  %v5784_v21 = vld [vmem:[#allocation12 + $0xda4] ss:$16 sps:$4 sm:$0xff]  }
 0x327   :  { %4197 = vmatmul.mubr.bf16.vlgmr.msra.gmra.mxu1 %v6621_v29 }
 0x328   :  { %4240 = vmatmul.mubr.bf16.vlgmr.msra.gmra.mxu0 %v6623_v30  ;;  %4251 = vmatpush1.bf16.msra.mxu1 %v5722_v27  ;;  %v5785_v27 = vld [vmem:[#allocation12 + $0xfa0] ss:$16 sps:$4 sm:$0xff]  }
 0x329   :  { %4282 = vmatprep.mubr.bf16.mxu1 %v6673_v38  ;;  %4294 = vmatpush1.bf16.msra.mxu0 %v5725_v28  ;;  %v5793_v28 = vld [vmem:[#allocation12 + $0xf84] ss:$16 sps:$4 sm:$0xff]  }
 0x32a   :  { %4325 = vmatprep.mubr.bf16.mxu0 %v6676_v12  ;;  %4252 = vmatprep.subr.bf16.mxu1 %v5730_v42  ;;  %v5791_v42 = vld [vmem:[#allocation12 + $0xf80] ss:$16 sps:$4 sm:$0xff]  }
 0x32b   :  { %4295 = vmatprep.subr.bf16.mxu0 %v5733_v31  ;;  %v5796_v31 = vld [vmem:[#allocation12 + $0xd64] ss:$16 sps:$4 sm:$0xff]  }
 0x32c   :  { %4253 = vmatpush1.bf16.msra.mxu1 %v5728_v43  ;;  %v5799_v43 = vld [vmem:[#allocation12 + $0xf64] ss:$16 sps:$4 sm:$0xff]  }
 0x32d   :  { %4296 = vmatpush1.bf16.msra.mxu0 %v5731_v39  ;;  %4254 = vmatprep.subr.bf16.mxu1 %v5736_v32  ;;  %v5794_v39 = vld [vmem:[#allocation12 + $0xd60] ss:$16 sps:$4 sm:$0xff]  }
 0x32e   :  { %4297 = vmatprep.subr.bf16.mxu0 %v5739_v8  ;;  %v5797_v32 = vld [vmem:[#allocation12 + $0xf60] ss:$16 sps:$4 sm:$0xff]   ;;  %v5802_v8 = vld [vmem:[#allocation12 + $0xd44] ss:$16 sps:$4 sm:$0xff]  }
 0x330   :  { %4255 = vmatpush1.bf16.msra.mxu1 %v5734_v13  ;;  %v5805_v13 = vld [vmem:[#allocation12 + $0xf44] ss:$16 sps:$4 sm:$0xff]  }
 0x331   :  { %4298 = vmatpush1.bf16.msra.mxu0 %v5737_v49  ;;  %4256 = vmatprep.subr.bf16.mxu1 %v5742_v60  ;;  %v5800_v49 = vld [vmem:[#allocation12 + $0xd40] ss:$16 sps:$4 sm:$0xff]  }
 0x332   :  { %4299 = vmatprep.subr.bf16.mxu0 %v5745_v51  ;;  %v5803_v60 = vld [vmem:[#allocation12 + $0xf40] ss:$16 sps:$4 sm:$0xff]   ;;  %v5808_v51 = vld [vmem:[#allocation12 + $0xd24] ss:$16 sps:$4 sm:$0xff]  }
 0x334   :  { %4257 = vmatpush1.bf16.msra.mxu1 %v5740_v52  ;;  %v5811_v52 = vld [vmem:[#allocation12 + $0xf24] ss:$16 sps:$4 sm:$0xff]  }
 0x335   :  { %4300 = vmatpush1.bf16.msra.mxu0 %v5743_v53  ;;  %4258 = vmatprep.subr.bf16.mxu1 %v5748_v55  ;;  %v5806_v53 = vld [vmem:[#allocation12 + $0xd20] ss:$16 sps:$4 sm:$0xff]  }
 0x336   :  { %4301 = vmatprep.subr.bf16.mxu0 %v5751_v56  ;;  %v5809_v55 = vld [vmem:[#allocation12 + $0xf20] ss:$16 sps:$4 sm:$0xff]   ;;  %v5814_v56 = vld [vmem:[#allocation12 + $0xd04] ss:$16 sps:$4 sm:$0xff]  }
 0x338   :  { %4259 = vmatpush1.bf16.msra.mxu1 %v5746_v57  ;;  %v5817_v57 = vld [vmem:[#allocation12 + $0xf04] ss:$16 sps:$4 sm:$0xff]  }
 0x339   :  { %4302 = vmatpush1.bf16.msra.mxu0 %v5749_v58  ;;  %4260 = vmatprep.subr.bf16.mxu1 %v5754_v59  ;;  %v5812_v58 = vld [vmem:[#allocation12 + $0xd00] ss:$16 sps:$4 sm:$0xff]  }
 0x33a   :  { %4303 = vmatprep.subr.bf16.mxu0 %v5757_v0  ;;  %v5815_v59 = vld [vmem:[#allocation12 + $0xf00] ss:$16 sps:$4 sm:$0xff]   ;;  %v5820_v0 = vld [vmem:[#allocation12 + $0xec] ss:$16 sps:$4 sm:$0xff]  }
 0x33c   :  { %4261 = vmatpush1.bf16.msra.mxu1 %v5752_v1  ;;  %v5823_v1 = vld [vmem:[#allocation12 + $0x2ec] ss:$16 sps:$4 sm:$0xff]  }
 0x33d   :  { %4304 = vmatpush1.bf16.msra.mxu0 %v5755_v2  ;;  %4262 = vmatprep.subr.bf16.mxu1 %v5760_v3  ;;  %v5818_v2 = vld [vmem:[#allocation12 + $0xe8] ss:$16 sps:$4 sm:$0xff]  }
 0x33e   :  { %4305 = vmatprep.subr.bf16.mxu0 %v5763_v40  ;;  %v5821_v3 = vld [vmem:[#allocation12 + $0x2e8] ss:$16 sps:$4 sm:$0xff]   ;;  %v5826_v40 = vld [vmem:[#allocation12 + $0xcc] ss:$16 sps:$4 sm:$0xff]  }
 0x340   :  { %4263 = vmatpush1.bf16.msra.mxu1 %v5758_v41  ;;  %v5829_v41 = vld [vmem:[#allocation12 + $0x2cc] ss:$16 sps:$4 sm:$0xff]  }
 0x341   :  { %4306 = vmatpush1.bf16.msra.mxu0 %v5761_v6  ;;  %4264 = vmatprep.subr.bf16.mxu1 %v5766_v9  ;;  %v5824_v6 = vld [vmem:[#allocation12 + $0xc8] ss:$16 sps:$4 sm:$0xff]  }
 0x342   :  { %4307 = vmatprep.subr.bf16.mxu0 %v5769_v10  ;;  %v5827_v9 = vld [vmem:[#allocation12 + $0x2c8] ss:$16 sps:$4 sm:$0xff]   ;;  %v5832_v10 = vld [vmem:[#allocation12 + $0xac] ss:$16 sps:$4 sm:$0xff]  }
 0x344   :  { %4265 = vmatpush1.bf16.msra.mxu1 %v5764_v11  ;;  %v5835_v11 = vld [vmem:[#allocation12 + $0x2ac] ss:$16 sps:$4 sm:$0xff]  }
 0x345   :  { %4308 = vmatpush1.bf16.msra.mxu0 %v5767_v14  ;;  %4266 = vmatprep.subr.bf16.mxu1 %v5772_v15  ;;  %v5830_v14 = vld [vmem:[#allocation12 + $0xa8] ss:$16 sps:$4 sm:$0xff]  }
 0x346   :  { %4309 = vmatprep.subr.bf16.mxu0 %v5775_v35  ;;  %v5833_v15 = vld [vmem:[#allocation12 + $0x2a8] ss:$16 sps:$4 sm:$0xff]   ;;  %v5838_v35 = vld [vmem:[#allocation12 + $0x8c] ss:$16 sps:$4 sm:$0xff]  }
 0x348   :  { %4267 = vmatpush2.bf16.msra.mxu1 %v5770_v16  ;;  %v5841_v16 = vld [vmem:[#allocation12 + $0x28c] ss:$16 sps:$4 sm:$0xff]  }
 0x349   :  { %4310 = vmatpush2.bf16.msra.mxu0 %v5773_v36  ;;  %4268 = vmatprep.subr.bf16.mxu1 %v5778_v48  ;;  %v5836_v36 = vld [vmem:[#allocation12 + $0x88] ss:$16 sps:$4 sm:$0xff]   ;;  %v5844_v48 = vld [vmem:[#allocation12 + $0x6c] ss:$16 sps:$4 sm:$0xff]  }
 0x34a   :  { %4311 = vmatprep.subr.bf16.mxu0 %v5781_v25  ;;  %v5847_v25 = vld [vmem:[#allocation12 + $0x26c] ss:$16 sps:$4 sm:$0xff]  }
 0x34c   :  { %4269 = vmatpush2.bf16.msra.mxu1 %v5776_v17  ;;  %v5845_v17 = vld [vmem:[#allocation12 + $0x268] ss:$16 sps:$4 sm:$0xff]  }
 0x34d   :  { %4312 = vmatpush2.bf16.msra.mxu0 %v5779_v18  ;;  %4270 = vmatprep.subr.bf16.mxu1 %v5784_v21  ;;  %v5850_v18 = vld [vmem:[#allocation12 + $0x4c] ss:$16 sps:$4 sm:$0xff]  }
 0x34e   :  { %4313 = vmatprep.subr.bf16.mxu0 %v5787_v22  ;;  %v5853_v21 = vld [vmem:[#allocation12 + $0x24c] ss:$16 sps:$4 sm:$0xff]   ;;  %v5848_v22 = vld [vmem:[#allocation12 + $0x48] ss:$16 sps:$4 sm:$0xff]  }
 0x350   :  { %4271 = vmatpush2.bf16.msra.mxu1 %v5782_v26  ;;  %v5851_v26 = vld [vmem:[#allocation12 + $0x248] ss:$16 sps:$4 sm:$0xff]  }
 0x351   :  { %4314 = vmatpush2.bf16.msra.mxu0 %v5785_v27  ;;  %4272 = vmatprep.subr.bf16.mxu1 %v5790_v37  ;;  %v5856_v27 = vld [vmem:[#allocation12 + $0x2c] ss:$16 sps:$4 sm:$0xff]  }
 0x352   :  { %4315 = vmatprep.subr.bf16.mxu0 %v5793_v28  ;;  %v5859_v37 = vld [vmem:[#allocation12 + $0x22c] ss:$16 sps:$4 sm:$0xff]   ;;  %v5854_v28 = vld [vmem:[#allocation12 + $0x28] ss:$16 sps:$4 sm:$0xff]  }
 0x354   :  { %4273 = vmatpush2.bf16.msra.mxu1 %v5788_v7  ;;  %v5857_v7 = vld [vmem:[#allocation12 + $0x228] ss:$16 sps:$4 sm:$0xff]  }
 0x355   :  { %4316 = vmatpush2.bf16.msra.mxu0 %v5791_v42  ;;  %4274 = vmatprep.subr.bf16.mxu1 %v5796_v31  ;;  %v5862_v42 = vld [vmem:[#allocation12 + $0xc] ss:$16 sps:$4 sm:$0xff]  }
 0x356   :  { %4317 = vmatprep.subr.bf16.mxu0 %v5799_v43  ;;  %v5865_v31 = vld [vmem:[#allocation12 + $0x20c] ss:$16 sps:$4 sm:$0xff]   ;;  %v5860_v43 = vld [vmem:[#allocation12 + $0x8] ss:$16 sps:$4 sm:$0xff]  }
 0x358   :  { %4275 = vmatpush2.bf16.msra.mxu1 %v5794_v39  ;;  %v5863_v39 = vld [vmem:[#allocation12 + $0x208] ss:$16 sps:$4 sm:$0xff]  }
 0x359   :  { %4318 = vmatpush2.bf16.msra.mxu0 %v5797_v32  ;;  %4276 = vmatprep.subr.bf16.mxu1 %v5802_v8  ;;  %v5868_v32 = vld [vmem:[#allocation12 + $0x1ec] ss:$16 sps:$4 sm:$0xff]  }
 0x35a   :  { %4319 = vmatprep.subr.bf16.mxu0 %v5805_v13  ;;  %v5871_v8 = vld [vmem:[#allocation12 + $0x3ec] ss:$16 sps:$4 sm:$0xff]   ;;  %v5866_v13 = vld [vmem:[#allocation12 + $0x1e8] ss:$16 sps:$4 sm:$0xff]  }
 0x35c   :  { %4277 = vmatpush2.bf16.msra.mxu1 %v5800_v49  ;;  %v5869_v49 = vld [vmem:[#allocation12 + $0x3e8] ss:$16 sps:$4 sm:$0xff]  }
 0x35d   :  { %4320 = vmatpush2.bf16.msra.mxu0 %v5803_v60  ;;  %4278 = vmatprep.subr.bf16.mxu1 %v5808_v51  ;;  %v5874_v60 = vld [vmem:[#allocation12 + $0x1cc] ss:$16 sps:$4 sm:$0xff]  }
 0x35e   :  { %4321 = vmatprep.subr.bf16.mxu0 %v5811_v52  ;;  %v5877_v51 = vld [vmem:[#allocation12 + $0x3cc] ss:$16 sps:$4 sm:$0xff]   ;;  %v5872_v52 = vld [vmem:[#allocation12 + $0x1c8] ss:$16 sps:$4 sm:$0xff]  }
 0x360   :  { %4279 = vmatpush2.bf16.msra.mxu1 %v5806_v53  ;;  %v5875_v53 = vld [vmem:[#allocation12 + $0x3c8] ss:$16 sps:$4 sm:$0xff]  }
 0x361   :  { %4322 = vmatpush2.bf16.msra.mxu0 %v5809_v55  ;;  %4280 = vmatprep.subr.bf16.mxu1 %v5814_v56  ;;  %v5880_v55 = vld [vmem:[#allocation12 + $0x1ac] ss:$16 sps:$4 sm:$0xff]  }
 0x362   :  { %4323 = vmatprep.subr.bf16.mxu0 %v5817_v57  ;;  %v5883_v56 = vld [vmem:[#allocation12 + $0x3ac] ss:$16 sps:$4 sm:$0xff]   ;;  %v5878_v57 = vld [vmem:[#allocation12 + $0x1a8] ss:$16 sps:$4 sm:$0xff]  }
 0x364   :  { %4281 = vmatpush2.bf16.msra.mxu1 %v5812_v58  ;;  %v5881_v58 = vld [vmem:[#allocation12 + $0x3a8] ss:$16 sps:$4 sm:$0xff]  }
 0x365   :  { %4324 = vmatpush2.bf16.msra.mxu0 %v5815_v59  ;;  %4336 = vmatprep.subr.bf16.mxu1 %v5820_v0  ;;  %v5886_v59 = vld [vmem:[#allocation12 + $0x18c] ss:$16 sps:$4 sm:$0xff]  }
 0x366   :  { %4379 = vmatprep.subr.bf16.mxu0 %v5823_v1  ;;  %v5889_v0 = vld [vmem:[#allocation12 + $0x38c] ss:$16 sps:$4 sm:$0xff]   ;;  %v5884_v1 = vld [vmem:[#allocation12 + $0x188] ss:$16 sps:$4 sm:$0xff]  }
 0x367   :  { %4283 = vmatmul.mubr.bf16.vlgmr.msra.gmra.mxu1 %v6633_v4 }
 0x368   :  { %4326 = vmatmul.mubr.bf16.vlgmr.msra.gmra.mxu0 %v6635_v5  ;;  %4337 = vmatpush1.bf16.msra.mxu1 %v5818_v2  ;;  %v5887_v2 = vld [vmem:[#allocation12 + $0x388] ss:$16 sps:$4 sm:$0xff]  }
 0x369   :  { %4368 = vmatprep.mubr.bf16.mxu1 %v6587_v19  ;;  %4380 = vmatpush1.bf16.msra.mxu0 %v5821_v3  ;;  %v5839_v19 = vld [vmem:[#allocation12 + $0x288] ss:$16 sps:$4 sm:$0xff]   ;;  %v5892_v3 = vld [vmem:[#allocation12 + $0x16c] ss:$16 sps:$4 sm:$0xff]  }
 0x36a   :  { %4411 = vmatprep.mubr.bf16.mxu0 %v6589_v20  ;;  %4338 = vmatprep.subr.bf16.mxu1 %v5826_v40  ;;  %v5842_v20 = vld [vmem:[#allocation12 + $0x68] ss:$16 sps:$4 sm:$0xff]   ;;  %v5895_v40 = vld [vmem:[#allocation12 + $0x36c] ss:$16 sps:$4 sm:$0xff]  }
 0x36b   :  { %4381 = vmatprep.subr.bf16.mxu0 %v5829_v41  ;;  %v5890_v41 = vld [vmem:[#allocation12 + $0x168] ss:$16 sps:$4 sm:$0xff]  }
 0x36c   :  { %4339 = vmatpush1.bf16.msra.mxu1 %v5824_v6  ;;  %v5893_v6 = vld [vmem:[#allocation12 + $0x368] ss:$16 sps:$4 sm:$0xff]  }
 0x36d   :  { %4382 = vmatpush1.bf16.msra.mxu0 %v5827_v9  ;;  %4340 = vmatprep.subr.bf16.mxu1 %v5832_v10  ;;  %v5898_v9 = vld [vmem:[#allocation12 + $0x14c] ss:$16 sps:$4 sm:$0xff]  }
 0x36e   :  { %4383 = vmatprep.subr.bf16.mxu0 %v5835_v11  ;;  %v5901_v10 = vld [vmem:[#allocation12 + $0x34c] ss:$16 sps:$4 sm:$0xff]   ;;  %v5896_v11 = vld [vmem:[#allocation12 + $0x148] ss:$16 sps:$4 sm:$0xff]  }
 0x370   :  { %4341 = vmatpush1.bf16.msra.mxu1 %v5830_v14  ;;  %v5899_v14 = vld [vmem:[#allocation12 + $0x348] ss:$16 sps:$4 sm:$0xff]  }
 0x371   :  { %4384 = vmatpush1.bf16.msra.mxu0 %v5833_v15  ;;  %4342 = vmatprep.subr.bf16.mxu1 %v5838_v35  ;;  %v5904_v15 = vld [vmem:[#allocation12 + $0x12c] ss:$16 sps:$4 sm:$0xff]  }
 0x372   :  { %4385 = vmatprep.subr.bf16.mxu0 %v5841_v16  ;;  %v5907_v35 = vld [vmem:[#allocation12 + $0x32c] ss:$16 sps:$4 sm:$0xff]   ;;  %v5902_v16 = vld [vmem:[#allocation12 + $0x128] ss:$16 sps:$4 sm:$0xff]  }
 0x374   :  { %4343 = vmatpush1.bf16.msra.mxu1 %v5836_v36  ;;  %v5905_v36 = vld [vmem:[#allocation12 + $0x328] ss:$16 sps:$4 sm:$0xff]  }
 0x375   :  { %4386 = vmatpush1.bf16.msra.mxu0 %v5839_v19  ;;  %4344 = vmatprep.subr.bf16.mxu1 %v5844_v48  ;;  %v5910_v19 = vld [vmem:[#allocation12 + $0x10c] ss:$16 sps:$4 sm:$0xff]  }
 0x376   :  { %4387 = vmatprep.subr.bf16.mxu0 %v5847_v25  ;;  %v5913_v48 = vld [vmem:[#allocation12 + $0x30c] ss:$16 sps:$4 sm:$0xff]   ;;  %v5908_v25 = vld [vmem:[#allocation12 + $0x108] ss:$16 sps:$4 sm:$0xff]  }
 0x378   :  { %4345 = vmatpush1.bf16.msra.mxu1 %v5842_v20  ;;  %v5911_v20 = vld [vmem:[#allocation12 + $0x308] ss:$16 sps:$4 sm:$0xff]  }
 0x379   :  { %4388 = vmatpush1.bf16.msra.mxu0 %v5845_v17  ;;  %4346 = vmatprep.subr.bf16.mxu1 %v5850_v18  ;;  %v5916_v17 = vld [vmem:[#allocation12 + $0x4ec] ss:$16 sps:$4 sm:$0xff]  }
 0x37a   :  { %4389 = vmatprep.subr.bf16.mxu0 %v5853_v21  ;;  %v5919_v18 = vld [vmem:[#allocation12 + $0x6ec] ss:$16 sps:$4 sm:$0xff]   ;;  %v5914_v21 = vld [vmem:[#allocation12 + $0x4e8] ss:$16 sps:$4 sm:$0xff]  }
 0x37c   :  { %4347 = vmatpush1.bf16.msra.mxu1 %v5848_v22  ;;  %v5917_v22 = vld [vmem:[#allocation12 + $0x6e8] ss:$16 sps:$4 sm:$0xff]  }
 0x37d   :  { %4390 = vmatpush1.bf16.msra.mxu0 %v5851_v26  ;;  %4348 = vmatprep.subr.bf16.mxu1 %v5856_v27  ;;  %v5922_v26 = vld [vmem:[#allocation12 + $0x4cc] ss:$16 sps:$4 sm:$0xff]  }
 0x37e   :  { %4391 = vmatprep.subr.bf16.mxu0 %v5859_v37  ;;  %v5925_v27 = vld [vmem:[#allocation12 + $0x6cc] ss:$16 sps:$4 sm:$0xff]   ;;  %v5920_v37 = vld [vmem:[#allocation12 + $0x4c8] ss:$16 sps:$4 sm:$0xff]  }
 0x380   :  { %4349 = vmatpush1.bf16.msra.mxu1 %v5854_v28  ;;  %v5923_v28 = vld [vmem:[#allocation12 + $0x6c8] ss:$16 sps:$4 sm:$0xff]  }
 0x381   :  { %4392 = vmatpush1.bf16.msra.mxu0 %v5857_v7  ;;  %4350 = vmatprep.subr.bf16.mxu1 %v5862_v42  ;;  %v5928_v7 = vld [vmem:[#allocation12 + $0x4ac] ss:$16 sps:$4 sm:$0xff]  }
 0x382   :  { %4393 = vmatprep.subr.bf16.mxu0 %v5865_v31  ;;  %v5931_v42 = vld [vmem:[#allocation12 + $0x6ac] ss:$16 sps:$4 sm:$0xff]   ;;  %v5926_v31 = vld [vmem:[#allocation12 + $0x4a8] ss:$16 sps:$4 sm:$0xff]  }
 0x384   :  { %4351 = vmatpush1.bf16.msra.mxu1 %v5860_v43  ;;  %v5934_v43 = vld [vmem:[#allocation12 + $0x48c] ss:$16 sps:$4 sm:$0xff]  }
 0x385   :  { %4394 = vmatpush1.bf16.msra.mxu0 %v5863_v39  ;;  %4352 = vmatprep.subr.bf16.mxu1 %v5868_v32  ;;  %v5932_v39 = vld [vmem:[#allocation12 + $0x488] ss:$16 sps:$4 sm:$0xff]   ;;  %v5940_v32 = vld [vmem:[#allocation12 + $0x46c] ss:$16 sps:$4 sm:$0xff]  }
 0x386   :  { %4395 = vmatprep.subr.bf16.mxu0 %v5871_v8  ;;  %v5943_v8 = vld [vmem:[#allocation12 + $0x66c] ss:$16 sps:$4 sm:$0xff]  }
 0x388   :  { %4353 = vmatpush2.bf16.msra.mxu1 %v5866_v13  ;;  %v5941_v13 = vld [vmem:[#allocation12 + $0x668] ss:$16 sps:$4 sm:$0xff]  }
 0x389   :  { %4396 = vmatpush2.bf16.msra.mxu0 %v5869_v49  ;;  %4354 = vmatprep.subr.bf16.mxu1 %v5874_v60  ;;  %v5946_v49 = vld [vmem:[#allocation12 + $0x44c] ss:$16 sps:$4 sm:$0xff]  }
 0x38a   :  { %4397 = vmatprep.subr.bf16.mxu0 %v5877_v51  ;;  %v5949_v60 = vld [vmem:[#allocation12 + $0x64c] ss:$16 sps:$4 sm:$0xff]   ;;  %v5944_v51 = vld [vmem:[#allocation12 + $0x448] ss:$16 sps:$4 sm:$0xff]  }
 0x38c   :  { %4355 = vmatpush2.bf16.msra.mxu1 %v5872_v52  ;;  %v5947_v52 = vld [vmem:[#allocation12 + $0x648] ss:$16 sps:$4 sm:$0xff]  }
 0x38d   :  { %4398 = vmatpush2.bf16.msra.mxu0 %v5875_v53  ;;  %4356 = vmatprep.subr.bf16.mxu1 %v5880_v55  ;;  %v5952_v53 = vld [vmem:[#allocation12 + $0x42c] ss:$16 sps:$4 sm:$0xff]  }
 0x38e   :  { %4399 = vmatprep.subr.bf16.mxu0 %v5883_v56  ;;  %v5955_v55 = vld [vmem:[#allocation12 + $0x62c] ss:$16 sps:$4 sm:$0xff]   ;;  %v5950_v56 = vld [vmem:[#allocation12 + $0x428] ss:$16 sps:$4 sm:$0xff]  }
 0x390   :  { %4357 = vmatpush2.bf16.msra.mxu1 %v5878_v57  ;;  %v5953_v57 = vld [vmem:[#allocation12 + $0x628] ss:$16 sps:$4 sm:$0xff]  }
 0x391   :  { %4400 = vmatpush2.bf16.msra.mxu0 %v5881_v58  ;;  %4358 = vmatprep.subr.bf16.mxu1 %v5886_v59  ;;  %v5958_v58 = vld [vmem:[#allocation12 + $0x40c] ss:$16 sps:$4 sm:$0xff]  }
 0x392   :  { %4401 = vmatprep.subr.bf16.mxu0 %v5889_v0  ;;  %v5961_v59 = vld [vmem:[#allocation12 + $0x60c] ss:$16 sps:$4 sm:$0xff]   ;;  %v5956_v0 = vld [vmem:[#allocation12 + $0x408] ss:$16 sps:$4 sm:$0xff]  }
 0x394   :  { %4359 = vmatpush2.bf16.msra.mxu1 %v5884_v1  ;;  %v5959_v1 = vld [vmem:[#allocation12 + $0x608] ss:$16 sps:$4 sm:$0xff]  }
 0x395   :  { %4402 = vmatpush2.bf16.msra.mxu0 %v5887_v2  ;;  %4360 = vmatprep.subr.bf16.mxu1 %v5892_v3  ;;  %v5964_v2 = vld [vmem:[#allocation12 + $0x5ec] ss:$16 sps:$4 sm:$0xff]  }
 0x396   :  { %4403 = vmatprep.subr.bf16.mxu0 %v5895_v40  ;;  %v5967_v3 = vld [vmem:[#allocation12 + $0x7ec] ss:$16 sps:$4 sm:$0xff]   ;;  %v5962_v40 = vld [vmem:[#allocation12 + $0x5e8] ss:$16 sps:$4 sm:$0xff]  }
 0x398   :  { %4361 = vmatpush2.bf16.msra.mxu1 %v5890_v41  ;;  %v5965_v41 = vld [vmem:[#allocation12 + $0x7e8] ss:$16 sps:$4 sm:$0xff]  }
 0x399   :  { %4404 = vmatpush2.bf16.msra.mxu0 %v5893_v6  ;;  %4362 = vmatprep.subr.bf16.mxu1 %v5898_v9  ;;  %v5970_v6 = vld [vmem:[#allocation12 + $0x5cc] ss:$16 sps:$4 sm:$0xff]  }
 0x39a   :  { %4405 = vmatprep.subr.bf16.mxu0 %v5901_v10  ;;  %v5973_v9 = vld [vmem:[#allocation12 + $0x7cc] ss:$16 sps:$4 sm:$0xff]   ;;  %v5968_v10 = vld [vmem:[#allocation12 + $0x5c8] ss:$16 sps:$4 sm:$0xff]  }
 0x39c   :  { %4363 = vmatpush2.bf16.msra.mxu1 %v5896_v11  ;;  %v5971_v11 = vld [vmem:[#allocation12 + $0x7c8] ss:$16 sps:$4 sm:$0xff]  }
 0x39d   :  { %4406 = vmatpush2.bf16.msra.mxu0 %v5899_v14  ;;  %4364 = vmatprep.subr.bf16.mxu1 %v5904_v15  ;;  %v5976_v14 = vld [vmem:[#allocation12 + $0x5ac] ss:$16 sps:$4 sm:$0xff]  }
 0x39e   :  { %4407 = vmatprep.subr.bf16.mxu0 %v5907_v35  ;;  %v5979_v15 = vld [vmem:[#allocation12 + $0x7ac] ss:$16 sps:$4 sm:$0xff]   ;;  %v5974_v35 = vld [vmem:[#allocation12 + $0x5a8] ss:$16 sps:$4 sm:$0xff]  }
 0x3a0   :  { %4365 = vmatpush2.bf16.msra.mxu1 %v5902_v16  ;;  %v5977_v16 = vld [vmem:[#allocation12 + $0x7a8] ss:$16 sps:$4 sm:$0xff]  }
 0x3a1   :  { %4408 = vmatpush2.bf16.msra.mxu0 %v5905_v36  ;;  %4366 = vmatprep.subr.bf16.mxu1 %v5910_v19  ;;  %v5982_v36 = vld [vmem:[#allocation12 + $0x58c] ss:$16 sps:$4 sm:$0xff]  }
 0x3a2   :  { %4409 = vmatprep.subr.bf16.mxu0 %v5913_v48  ;;  %v5985_v19 = vld [vmem:[#allocation12 + $0x78c] ss:$16 sps:$4 sm:$0xff]   ;;  %v5980_v48 = vld [vmem:[#allocation12 + $0x588] ss:$16 sps:$4 sm:$0xff]  }
 0x3a4   :  { %4367 = vmatpush2.bf16.msra.mxu1 %v5908_v25  ;;  %v5983_v25 = vld [vmem:[#allocation12 + $0x788] ss:$16 sps:$4 sm:$0xff]  }
 0x3a5   :  { %4410 = vmatpush2.bf16.msra.mxu0 %v5911_v20  ;;  %4422 = vmatprep.subr.bf16.mxu1 %v5916_v17  ;;  %v5988_v20 = vld [vmem:[#allocation12 + $0x56c] ss:$16 sps:$4 sm:$0xff]  }
 0x3a6   :  { %4465 = vmatprep.subr.bf16.mxu0 %v5919_v18  ;;  %v5991_v17 = vld [vmem:[#allocation12 + $0x76c] ss:$16 sps:$4 sm:$0xff]   ;;  %v5986_v18 = vld [vmem:[#allocation12 + $0x568] ss:$16 sps:$4 sm:$0xff]  }
 0x3a7   :  { %4369 = vmatmul.mubr.bf16.vlgmr.msra.gmra.mxu1 %v6591_v23  ;;  %v5929_v23 = vld [vmem:[#allocation12 + $0x6a8] ss:$16 sps:$4 sm:$0xff]  }
 0x3a8   :  { %4412 = vmatmul.mubr.bf16.vlgmr.msra.gmra.mxu0 %v6593_v24  ;;  %4423 = vmatpush1.bf16.msra.mxu1 %v5914_v21  ;;  %v5937_v24 = vld [vmem:[#allocation12 + $0x68c] ss:$16 sps:$4 sm:$0xff]   ;;  %v5989_v21 = vld [vmem:[#allocation12 + $0x768] ss:$16 sps:$4 sm:$0xff]  }
 0x3a9   :  { %4454 = vmatprep.mubr.bf16.mxu1 %v6611_v62  ;;  %4466 = vmatpush1.bf16.msra.mxu0 %v5917_v22  ;;  %v5935_v62 = vld [vmem:[#allocation12 + $0x688] ss:$16 sps:$4 sm:$0xff]   ;;  %v5994_v22 = vld [vmem:[#allocation12 + $0x54c] ss:$16 sps:$4 sm:$0xff]  }
 0x3aa   :  { %4497 = vmatprep.mubr.bf16.mxu0 %v6613_v63  ;;  %4424 = vmatprep.subr.bf16.mxu1 %v5922_v26  ;;  %v5938_v63 = vld [vmem:[#allocation12 + $0x468] ss:$16 sps:$4 sm:$0xff]   ;;  %v5997_v26 = vld [vmem:[#allocation12 + $0x74c] ss:$16 sps:$4 sm:$0xff]  }
 0x3ab   :  { %4467 = vmatprep.subr.bf16.mxu0 %v5925_v27  ;;  %v5992_v27 = vld [vmem:[#allocation12 + $0x548] ss:$16 sps:$4 sm:$0xff]  }
 0x3ac   :  { %4425 = vmatpush1.bf16.msra.mxu1 %v5920_v37  ;;  %v5995_v37 = vld [vmem:[#allocation12 + $0x748] ss:$16 sps:$4 sm:$0xff]  }
 0x3ad   :  { %4468 = vmatpush1.bf16.msra.mxu0 %v5923_v28  ;;  %4426 = vmatprep.subr.bf16.mxu1 %v5928_v7  ;;  %v6000_v28 = vld [vmem:[#allocation12 + $0x52c] ss:$16 sps:$4 sm:$0xff]  }
 0x3ae   :  { %4469 = vmatprep.subr.bf16.mxu0 %v5931_v42  ;;  %v6003_v7 = vld [vmem:[#allocation12 + $0x72c] ss:$16 sps:$4 sm:$0xff]   ;;  %v5998_v42 = vld [vmem:[#allocation12 + $0x528] ss:$16 sps:$4 sm:$0xff]  }
 0x3b0   :  { %4427 = vmatpush1.bf16.msra.mxu1 %v5926_v31  ;;  %v6001_v31 = vld [vmem:[#allocation12 + $0x728] ss:$16 sps:$4 sm:$0xff]  }
 0x3b1   :  { %4470 = vmatpush1.bf16.msra.mxu0 %v5929_v23  ;;  %4428 = vmatprep.subr.bf16.mxu1 %v5934_v43  ;;  %v6006_v23 = vld [vmem:[#allocation12 + $0x50c] ss:$16 sps:$4 sm:$0xff]  }
 0x3b2   :  { %4471 = vmatprep.subr.bf16.mxu0 %v5937_v24  ;;  %v6009_v43 = vld [vmem:[#allocation12 + $0x70c] ss:$16 sps:$4 sm:$0xff]   ;;  %v6004_v24 = vld [vmem:[#allocation12 + $0x508] ss:$16 sps:$4 sm:$0xff]  }
 0x3b4   :  { %4429 = vmatpush1.bf16.msra.mxu1 %v5932_v39  ;;  %v6007_v39 = vld [vmem:[#allocation12 + $0x708] ss:$16 sps:$4 sm:$0xff]  }
 0x3b5   :  { %4472 = vmatpush1.bf16.msra.mxu0 %v5935_v62  ;;  %4430 = vmatprep.subr.bf16.mxu1 %v5940_v32  ;;  %v6012_v62 = vld [vmem:[#allocation12 + $0x8ec] ss:$16 sps:$4 sm:$0xff]  }
 0x3b6   :  { %4473 = vmatprep.subr.bf16.mxu0 %v5943_v8  ;;  %v6015_v32 = vld [vmem:[#allocation12 + $0xaec] ss:$16 sps:$4 sm:$0xff]   ;;  %v6010_v8 = vld [vmem:[#allocation12 + $0x8e8] ss:$16 sps:$4 sm:$0xff]  }
 0x3b8   :  { %4431 = vmatpush1.bf16.msra.mxu1 %v5938_v63  ;;  %v6013_v63 = vld [vmem:[#allocation12 + $0xae8] ss:$16 sps:$4 sm:$0xff]  }
 0x3b9   :  { %4474 = vmatpush1.bf16.msra.mxu0 %v5941_v13  ;;  %4432 = vmatprep.subr.bf16.mxu1 %v5946_v49  ;;  %v6018_v13 = vld [vmem:[#allocation12 + $0x8cc] ss:$16 sps:$4 sm:$0xff]  }
 0x3ba   :  { %4475 = vmatprep.subr.bf16.mxu0 %v5949_v60  ;;  %v6021_v49 = vld [vmem:[#allocation12 + $0xacc] ss:$16 sps:$4 sm:$0xff]   ;;  %v6016_v60 = vld [vmem:[#allocation12 + $0x8c8] ss:$16 sps:$4 sm:$0xff]  }
 0x3bc   :  { %4433 = vmatpush1.bf16.msra.mxu1 %v5944_v51  ;;  %v6019_v51 = vld [vmem:[#allocation12 + $0xac8] ss:$16 sps:$4 sm:$0xff]  }
 0x3bd   :  { %4476 = vmatpush1.bf16.msra.mxu0 %v5947_v52  ;;  %4434 = vmatprep.subr.bf16.mxu1 %v5952_v53  ;;  %v6024_v52 = vld [vmem:[#allocation12 + $0x8ac] ss:$16 sps:$4 sm:$0xff]  }
 0x3be   :  { %4477 = vmatprep.subr.bf16.mxu0 %v5955_v55  ;;  %v6027_v53 = vld [vmem:[#allocation12 + $0xaac] ss:$16 sps:$4 sm:$0xff]   ;;  %v6022_v55 = vld [vmem:[#allocation12 + $0x8a8] ss:$16 sps:$4 sm:$0xff]  }
 0x3c0   :  { %4435 = vmatpush1.bf16.msra.mxu1 %v5950_v56  ;;  %v6030_v56 = vld [vmem:[#allocation12 + $0x88c] ss:$16 sps:$4 sm:$0xff]  }
 0x3c1   :  { %4478 = vmatpush1.bf16.msra.mxu0 %v5953_v57  ;;  %4436 = vmatprep.subr.bf16.mxu1 %v5958_v58  ;;  %v6028_v57 = vld [vmem:[#allocation12 + $0x888] ss:$16 sps:$4 sm:$0xff]   ;;  %v6036_v58 = vld [vmem:[#allocation12 + $0x86c] ss:$16 sps:$4 sm:$0xff]  }
 0x3c2   :  { %4479 = vmatprep.subr.bf16.mxu0 %v5961_v59  ;;  %v6039_v59 = vld [vmem:[#allocation12 + $0xa6c] ss:$16 sps:$4 sm:$0xff]  }
 0x3c4   :  { %4437 = vmatpush1.bf16.msra.mxu1 %v5956_v0  ;;  %v6037_v0 = vld [vmem:[#allocation12 + $0xa68] ss:$16 sps:$4 sm:$0xff]  }
 0x3c5   :  { %4480 = vmatpush1.bf16.msra.mxu0 %v5959_v1  ;;  %4438 = vmatprep.subr.bf16.mxu1 %v5964_v2  ;;  %v6042_v1 = vld [vmem:[#allocation12 + $0x84c] ss:$16 sps:$4 sm:$0xff]  }
 0x3c6   :  { %4481 = vmatprep.subr.bf16.mxu0 %v5967_v3  ;;  %v6045_v2 = vld [vmem:[#allocation12 + $0xa4c] ss:$16 sps:$4 sm:$0xff]   ;;  %v6040_v3 = vld [vmem:[#allocation12 + $0x848] ss:$16 sps:$4 sm:$0xff]  }
 0x3c8   :  { %4439 = vmatpush2.bf16.msra.mxu1 %v5962_v40  ;;  %v6043_v40 = vld [vmem:[#allocation12 + $0xa48] ss:$16 sps:$4 sm:$0xff]  }
 0x3c9   :  { %4482 = vmatpush2.bf16.msra.mxu0 %v5965_v41  ;;  %4440 = vmatprep.subr.bf16.mxu1 %v5970_v6  ;;  %v6048_v41 = vld [vmem:[#allocation12 + $0x82c] ss:$16 sps:$4 sm:$0xff]  }
 0x3ca   :  { %4483 = vmatprep.subr.bf16.mxu0 %v5973_v9  ;;  %v6051_v6 = vld [vmem:[#allocation12 + $0xa2c] ss:$16 sps:$4 sm:$0xff]   ;;  %v6046_v9 = vld [vmem:[#allocation12 + $0x828] ss:$16 sps:$4 sm:$0xff]  }
 0x3cc   :  { %4441 = vmatpush2.bf16.msra.mxu1 %v5968_v10  ;;  %v6049_v10 = vld [vmem:[#allocation12 + $0xa28] ss:$16 sps:$4 sm:$0xff]  }
 0x3cd   :  { %4484 = vmatpush2.bf16.msra.mxu0 %v5971_v11  ;;  %4442 = vmatprep.subr.bf16.mxu1 %v5976_v14  ;;  %v6054_v11 = vld [vmem:[#allocation12 + $0x80c] ss:$16 sps:$4 sm:$0xff]  }
 0x3ce   :  { %4485 = vmatprep.subr.bf16.mxu0 %v5979_v15  ;;  %v6057_v14 = vld [vmem:[#allocation12 + $0xa0c] ss:$16 sps:$4 sm:$0xff]   ;;  %v6052_v15 = vld [vmem:[#allocation12 + $0x808] ss:$16 sps:$4 sm:$0xff]  }
 0x3d0   :  { %4443 = vmatpush2.bf16.msra.mxu1 %v5974_v35  ;;  %v6055_v35 = vld [vmem:[#allocation12 + $0xa08] ss:$16 sps:$4 sm:$0xff]  }
 0x3d1   :  { %4486 = vmatpush2.bf16.msra.mxu0 %v5977_v16  ;;  %4444 = vmatprep.subr.bf16.mxu1 %v5982_v36  ;;  %v6060_v16 = vld [vmem:[#allocation12 + $0x9ec] ss:$16 sps:$4 sm:$0xff]  }
 0x3d2   :  { %4487 = vmatprep.subr.bf16.mxu0 %v5985_v19  ;;  %v6063_v36 = vld [vmem:[#allocation12 + $0xbec] ss:$16 sps:$4 sm:$0xff]   ;;  %v6058_v19 = vld [vmem:[#allocation12 + $0x9e8] ss:$16 sps:$4 sm:$0xff]  }
 0x3d4   :  { %4445 = vmatpush2.bf16.msra.mxu1 %v5980_v48  ;;  %v6061_v48 = vld [vmem:[#allocation12 + $0xbe8] ss:$16 sps:$4 sm:$0xff]  }
 0x3d5   :  { %4488 = vmatpush2.bf16.msra.mxu0 %v5983_v25  ;;  %4446 = vmatprep.subr.bf16.mxu1 %v5988_v20  ;;  %v6066_v25 = vld [vmem:[#allocation12 + $0x9cc] ss:$16 sps:$4 sm:$0xff]  }
 0x3d6   :  { %4489 = vmatprep.subr.bf16.mxu0 %v5991_v17  ;;  %v6069_v20 = vld [vmem:[#allocation12 + $0xbcc] ss:$16 sps:$4 sm:$0xff]   ;;  %v6064_v17 = vld [vmem:[#allocation12 + $0x9c8] ss:$16 sps:$4 sm:$0xff]  }
 0x3d8   :  { %4447 = vmatpush2.bf16.msra.mxu1 %v5986_v18  ;;  %v6067_v18 = vld [vmem:[#allocation12 + $0xbc8] ss:$16 sps:$4 sm:$0xff]  }
 0x3d9   :  { %4490 = vmatpush2.bf16.msra.mxu0 %v5989_v21  ;;  %4448 = vmatprep.subr.bf16.mxu1 %v5994_v22  ;;  %v6072_v21 = vld [vmem:[#allocation12 + $0x9ac] ss:$16 sps:$4 sm:$0xff]  }
 0x3da   :  { %4491 = vmatprep.subr.bf16.mxu0 %v5997_v26  ;;  %v6075_v22 = vld [vmem:[#allocation12 + $0xbac] ss:$16 sps:$4 sm:$0xff]   ;;  %v6070_v26 = vld [vmem:[#allocation12 + $0x9a8] ss:$16 sps:$4 sm:$0xff]  }
 0x3dc   :  { %4449 = vmatpush2.bf16.msra.mxu1 %v5992_v27  ;;  %v6073_v27 = vld [vmem:[#allocation12 + $0xba8] ss:$16 sps:$4 sm:$0xff]  }
 0x3dd   :  { %4492 = vmatpush2.bf16.msra.mxu0 %v5995_v37  ;;  %4450 = vmatprep.subr.bf16.mxu1 %v6000_v28  ;;  %v6078_v37 = vld [vmem:[#allocation12 + $0x98c] ss:$16 sps:$4 sm:$0xff]  }
 0x3de   :  { %4493 = vmatprep.subr.bf16.mxu0 %v6003_v7  ;;  %v6081_v28 = vld [vmem:[#allocation12 + $0xb8c] ss:$16 sps:$4 sm:$0xff]   ;;  %v6076_v7 = vld [vmem:[#allocation12 + $0x988] ss:$16 sps:$4 sm:$0xff]  }
 0x3e0   :  { %4451 = vmatpush2.bf16.msra.mxu1 %v5998_v42  ;;  %v6079_v42 = vld [vmem:[#allocation12 + $0xb88] ss:$16 sps:$4 sm:$0xff]  }
 0x3e1   :  { %4494 = vmatpush2.bf16.msra.mxu0 %v6001_v31  ;;  %4452 = vmatprep.subr.bf16.mxu1 %v6006_v23  ;;  %v6084_v31 = vld [vmem:[#allocation12 + $0x96c] ss:$16 sps:$4 sm:$0xff]  }
 0x3e2   :  { %4495 = vmatprep.subr.bf16.mxu0 %v6009_v43  ;;  %v6087_v23 = vld [vmem:[#allocation12 + $0xb6c] ss:$16 sps:$4 sm:$0xff]   ;;  %v6082_v43 = vld [vmem:[#allocation12 + $0x968] ss:$16 sps:$4 sm:$0xff]  }
 0x3e4   :  { %4453 = vmatpush2.bf16.msra.mxu1 %v6004_v24  ;;  %v6085_v24 = vld [vmem:[#allocation12 + $0xb68] ss:$16 sps:$4 sm:$0xff]  }
 0x3e5   :  { %4496 = vmatpush2.bf16.msra.mxu0 %v6007_v39  ;;  %4508 = vmatprep.subr.bf16.mxu1 %v6012_v62  ;;  %v6090_v39 = vld [vmem:[#allocation12 + $0x94c] ss:$16 sps:$4 sm:$0xff]  }
 0x3e6   :  { %4551 = vmatprep.subr.bf16.mxu0 %v6015_v32  ;;  %v6093_v62 = vld [vmem:[#allocation12 + $0xb4c] ss:$16 sps:$4 sm:$0xff]   ;;  %v6088_v32 = vld [vmem:[#allocation12 + $0x948] ss:$16 sps:$4 sm:$0xff]  }
 0x3e7   :  { %4455 = vmatmul.mubr.bf16.vlgmr.msra.gmra.mxu1 %v6655_v33  ;;  %v6025_v33 = vld [vmem:[#allocation12 + $0xaa8] ss:$16 sps:$4 sm:$0xff]  }
 0x3e8   :  { %4498 = vmatmul.mubr.bf16.vlgmr.msra.gmra.mxu0 %v6657_v50  ;;  %4509 = vmatpush1.bf16.msra.mxu1 %v6010_v8  ;;  %v6033_v50 = vld [vmem:[#allocation12 + $0xa8c] ss:$16 sps:$4 sm:$0xff]   ;;  %v6091_v8 = vld [vmem:[#allocation12 + $0xb48] ss:$16 sps:$4 sm:$0xff]  }
 0x3e9   :  { %4540 = vmatprep.mubr.bf16.mxu1 %v6659_v61  ;;  %4552 = vmatpush1.bf16.msra.mxu0 %v6013_v63  ;;  %v6031_v61 = vld [vmem:[#allocation12 + $0xa88] ss:$16 sps:$4 sm:$0xff]   ;;  %v6096_v63 = vld [vmem:[#allocation12 + $0x92c] ss:$16 sps:$4 sm:$0xff]  }
 0x3ea   :  { %4583 = vmatprep.mubr.bf16.mxu0 %v6662_v54  ;;  %4510 = vmatprep.subr.bf16.mxu1 %v6018_v13  ;;  %v6034_v54 = vld [vmem:[#allocation12 + $0x868] ss:$16 sps:$4 sm:$0xff]   ;;  %v6099_v13 = vld [vmem:[#allocation12 + $0xb2c] ss:$16 sps:$4 sm:$0xff]  }
 0x3eb   :  { %4553 = vmatprep.subr.bf16.mxu0 %v6021_v49  ;;  %v6094_v49 = vld [vmem:[#allocation12 + $0x928] ss:$16 sps:$4 sm:$0xff]  }
 0x3ec   :  { %4511 = vmatpush1.bf16.msra.mxu1 %v6016_v60  ;;  %v6097_v60 = vld [vmem:[#allocation12 + $0xb28] ss:$16 sps:$4 sm:$0xff]  }
 0x3ed   :  { %4554 = vmatpush1.bf16.msra.mxu0 %v6019_v51  ;;  %4512 = vmatprep.subr.bf16.mxu1 %v6024_v52  ;;  %v6102_v51 = vld [vmem:[#allocation12 + $0x90c] ss:$16 sps:$4 sm:$0xff]   ;;  %v6693_v52 = vpop.f32.mrf.mxu1 }
 0x3ee   :  { %4555 = vmatprep.subr.bf16.mxu0 %v6027_v53  ;;  %v6105_v53 = vld [vmem:[#allocation12 + $0xb0c] ss:$16 sps:$4 sm:$0xff]  }
 0x3f0   :  { %4513 = vmatpush1.bf16.msra.mxu1 %v6022_v55  ;;  %v6100_v55 = vld [vmem:[#allocation12 + $0x908] ss:$16 sps:$4 sm:$0xff]  }
 0x3f1   :  { %4556 = vmatpush1.bf16.msra.mxu0 %v6025_v33  ;;  %4514 = vmatprep.subr.bf16.mxu1 %v6030_v56  ;;  %v6103_v33 = vld [vmem:[#allocation12 + $0xb08] ss:$16 sps:$4 sm:$0xff]   ;;  %v6108_v56 = vld [vmem:[#allocation12 + $0xcec] ss:$16 sps:$4 sm:$0xff]  }
 0x3f2   :  { %4557 = vmatprep.subr.bf16.mxu0 %v6033_v50  ;;  %v6695_v50 = vpop.f32.mrf.mxu1 }
 0x3f4   :  { %4515 = vmatpush1.bf16.msra.mxu1 %v6028_v57  ;;  %v6111_v57 = vld [vmem:[#allocation12 + $0xeec] ss:$16 sps:$4 sm:$0xff]  }
 0x3f5   :  { %4558 = vmatpush1.bf16.msra.mxu0 %v6031_v61  ;;  %4516 = vmatprep.subr.bf16.mxu1 %v6036_v58  ;;  %v6697_v61 = vpop.f32.mrf.mxu0  ;;  %v6106_v58 = vld [vmem:[#allocation12 + $0xce8] ss:$16 sps:$4 sm:$0xff]  }
 0x3f6   :  { %4559 = vmatprep.subr.bf16.mxu0 %v6039_v59  ;;  %v6109_v59 = vld [vmem:[#allocation12 + $0xee8] ss:$16 sps:$4 sm:$0xff]  }
 0x3f8   :  { %4517 = vmatpush1.bf16.msra.mxu1 %v6034_v54  ;;  %v6699_v54 = vpop.f32.mrf.mxu1 }
 0x3f9   :  { %4560 = vmatpush1.bf16.msra.mxu0 %v6037_v0  ;;  %4518 = vmatprep.subr.bf16.mxu1 %v6042_v1  ;;  %v6114_v0 = vld [vmem:[#allocation12 + $0xccc] ss:$16 sps:$4 sm:$0xff]  }
 0x3fa   :  { %4561 = vmatprep.subr.bf16.mxu0 %v6045_v2  ;;  %v6117_v1 = vld [vmem:[#allocation12 + $0xecc] ss:$16 sps:$4 sm:$0xff]   ;;  %v6702_v2 = vpop.f32.mrf.mxu0 }
 0x3fc   :  { %4519 = vmatpush1.bf16.msra.mxu1 %v6040_v3  ;;  %v6112_v3 = vld [vmem:[#allocation12 + $0xcc8] ss:$16 sps:$4 sm:$0xff]  }
 0x3fd   :  { %4562 = vmatpush1.bf16.msra.mxu0 %v6043_v40  ;;  %4520 = vmatprep.subr.bf16.mxu1 %v6048_v41  ;;  %v6115_v40 = vld [vmem:[#allocation12 + $0xec8] ss:$16 sps:$4 sm:$0xff]   ;;  %v6120_v41 = vld [vmem:[#allocation12 + $0xcac] ss:$16 sps:$4 sm:$0xff]  }
 0x3fe   :  { %4563 = vmatprep.subr.bf16.mxu0 %v6051_v6  ;;  %v6706_v6 = vpop.f32.mrf.mxu1 }
 0x400   :  { %4521 = vmatpush1.bf16.msra.mxu1 %v6046_v9  ;;  %v6123_v9 = vld [vmem:[#allocation12 + $0xeac] ss:$16 sps:$4 sm:$0xff]  }
 0x401   :  { %4564 = vmatpush1.bf16.msra.mxu0 %v6049_v10  ;;  %4522 = vmatprep.subr.bf16.mxu1 %v6054_v11  ;;  %v6711_v10 = vpop.f32.mrf.mxu1  ;;  %v6121_v11 = vld [vmem:[#allocation12 + $0xea8] ss:$16 sps:$4 sm:$0xff]  }
 0x402   :  { %4565 = vmatprep.subr.bf16.mxu0 %v6057_v14  ;;  %v6129_v14 = vld [vmem:[#allocation12 + $0xe8c] ss:$16 sps:$4 sm:$0xff]  }
 0x404   :  { %4523 = vmatpush1.bf16.msra.mxu1 %v6052_v15 }
 0x405   :  { %4566 = vmatpush1.bf16.msra.mxu0 %v6055_v35  ;;  %4524 = vmatprep.subr.bf16.mxu1 %v6060_v16  ;;  %v6715_v35 = vpop.f32.mrf.mxu1  ;;  %v6127_v16 = vld [vmem:[#allocation12 + $0xe88] ss:$16 sps:$4 sm:$0xff]  }
 0x406   :  { %4567 = vmatprep.subr.bf16.mxu0 %v6063_v36  ;;  %v6132_v36 = vld [vmem:[#allocation12 + $0xc6c] ss:$16 sps:$4 sm:$0xff]  }
 0x408   :  { %4525 = vmatpush2.bf16.msra.mxu1 %v6058_v19 }
 0x409   :  { %4568 = vmatpush2.bf16.msra.mxu0 %v6061_v48  ;;  %4526 = vmatprep.subr.bf16.mxu1 %v6066_v25  ;;  %v6135_v48 = vld [vmem:[#allocation12 + $0xe6c] ss:$16 sps:$4 sm:$0xff]   ;;  %v6719_v25 = vpop.f32.mrf.mxu1 }
 0x40a   :  { %4569 = vmatprep.subr.bf16.mxu0 %v6069_v20  ;;  %v6130_v20 = vld [vmem:[#allocation12 + $0xc68] ss:$16 sps:$4 sm:$0xff]  }
 0x40c   :  { %4527 = vmatpush2.bf16.msra.mxu1 %v6064_v17  ;;  %v6133_v17 = vld [vmem:[#allocation12 + $0xe68] ss:$16 sps:$4 sm:$0xff]  }
 0x40d   :  { %4570 = vmatpush2.bf16.msra.mxu0 %v6067_v18  ;;  %4528 = vmatprep.subr.bf16.mxu1 %v6072_v21  ;;  %v6138_v18 = vld [vmem:[#allocation12 + $0xc4c] ss:$16 sps:$4 sm:$0xff]  }
 0x40e   :  { %4571 = vmatprep.subr.bf16.mxu0 %v6075_v22  ;;  %v6141_v22 = vld [vmem:[#allocation12 + $0xe4c] ss:$16 sps:$4 sm:$0xff]  }
 0x410   :  { %4529 = vmatpush2.bf16.msra.mxu1 %v6070_v26  ;;  %v4118_v26 = vpop.f32.mrf.mxu1 }
 0x411   :  { %4572 = vmatpush2.bf16.msra.mxu0 %v6073_v27  ;;  %4530 = vmatprep.subr.bf16.mxu1 %v6078_v37  ;;  %v6136_v27 = vld [vmem:[#allocation12 + $0xc48] ss:$16 sps:$4 sm:$0xff]  }
 0x412   :  { %4573 = vmatprep.subr.bf16.mxu0 %v6081_v28  ;;  %v6139_v37 = vld [vmem:[#allocation12 + $0xe48] ss:$16 sps:$4 sm:$0xff]   ;;  %v6144_v28 = vld [vmem:[#allocation12 + $0xc2c] ss:$16 sps:$4 sm:$0xff]  }
 0x414   :  { %4531 = vmatpush2.bf16.msra.mxu1 %v6076_v7 }
 0x415   :  { %4574 = vmatpush2.bf16.msra.mxu0 %v6079_v42  ;;  %4532 = vmatprep.subr.bf16.mxu1 %v6084_v31  ;;  %v6725_v42 = vpop.f32.mrf.mxu1  ;;  %v6147_v31 = vld [vmem:[#allocation12 + $0xe2c] ss:$16 sps:$4 sm:$0xff]  }
 0x416   :  { %4575 = vmatprep.subr.bf16.mxu0 %v6087_v23  ;;  %v6142_v23 = vld [vmem:[#allocation12 + $0xc28] ss:$16 sps:$4 sm:$0xff]  }
 0x418   :  { %4533 = vmatpush2.bf16.msra.mxu1 %v6082_v43  ;;  %v6145_v43 = vld [vmem:[#allocation12 + $0xe28] ss:$16 sps:$4 sm:$0xff]  }
 0x419   :  { %4576 = vmatpush2.bf16.msra.mxu0 %v6085_v24  ;;  %4534 = vmatprep.subr.bf16.mxu1 %v6090_v39  ;;  %v6150_v24 = vld [vmem:[#allocation12 + $0xc0c] ss:$16 sps:$4 sm:$0xff]  }
 0x41a   :  { %4577 = vmatprep.subr.bf16.mxu0 %v6093_v62  ;;  %v6727_v62 = vpop.f32.mrf.mxu1 }
 0x41c   :  { %4535 = vmatpush2.bf16.msra.mxu1 %v6088_v32  ;;  %v6153_v32 = vld [vmem:[#allocation12 + $0xe0c] ss:$16 sps:$4 sm:$0xff]  }
 0x41d   :  { %4578 = vmatpush2.bf16.msra.mxu0 %v6091_v8  ;;  %4536 = vmatprep.subr.bf16.mxu1 %v6096_v63  ;;  %v6148_v63 = vld [vmem:[#allocation12 + $0xc08] ss:$16 sps:$4 sm:$0xff]  }
 0x41e   :  { %4579 = vmatprep.subr.bf16.mxu0 %v6099_v13  ;;  %v6151_v13 = vld [vmem:[#allocation12 + $0xe08] ss:$16 sps:$4 sm:$0xff]  }
 0x420   :  { %4537 = vmatpush2.bf16.msra.mxu1 %v6094_v49  ;;  %v6156_v49 = vld [vmem:[#allocation12 + $0xdec] ss:$16 sps:$4 sm:$0xff]  }
 0x421   :  { %4580 = vmatpush2.bf16.msra.mxu0 %v6097_v60  ;;  %4538 = vmatprep.subr.bf16.mxu1 %v6102_v51  ;;  %v6731_v60 = vld [vmem:[#allocation14] sm:$0xf]  ;;  %v6733_v51 = vpop.f32.mrf.mxu1 }
 0x422   :  { %4581 = vmatprep.subr.bf16.mxu0 %v6105_v53  ;;  %v6159_v53 = vld [vmem:[#allocation12 + $0xfec] ss:$16 sps:$4 sm:$0xff]  }
 0x424   :  { %4539 = vmatpush2.bf16.msra.mxu1 %v6100_v55  ;;  %v1419_v55 = vrot.slane %v6731_v60, %v6560_v44 }
 0x425   :  { %4582 = vmatpush2.bf16.msra.mxu0 %v6103_v33  ;;  %4594 = vmatprep.subr.bf16.mxu1 %v6108_v56  ;;  %v6154_v56 = vld [vmem:[#allocation12 + $0xde8] ss:$16 sps:$4 sm:$0xff]  }
 0x426   :  { %4637 = vmatprep.subr.bf16.mxu0 %v6111_v57  ;;  %v4033_v57 = vadd.f32 %v6706_v6, %v1419_v55 }
 0x427   :  { %4541 = vmatmul.mubr.bf16.vlgmr.msra.gmra.mxu1 %v6621_v29  ;;  %v6709_v29 = vpop.f32.mrf.mxu0 }
 0x428   :  { %4584 = vmatmul.mubr.bf16.vlgmr.msra.gmra.mxu0 %v6623_v30  ;;  %4595 = vmatpush1.bf16.msra.mxu1 %v6106_v58  ;;  %v6118_v30 = vld [vmem:[#allocation12 + $0xca8] ss:$16 sps:$4 sm:$0xff]  }
 0x429   :  { %4626 = vmatprep.mubr.bf16.mxu1 %v6673_v38  ;;  %4638 = vmatpush1.bf16.msra.mxu0 %v6109_v59  ;;  %v6126_v38 = vld [vmem:[#allocation12 + $0xc8c] ss:$16 sps:$4 sm:$0xff]   ;;  %v6713_v15 = vpop.f32.mrf.mxu0  ;;  %v6157_v58 = vld [vmem:[#allocation12 + $0xfe8] ss:$16 sps:$4 sm:$0xff]  }
 0x42a   :  { %4669 = vmatprep.mubr.bf16.mxu0 %v6676_v12  ;;  %4596 = vmatprep.subr.bf16.mxu1 %v6114_v0  ;;  %v6124_v12 = vld [vmem:[#allocation12 + $0xc88] ss:$16 sps:$4 sm:$0xff]   ;;  %v6162_v59 = vld [vmem:[#allocation12 + $0xdcc] ss:$16 sps:$4 sm:$0xff]   ;;  %v1415_v0 = vrot.slane %v6731_v60, %v6566_v46  ;;  %v4076_v6 = vadd.f32 %v6713_v15, %v4033_v57 }
 0x42b   :  { %4639 = vmatprep.subr.bf16.mxu0 %v6117_v1  ;;  %v6717_v19 = vpop.f32.mrf.mxu0  ;;  %v4204_v1 = vpop.f32.mrf.mxu1  ;;  %v6169_v15 = vld [vmem:[#allocation12 + $0xfa8] ss:$16 sps:$4 sm:$0xff]  }
 0x42c   :  { %4597 = vmatpush1.bf16.msra.mxu1 %v6112_v3  ;;  %v6165_v3 = vld [vmem:[#allocation12 + $0xfcc] ss:$16 sps:$4 sm:$0xff]   ;;  %v4031_v44 = vadd.f32 %v6699_v54, %v1415_v0 }
 0x42d   :  { %4640 = vmatpush1.bf16.msra.mxu0 %v6115_v40  ;;  %4598 = vmatprep.subr.bf16.mxu1 %v6120_v41  ;;  %v6721_v21 = vpop.f32.mrf.mxu0  ;;  %v4029_v40 = vadd.f32 %v6695_v50, %v1419_v55  ;;  %v4119_v50 = vadd.f32 %v4118_v26, %v4076_v6 }
 0x42e   :  { %4641 = vmatprep.subr.bf16.mxu0 %v6123_v9  ;;  %v6744_v9 = vpop.f32.mrf.mxu1  ;;  %v4074_v54 = vadd.f32 %v6709_v29, %v4031_v44 }
 0x42f   :  { %v6723_v7 = vpop.f32.mrf.mxu0 }
 0x430   :  { %4599 = vmatpush1.bf16.msra.mxu1 %v6118_v30  ;;  %v6160_v30 = vld [vmem:[#allocation12 + $0xdc8] ss:$16 sps:$4 sm:$0xff]  }
 0x431   :  { %4642 = vmatpush1.bf16.msra.mxu0 %v6121_v11  ;;  %4600 = vmatprep.subr.bf16.mxu1 %v6126_v38  ;;  %v4161_v39 = vpop.f32.mrf.mxu0  ;;  %v6163_v11 = vld [vmem:[#allocation12 + $0xfc8] ss:$16 sps:$4 sm:$0xff]   ;;  %v6168_v38 = vld [vmem:[#allocation12 + $0xdac] ss:$16 sps:$4 sm:$0xff]  }
 0x432   :  { %4643 = vmatprep.subr.bf16.mxu0 %v6129_v14  ;;  %v4027_v14 = vadd.f32 %v6693_v52, %v1415_v0  ;;  %v4117_v52 = vadd.f32 %v6719_v25, %v4074_v54  ;;  %v4162_v26 = vadd.f32 %v4161_v39, %v4119_v50  ;;  %v6183_v25 = vld [vmem:[#allocation12 + $0xf6c] ss:$16 sps:$4 sm:$0xff]   ;;  %v6199_v54 = vld [vmem:[#allocation12 + $0xf08] ss:$16 sps:$4 sm:$0xff]  }
 0x433   :  { %v6729_v8 = vpop.f32.mrf.mxu0  ;;  %v6192_v0 = vld [vmem:[#allocation12 + $0xd2c] ss:$16 sps:$4 sm:$0xff]  }
 0x434   :  { %4601 = vmatpush1.bf16.msra.mxu1 %v6124_v12  ;;  %v6171_v12 = vld [vmem:[#allocation12 + $0xfac] ss:$16 sps:$4 sm:$0xff]  }
 0x435   :  { %4644 = vmatpush1.bf16.msra.mxu0 %v6127_v16  ;;  %4602 = vmatprep.subr.bf16.mxu1 %v6132_v36  ;;  %v6737_v33 = vpop.f32.mrf.mxu0  ;;  %v4072_v16 = vadd.f32 %v6702_v2, %v4029_v40  ;;  %v6177_v2 = vld [vmem:[#allocation12 + $0xf8c] ss:$16 sps:$4 sm:$0xff]  }
 0x436   :  { %4645 = vmatprep.subr.bf16.mxu0 %v6135_v48  ;;  %v4286_v48 = vpop.f32.mrf.mxu1 }
 0x437   :  { %v4245_v41 = vpop.f32.mrf.mxu0 }
 0x438   :  { %4603 = vmatpush1.bf16.msra.mxu1 %v6130_v20  ;;  %v6166_v20 = vld [vmem:[#allocation12 + $0xda8] ss:$16 sps:$4 sm:$0xff]  }
 0x439   :  { %4646 = vmatpush1.bf16.msra.mxu0 %v6133_v17  ;;  %4604 = vmatprep.subr.bf16.mxu1 %v6138_v18  ;;  %v4247_v36 = vpop.f32.mrf.mxu0  ;;  %v4115_v17 = vadd.f32 %v6715_v35, %v4072_v16  ;;  %v6174_v18 = vld [vmem:[#allocation12 + $0xd8c] ss:$16 sps:$4 sm:$0xff]   ;;  %v4205_v35 = vadd.f32 %v4204_v1, %v4162_v26 }
 0x43a   :  { %4647 = vmatprep.subr.bf16.mxu0 %v6141_v22  ;;  %v4070_v22 = vadd.f32 %v6697_v61, %v4027_v14  ;;  %v4160_v61 = vadd.f32 %v6723_v7, %v4117_v52  ;;  %v6201_v14 = vld [vmem:[#allocation12 + $0xf0c] ss:$16 sps:$4 sm:$0xff]  }
 0x43c   :  { %4605 = vmatpush1.bf16.msra.mxu1 %v6136_v27  ;;  %v4327_v27 = vpop.f32.mrf.mxu0  ;;  %v4113_v29 = vadd.f32 %v6711_v10, %v4070_v22  ;;  %v4203_v10 = vadd.f32 %v6733_v51, %v4160_v61  ;;  %v5395_v22 = vld.sshfl [vmem:[#allocation15] sm:$0x33 pattern:$0x75316420] }
 0x43d   :  { %4648 = vmatpush1.bf16.msra.mxu0 %v6139_v37  ;;  %4606 = vmatprep.subr.bf16.mxu1 %v6144_v28  ;;  %v4288_v37 = vpop.f32.mrf.mxu1  ;;  %v6172_v28 = vld [vmem:[#allocation12 + $0xd88] ss:$16 sps:$4 sm:$0xff]   ;;  %v4711_v52 = vcombine.high %v5395_v22, %v5395_v22 }
 0x43e   :  { %4649 = vmatprep.subr.bf16.mxu0 %v6147_v31  ;;  %v4158_v31 = vadd.f32 %v6721_v21, %v4115_v17  ;;  %v4156_v39 = vadd.f32 %v6717_v19, %v4113_v29  ;;  %v4248_v21 = vadd.f32 %v4247_v36, %v4205_v35  ;;  %v6184_v19 = vld [vmem:[#allocation12 + $0xd48] ss:$16 sps:$4 sm:$0xff]   ;;  %v6418_v17 = vmov 1966171168  }
 0x440   :  { %4607 = vmatpush1.bf16.msra.mxu1 %v6142_v23  ;;  %v6175_v23 = vld [vmem:[#allocation12 + $0xf88] ss:$16 sps:$4 sm:$0xff]   ;;  %v4199_v55 = vadd.f32 %v6725_v42, %v4156_v39  ;;  %v6195_v42 = vld [vmem:[#allocation12 + $0xf2c] ss:$16 sps:$4 sm:$0xff]  }
 0x441   :  { %4650 = vmatpush1.bf16.msra.mxu0 %v6145_v43  ;;  %4608 = vmatprep.subr.bf16.mxu1 %v6150_v24  ;;  %v6180_v43 = vld [vmem:[#allocation12 + $0xd6c] ss:$16 sps:$4 sm:$0xff]   ;;  %v4329_v24 = vpop.f32.mrf.mxu0 }
 0x442   :  { %4651 = vmatprep.subr.bf16.mxu0 %v6153_v32  ;;  %v4201_v32 = vadd.f32 %v6727_v62, %v4158_v31  ;;  %v4242_v1 = vadd.f32 %v6729_v8, %v4199_v55  ;;  %v6196_v8 = vld [vmem:[#allocation12 + $0xd08] ss:$16 sps:$4 sm:$0xff]  }
 0x443   :  { %v4331_v7 = vpop.f32.mrf.mxu0 }
 0x444   :  { %4609 = vmatpush1.bf16.msra.mxu1 %v6148_v63  ;;  %v4290_v63 = vpop.f32.mrf.mxu1  ;;  %v4244_v57 = vadd.f32 %v6737_v33, %v4201_v32  ;;  %v6190_v33 = vld [vmem:[#allocation12 + $0xd28] ss:$16 sps:$4 sm:$0xff]  }
 0x445   :  { %4652 = vmatpush1.bf16.msra.mxu0 %v6151_v13  ;;  %4610 = vmatprep.subr.bf16.mxu1 %v6156_v49  ;;  %v6178_v13 = vld [vmem:[#allocation12 + $0xd68] ss:$16 sps:$4 sm:$0xff]   ;;  %v4291_v62 = vadd.f32 %v4290_v63, %v4248_v21  ;;  %v4333_v40 = vpop.f32.mrf.mxu0 }
 0x446   :  { %4653 = vmatprep.subr.bf16.mxu0 %v6159_v53  ;;  %v6181_v49 = vld [vmem:[#allocation12 + $0xf68] ss:$16 sps:$4 sm:$0xff]   ;;  %v6186_v53 = vld [vmem:[#allocation12 + $0xd4c] ss:$16 sps:$4 sm:$0xff]   ;;  %v4287_v51 = vadd.f32 %v4286_v48, %v4244_v57 }
 0x447   :  { %v4334_v44 = vadd.f32 %v4333_v40, %v4291_v62 }
 0x448   :  { %4611 = vmatpush2.bf16.msra.mxu1 %v6154_v56  ;;  %v6189_v56 = vld [vmem:[#allocation12 + $0xf4c] ss:$16 sps:$4 sm:$0xff]   ;;  %v4330_v6 = vadd.f32 %v4329_v24, %v4287_v51 }
 0x449   :  { %4654 = vmatpush2.bf16.msra.mxu0 %v6157_v58  ;;  %4612 = vmatprep.subr.bf16.mxu1 %v6162_v59  ;;  %v4246_v58 = vadd.f32 %v4245_v41, %v4203_v10  ;;  %v6187_v59 = vld [vmem:[#allocation12 + $0xf48] ss:$16 sps:$4 sm:$0xff]   ;;  %v1427_v10 = vrot.slane %v6731_v60, %v6563_v45 }
 0x44a   :  { %4655 = vmatprep.subr.bf16.mxu0 %v6165_v3  ;;  %v6193_v41 = vld [vmem:[#allocation12 + $0xf28] ss:$16 sps:$4 sm:$0xff]   ;;  %v4681_v50 = vmax.f32 %v4330_v6, 0.0 }
 0x44b   :  { %v4289_v3 = vadd.f32 %v4288_v37, %v4246_v58  ;;  %v4693_v37 = vld [vmem:[#allocation2] sm:$0x1] }
 0x44c   :  { %4613 = vmatpush2.bf16.msra.mxu1 %v6160_v30  ;;  %v4285_v30 = vadd.f32 %v6744_v9, %v4242_v1  ;;  %4696 = vperm.xlu1 %5430, %v4693_v37  }
 0x44d   :  { %4656 = vmatpush2.bf16.msra.mxu0 %v6163_v11  ;;  %4614 = vmatprep.subr.bf16.mxu1 %v6168_v38  ;;  %v6198_v11 = vld [vmem:[#allocation12 + $0xd0c] ss:$16 sps:$4 sm:$0xff]   ;;  %v4332_v38 = vadd.f32 %v4331_v7, %v4289_v3 }
 0x44e   :  { %4657 = vmatprep.subr.bf16.mxu0 %v6171_v12  ;;  %v4685_v12 = vmax.f32 %v4334_v44, 0.0  ;;  %v4328_v16 = vadd.f32 %v4327_v27, %v4285_v30 }
 0x44f   :  { %v4684_v36 = vmax.f32 %v4332_v38, 0.0 }
 0x450   :  { %4615 = vmatpush2.bf16.msra.mxu1 %v6166_v20  ;;  %v4689_v9 = vpack.c.bf16 %v4685_v12, %v4681_v50  ;;  %v4680_v48 = vmax.f32 %v4328_v16, 0.0 }
 0x451   :  { %4658 = vmatpush2.bf16.msra.mxu0 %v6169_v15  ;;  %4616 = vmatprep.subr.bf16.mxu1 %v6174_v18  ;;  %v4713_v15 = vunpack.c.l.s4 %v6418_v17 }
 0x452   :  { %4659 = vmatprep.subr.bf16.mxu0 %v6177_v2  ;;  %v4688_v20 = vpack.c.bf16 %v4684_v36, %v4680_v48 }
 0x453   :  { %v4714_v18 = vunpack.c.0.s8 %v4713_v15 }
 0x454   :  { %4617 = vmatpush2.bf16.msra.mxu1 %v6172_v28 }
 0x455   :  { %4660 = vmatpush2.bf16.msra.mxu0 %v6175_v23  ;;  %4618 = vmatprep.subr.bf16.mxu1 %v6180_v43  ;;  %v4717_v27 = vsub.s32 %v4714_v18, %v6535_v34 }
 0x456   :  { %4661 = vmatprep.subr.bf16.mxu0 %v6183_v25 }
 0x457   :  { %v4725_v2 = vrot.slane %v4711_v52, %v4717_v27  ;;  %v6766_v26 = vrot.slane %v5395_v22, %v4717_v27 }
 0x458   :  { %4619 = vmatpush2.bf16.msra.mxu1 %v6178_v13  ;;  %v1423_v13 = vrot.slane %v6731_v60, %v6569_v47 }
 0x459   :  { %4662 = vmatpush2.bf16.msra.mxu0 %v6181_v49  ;;  %4620 = vmatprep.subr.bf16.mxu1 %v6186_v53  ;;  %v4727_v29 = vcombine.high %v4725_v2, %v4725_v2 }
 0x45a   :  { %4663 = vmatprep.subr.bf16.mxu0 %v6189_v56 }
 0x45c   :  { %4621 = vmatpush2.bf16.msra.mxu1 %v6184_v19 }
 0x45d   :  { %4664 = vmatpush2.bf16.msra.mxu0 %v6187_v59  ;;  %4622 = vmatprep.subr.bf16.mxu1 %v6192_v0 }
 0x45e   :  { %4665 = vmatprep.subr.bf16.mxu0 %v6195_v42 }
 0x460   :  { %4623 = vmatpush2.bf16.msra.mxu1 %v6190_v33 }
 0x461   :  { %4666 = vmatpush2.bf16.msra.mxu0 %v6193_v41  ;;  %4624 = vmatprep.subr.bf16.mxu1 %v6198_v11 }
 0x462   :  { %4667 = vmatprep.subr.bf16.mxu0 %v6201_v14 }
 0x464   :  { %4625 = vmatpush2.bf16.msra.mxu1 %v6196_v8 }
 0x465   :  { %4668 = vmatpush2.bf16.msra.mxu0 %v6199_v54  ;;  %4746 = vmatprep.subr.bf16.mxu1 %v4689_v9 }
 0x467   :  { %4627 = vmatmul.mubr.bf16.vlgmr.msra.gmra.mxu1 %v6633_v4  ;;  %v4370_v4 = vpop.f32.mrf.mxu1 }
 0x468   :  { %4670 = vmatmul.mubr.bf16.vlgmr.msra.gmra.mxu0 %v6635_v5  ;;  %4747 = vmatpush1.bf16.xpose.msra.mxu1 %v4688_v20  ;;  %v4413_v5 = vpop.f32.mrf.mxu0  ;;  %v4371_v55 = vadd.f32 %v4370_v4, %v1423_v13 }
 0x469   :  { %4764 = vmatprep.mubr.bf16.mxu1 %v4725_v2  ;;  %4804 = vmatprep.mubr.bf16.mxu0 %v4727_v29  ;;  %v4372_v28 = vpop.f32.mrf.mxu1 }
 0x46a   :  { %v4415_v31 = vpop.f32.mrf.mxu0  ;;  %v4373_v49 = vadd.f32 %v4372_v28, %v1427_v10  ;;  %v4414_v19 = vadd.f32 %v4413_v5, %v4371_v55 }
 0x46b   :  { %v4374_v35 = vpop.f32.mrf.mxu1 }
 0x46c   :  { %v4417_v23 = vpop.f32.mrf.mxu0  ;;  %v4375_v56 = vadd.f32 %v4374_v35, %v1423_v13  ;;  %v4416_v62 = vadd.f32 %v4415_v31, %v4373_v49 }
 0x46d   :  { %v4376_v43 = vpop.f32.mrf.mxu1 }
 0x46e   :  { %v4419_v61 = vpop.f32.mrf.mxu0  ;;  %v4377_v58 = vadd.f32 %v4376_v43, %v1427_v10  ;;  %v4418_v59 = vadd.f32 %v4417_v23, %v4375_v56 }
 0x46f   :  { %4765 = vmatmul.mubr.bf16.vlgmr.msra.gmra.mxu1 %v6766_v26 }
 0x470   :  { %v4420_v45 = vadd.f32 %v4419_v61, %v4377_v58 }
 0x4a7   :  { %v4456_v24 = vpop.f32.mrf.mxu1 }
 0x4a8   :  { %v4499_v34 = vpop.f32.mrf.mxu0  ;;  %v4457_v3 = vadd.f32 %v4456_v24, %v4414_v19 }
 0x4a9   :  { %v4458_v25 = vpop.f32.mrf.mxu1 }
 0x4aa   :  { %v4501_v32 = vpop.f32.mrf.mxu0  ;;  %v4459_v0 = vadd.f32 %v4458_v25, %v4416_v62  ;;  %v4500_v30 = vadd.f32 %v4499_v34, %v4457_v3  ;;  %v4726_v25 = vcombine.high %v6766_v26, %v6766_v26 }
 0x4ab   :  { %v4460_v39 = vpop.f32.mrf.mxu1 }
 0x4ac   :  { %v4503_v63 = vpop.f32.mrf.mxu0  ;;  %v4461_v40 = vadd.f32 %v4460_v39, %v4418_v59  ;;  %v4502_v44 = vadd.f32 %v4501_v32, %v4459_v0 }
 0x4ad   :  { %v4462_v21 = vpop.f32.mrf.mxu1 }
 0x4ae   :  { %v4505_v53 = vpop.f32.mrf.mxu0  ;;  %v4463_v47 = vadd.f32 %v4462_v21, %v4420_v45  ;;  %v4504_v33 = vadd.f32 %v4503_v63, %v4461_v40 }
 0x4b0   :  { %v4506_v38 = vadd.f32 %v4505_v53, %v4463_v47 }
 0x4c7   :  { %v4697_v13 = vpop.permute.xlu1 %4696 }
 0x4c8   :  { %v4702_v21 = vrot.slane %v4697_v13, %v6566_v46 }
 0x4e7   :  { %v4542_v7 = vpop.f32.mrf.mxu1 }
 0x4e8   :  { %v4585_v57 = vpop.f32.mrf.mxu0  ;;  %v4543_v41 = vadd.f32 %v4542_v7, %v4500_v30 }
 0x4e9   :  { %v4544_v51 = vpop.f32.mrf.mxu1 }
 0x4ea   :  { %v4587_v1 = vpop.f32.mrf.mxu0  ;;  %v4545_v6 = vadd.f32 %v4544_v51, %v4502_v44  ;;  %v4586_v36 = vadd.f32 %v4585_v57, %v4543_v41 }
 0x4eb   :  { %v4546_v42 = vpop.f32.mrf.mxu1 }
 0x4ec   :  { %v4589_v60 = vpop.f32.mrf.mxu0  ;;  %v4547_v14 = vadd.f32 %v4546_v42, %v4504_v33  ;;  %v4588_v8 = vadd.f32 %v4587_v1, %v4545_v6 }
 0x4ed   :  { %v4548_v11 = vpop.f32.mrf.mxu1 }
 0x4ee   :  { %v4591_v12 = vpop.f32.mrf.mxu0  ;;  %v4549_v50 = vadd.f32 %v4548_v11, %v4506_v38  ;;  %v4590_v48 = vadd.f32 %v4589_v60, %v4547_v14 }
 0x4f0   :  { %v4592_v22 = vadd.f32 %v4591_v12, %v4549_v50 }
 0x527   :  { %v4628_v16 = vpop.f32.mrf.mxu1 }
 0x528   :  { %v4671_v54 = vpop.f32.mrf.mxu0  ;;  %v4629_v15 = vadd.f32 %v4628_v16, %v4586_v36 }
 0x529   :  { %v4630_v9 = vpop.f32.mrf.mxu1 }
 0x52a   :  { %v4631_v20 = vadd.f32 %v4630_v9, %v4588_v8  ;;  %v4673_v17 = vpop.f32.mrf.mxu0  ;;  %v4672_v5 = vadd.f32 %v4671_v54, %v4629_v15 }
 0x52b   :  { %v4632_v18 = vpop.f32.mrf.mxu1 }
 0x52c   :  { %v4633_v52 = vadd.f32 %v4632_v18, %v4590_v48  ;;  %v4675_v27 = vpop.f32.mrf.mxu0  ;;  %v4674_v29 = vadd.f32 %v4673_v17, %v4631_v20  ;;  %v4682_v61 = vmax.f32 %v4672_v5, 0.0 }
 0x52d   :  { %v4634_v2 = vpop.f32.mrf.mxu1 }
 0x52e   :  { %v4676_v37 = vadd.f32 %v4675_v27, %v4633_v52  ;;  %v4635_v4 = vadd.f32 %v4634_v2, %v4592_v22  ;;  %v4677_v28 = vpop.f32.mrf.mxu0  ;;  %v4683_v23 = vmax.f32 %v4674_v29, 0.0 }
 0x52f   :  { %v4766_v32 = vpop.f32.mrf.mxu1 }
 0x530   :  { %v4678_v31 = vadd.f32 %v4677_v28, %v4635_v4  ;;  %v4686_v35 = vmax.f32 %v4676_v37, 0.0  ;;  %v4767_v49 = vadd.f32 %v4766_v32, %v4702_v21 }
 0x531   :  { %v4768_v39 = vpop.f32.mrf.mxu1 }
 0x532   :  { %v4687_v43 = vmax.f32 %v4678_v31, 0.0  ;;  %v4690_v34 = vpack.c.bf16 %v4686_v35, %v4682_v61 }
 0x533   :  { %v4769_v10 = vpop.f32.mrf.mxu1 }
 0x534   :  { %v4691_v24 = vpack.c.bf16 %v4687_v43, %v4683_v23 }
 0x535   :  { %v4770_v63 = vpop.f32.mrf.mxu1 }
 0x536   :  { %4786 = vmatprep.subr.bf16.mxu0 %v4691_v24 }
 0x537   :  { %4787 = vmatpush1.bf16.xpose.msra.mxu0 %v4690_v34 }
 0x53e   :  { %4805 = vmatmul.mubr.bf16.vlgmr.msra.gmra.mxu0 %v4726_v25 }
 0x5fe   :  { %v4806_v53 = vpop.f32.mrf.mxu0 }
 0x5ff   :  { %v4807_v55 = vadd.f32 %v4806_v53, %v4767_v49 }
 0x600   :  { %v4808_v7 = vpop.f32.mrf.mxu0 }
 0x601   :  { %v5396_v56 = vmul.f32 -1.442695, %v4807_v55 }
 0x602   :  { %v4809_v57 = vpop.f32.mrf.mxu0 }
 0x603   :  { %6206 = vpow2.f32 %v5396_v56 }
 0x604   :  { %v4810_v62 = vpop.f32.mrf.mxu0 }
 0x610   :  { %v6207_v58 = vpop.eup %6206 }
 0x611   :  { %v4815_v19 = vadd.f32 1.0, %v6207_v58 }
 0x613   :  { %6208 = vrcp.f32 %v4815_v19 }
 0x620   :  { %v6209_v26 = vpop.eup %6208 }
 0x621   :  { %4819 = vst.msk [vmem:[#allocation17] sm:$0x1] %vm4818_vm2, %v6209_v26 }
 0x622   :  { %6381 = shalt.err (!%p6378_p2)
}
 0x623   :  { %4829 = dma.vmem_to_hbm [thread:$0]  %s4827_s7, 16, %s6788_s9, [#allocation5]  }
 0x624   :  { %6400 = dma.done.wait [#allocation5], 16  }
 0x625   :  { %6401 = vsyncadd [#allocation5], 4294967280 }
 0x626   :  { %4833 = vsyncpa [#allocation4], 1 }
 0x627   :  { %4834 = vsyncpa [#allocation7], 1 }
 0x628   :  { %4835 = vsyncpa [#allocation10], 1 }
 0x629   :  { %4836 = vsyncpa [#allocation13], 1 }
 0x62a   :  { %4837 = vsyncpa [#allocation16], 1 }
 0x62b   :  { %4838 = vsyncpa [#allocation5], 1 }

// kernel: tpu_custom_call.1
= control target key start
LH: loop header
LB: loop body
LE: loop exit
PB: predicated region body
PF: predicated region fallthrough
CT: control target
= control target key end

     0   :  { %s6779_s0 = inlined_call_operand.hbm [shape: bf16[16,32], index: 0, kind: input, shape index: {}]   ;;  %s6780_s1 = inlined_call_operand.hbm [shape: bf16[32,32], index: 1, kind: input, shape index: {}]   ;;  %s6781_s2 = inlined_call_operand.hbm [shape: f32[1,32], index: 2, kind: input, shape index: {}]   ;;  %s6782_s3 = inlined_call_operand.hbm [shape: bf16[32,2048], index: 3, kind: input, shape index: {}]   ;;  %s6783_s4 = inlined_call_operand.hbm [shape: f32[1,2048], index: 4, kind: input, shape index: {}]   ;;  %s6784_s5 = inlined_call_operand.hbm [shape: bf16[2048,512], index: 5, kind: input, shape index: {}]   ;;  %s6785_s6 = inlined_call_operand.hbm [shape: f32[1,512], index: 6, kind: input, shape index: {}]   ;;  %s6786_s7 = inlined_call_operand.hbm [shape: bf16[1,512], index: 7, kind: input, shape index: {}]   ;;  %s6787_s8 = inlined_call_operand.<no memory space> [shape: f32[1,1], index: 8, kind: input, shape index: {}]   ;;  %s6788_s9 = inlined_call_operand.hbm [shape: f32[1,1,16], index: 9, kind: output, shape index: {}]  }
   0x1   :  { %v14_v0 = vstv %s6787_s8 }
   0x2   :  { %15 = vst [vmem:[#allocation2] sm:$0x1] %v14_v0 }
   0x3   :  { %16 = vsyncpa [#allocation4], 0 }
   0x4   :  { %17 = vsyncpa [#allocation7], 0 }
   0x5   :  { %18 = vsyncpa [#allocation10], 0 }
   0x6   :  { %19 = vsyncpa [#allocation13], 0 }
   0x7   :  { %20 = vsyncpa [#allocation16], 0 }
   0x8   :  { %21 = vsyncpa [#allocation5], 0  ;;  %s6402_s11 = smov [#allocation6]   ;;  %s6403_s13 = smov [#allocation9]  }
   0x9   :  { %s39_s12 = sshll.u32 %s6402_s11, 4  ;;  %s61_s14 = sshll.u32 %s6403_s13, 4  ;;  %s40_s12 = int_to_ptr.vmem [resolvable:$true] %s39_s12  ;;  %s62_s14 = int_to_ptr.vmem [resolvable:$true] %s61_s14 }
   0xa   :  { %s6218_s15 = scalar_lea.vmem %s40_s12, 256  ;;  %p6223_p1 = scmp.lt.s32.totalorder %s40_s12, %s40_s12 }
   0xb   :  { %p6219_p0 = scmp.ne.s32.totalorder %s40_s12, %s6218_s15  ;;  %p6224_p2 = scmp.lt.s32.totalorder %s6218_s15, %s6218_s15 }
   0xd   :  { %p6225_p3 = por %p6224_p2, %p6223_p1 }
   0xf   :  { %p6226_p4 = pnand %p6225_p3, %p6219_p0 }
  0x11   :  { %6229 = shalt.err (!%p6226_p4)
}
  0x12   :  { %s6404_s8 = smov 64   ;;  %s6405_s16 = smov 4  }
  0x13   :  { %45 = dma.hbm_to_vmem [thread:$0]  %s6780_s1, 256, %s40_s12, [#allocation7], %s6404_s8, %s6404_s8, %s6405_s16  }
  0x14   :  { %s6238_s19 = scalar_lea.vmem %s62_s14, 4096  ;;  %p6243_p6 = scmp.lt.s32.totalorder %s62_s14, %s62_s14 }
  0x15   :  { %p6239_p5 = scmp.ne.s32.totalorder %s62_s14, %s6238_s19  ;;  %p6244_p7 = scmp.lt.s32.totalorder %s6238_s19, %s6238_s19 }
  0x17   :  { %p6245_p8 = por %p6244_p7, %p6243_p6 }
  0x19   :  { %p6246_p9 = pnand %p6245_p8, %p6239_p5 }
  0x1b   :  { %6249 = shalt.err (!%p6246_p9)
}
  0x1c   :  { %s6406_s20 = smov 1024   ;;  %s6407_s23 = smov [#allocation12]  }
  0x1d   :  { %67 = dma.hbm_to_vmem [thread:$0]  %s6782_s3, 4096, %s62_s14, [#allocation10], %s6406_s20, %s6406_s20, %s6404_s8  }
  0x1e   :  { %s83_s24 = sshll.u32 %s6407_s23, 4  ;;  %s84_s24 = int_to_ptr.vmem [resolvable:$true] %s83_s24 }
  0x1f   :  { %s6258_s25 = scalar_lea.vmem %s84_s24, 65536  ;;  %p6263_p11 = scmp.lt.s32.totalorder %s84_s24, %s84_s24 }
  0x20   :  { %p6259_p10 = scmp.ne.s32.totalorder %s84_s24, %s6258_s25  ;;  %p6264_p12 = scmp.lt.s32.totalorder %s6258_s25, %s6258_s25 }
  0x22   :  { %p6265_p13 = por %p6264_p12, %p6263_p11 }
  0x24   :  { %p6266_p0 = pnand %p6265_p13, %p6259_p10 }
  0x26   :  { %6269 = shalt.err (!%p6266_p0)
}
  0x27   :  { %s6408_s1 = smov 256   ;;  %s6409_s26 = smov 16  }
  0x28   :  { %89 = dma.hbm_to_vmem [thread:$0]  %s6784_s5, 65536, %s84_s24, [#allocation13], %s6408_s1, %s6408_s1, %s6409_s26  }
  0x29   :  { %s6410_s29 = smov [#allocation3]   ;;  %s6411_s10 = smov [#allocation8]  }
  0x2a   :  { %s27_s30 = sshll.u32 %s6410_s29, 4  ;;  %s52_s3 = sshll.u32 %s6411_s10, 4  ;;  %s28_s30 = int_to_ptr.vmem [resolvable:$true] %s27_s30  ;;  %s53_s3 = int_to_ptr.vmem [resolvable:$true] %s52_s3 }
  0x2b   :  { %s6278_s11 = scalar_lea.vmem %s28_s30, 128  ;;  %p6283_p2 = scmp.lt.s32.totalorder %s28_s30, %s28_s30 }
  0x2c   :  { %p6279_p1 = scmp.ne.s32.totalorder %s28_s30, %s6278_s11  ;;  %p6284_p3 = scmp.lt.s32.totalorder %s6278_s11, %s6278_s11 }
  0x2e   :  { %p6285_p4 = por %p6284_p3, %p6283_p2 }
  0x30   :  { %p6286_p5 = pnand %p6285_p4, %p6279_p1 }
  0x32   :  { %6289 = shalt.err (!%p6286_p5)
}
  0x33   :  { %33 = dma.hbm_to_vmem [thread:$0]  %s6779_s0, 128, %s28_s30, [#allocation4], %s6404_s8, %s6404_s8, %s6405_s16  }
  0x34   :  { %s6298_s5 = scalar_lea.vmem %s53_s3, 16  ;;  %s6302_s14 = scalar_lea.vmem %s53_s3, 32 }
  0x35   :  { %p6299_p6 = scmp.ne.s32.totalorder %s53_s3, %s6298_s5  ;;  %p6303_p7 = scmp.lt.s32.totalorder %s53_s3, %s53_s3 }
  0x36   :  { %p6304_p8 = scmp.lt.s32.totalorder %s6302_s14, %s6298_s5 }
  0x38   :  { %p6305_p9 = por %p6304_p8, %p6303_p7 }
  0x3a   :  { %p6306_p10 = pnand %p6305_p9, %p6299_p6 }
  0x3c   :  { %6309 = shalt.err (!%p6306_p10)
}
  0x3d   :  { %55 = dma.hbm_to_vmem [thread:$0]  %s6781_s2, 16, %s53_s3, [#allocation7]  }
  0x3e   :  { %s6412_s18 = smov [#allocation11]   ;;  %s6413_s20 = smov [#allocation14]  }
  0x3f   :  { %s74_s19 = sshll.u32 %s6412_s18, 4  ;;  %s96_s21 = sshll.u32 %s6413_s20, 4  ;;  %s75_s19 = int_to_ptr.vmem [resolvable:$true] %s74_s19  ;;  %s97_s21 = int_to_ptr.vmem [resolvable:$true] %s96_s21 }
  0x40   :  { %s6318_s22 = scalar_lea.vmem %s75_s19, 256  ;;  %p6323_p12 = scmp.lt.s32.totalorder %s75_s19, %s75_s19 }
  0x41   :  { %p6319_p11 = scmp.ne.s32.totalorder %s75_s19, %s6318_s22  ;;  %p6324_p13 = scmp.lt.s32.totalorder %s6318_s22, %s6318_s22 }
  0x43   :  { %p6325_p0 = por %p6324_p13, %p6323_p12 }
  0x45   :  { %p6326_p1 = pnand %p6325_p0, %p6319_p11 }
  0x47   :  { %6329 = shalt.err (!%p6326_p1)
}
  0x48   :  { %77 = dma.hbm_to_vmem [thread:$0]  %s6783_s4, 256, %s75_s19, [#allocation10]  }
  0x49   :  { %s6338_s16 = scalar_lea.vmem %s97_s21, 64  ;;  %p6343_p3 = scmp.lt.s32.totalorder %s97_s21, %s97_s21 }
  0x4a   :  { %p6339_p2 = scmp.ne.s32.totalorder %s97_s21, %s6338_s16  ;;  %p6344_p4 = scmp.lt.s32.totalorder %s6338_s16, %s6338_s16 }
  0x4c   :  { %p6345_p5 = por %p6344_p4, %p6343_p3 }
  0x4e   :  { %p6346_p6 = pnand %p6345_p5, %p6339_p2 }
  0x50   :  { %6349 = shalt.err (!%p6346_p6)
}
  0x51   :  { %99 = dma.hbm_to_vmem [thread:$0]  %s6785_s6, 64, %s97_s21, [#allocation13]  }
  0x52   :  { %s6414_s24 = smov [#allocation15]  }
  0x53   :  { %s106_s25 = sshll.u32 %s6414_s24, 4  ;;  %s107_s25 = int_to_ptr.vmem [resolvable:$true] %s106_s25 }
  0x54   :  { %s6358_s1 = scalar_lea.vmem %s107_s25, 64  ;;  %p6363_p8 = scmp.lt.s32.totalorder %s107_s25, %s107_s25 }
  0x55   :  { %p6359_p7 = scmp.ne.s32.totalorder %s107_s25, %s6358_s1  ;;  %p6364_p9 = scmp.lt.s32.totalorder %s6358_s1, %s6358_s1 }
  0x57   :  { %p6365_p10 = por %p6364_p9, %p6363_p8 }
  0x59   :  { %p6366_p11 = pnand %p6365_p10, %p6359_p7 }
  0x5b   :  { %6369 = shalt.err (!%p6366_p11)
}
  0x5c   :  { %109 = dma.hbm_to_vmem [thread:$0]  %s6786_s7, 64, %s107_s25, [#allocation16]  }
  0x5d   :  { %6390 = dma.done.wait [#allocation4], 128  }
  0x5e   :  { %6391 = vsyncadd [#allocation4], 4294967168 }
  0x5f   :  { %6392 = dma.done.wait [#allocation7], 272  }
  0x60   :  { %6393 = vsyncadd [#allocation7], 4294967024 }
  0x61   :  { %6394 = dma.done.wait [#allocation10], 4352  }
  0x62   :  { %6395 = vsyncadd [#allocation10], 4294962944 }
  0x63   :  { %6396 = dma.done.wait [#allocation13], 65600  }
  0x64   :  { %6397 = vsyncadd [#allocation13], 4294901696 }
  0x65   :  { %6398 = dma.done.wait [#allocation16], 64  }
  0x66   :  { %6399 = vsyncadd [#allocation16], 4294967232  ;;  %v5398_v1 = vld [vmem:[#allocation3] sm:$0xff]   ;;  %vm143_vm0 = vcmask 261120   ;;  %v5432_v8 = vld [vmem:[#allocation6 + $0x8] sm:$0xff]   ;;  %v6415_v10 = vmov 0.0  }
  0x67   :  { %v5399_v2 = vunpack.c.l.bf16 %v5398_v1  ;;  %v5400_v3 = vunpack.c.h.bf16 %v5398_v1  ;;  %v5433_v9 = vld [vmem:[#allocation6] sm:$0xff]   ;;  %5404 = vmatprep.subr.bf16.mxu0 %v6415_v10  ;;  %vm6416_vm1 = vmmov 0   ;;  %v243_v20 = vld [vmem:[#allocation9 + $0x80] sm:$0xff]  ;;  %v246_v38 = vld [vmem:[#allocation9 + $0x98] sm:$0xff]  ;;  %v6417_v41 = vmov 0   ;;  %s6419_s6 = smov [#allocation17]  }
  0x68   :  { %5408 = vmatprep.mubr.msk.bf16.mxu0 %vm6416_vm1, %v6415_v10  ;;  %5405 = vmatpush3.bf16.msra.mxu0 %v5432_v8  ;;  %v251_v21 = vld [vmem:[#allocation9 + $0xc0] sm:$0xff]  ;;  %v244_v22 = vld [vmem:[#allocation9 + $0x88] sm:$0xff]  ;;  %v245_v36 = vld [vmem:[#allocation9 + $0x90] sm:$0xff]  ;;  %s4826_s7 = sshll.u32 %s6419_s6, 4  ;;  %vm4818_vm2 = vcmask 122880   ;;  %s4827_s7 = int_to_ptr.vmem [resolvable:$true] %s4826_s7 }
  0x69   :  { %v141_v4 = vmul.f32 %v5399_v2, %v5399_v2  ;;  %v142_v5 = vmul.f32 %v5400_v3, %v5400_v3  ;;  %5406 = vmatprep.subr.bf16.mxu0 %v6415_v10  ;;  %v4860_v23 = vcombine.high %v243_v20, %v251_v21  ;;  %v252_v24 = vld [vmem:[#allocation9 + $0xc8] sm:$0xff]  ;;  %v4859_v27 = vcombine.low %v243_v20, %v251_v21  ;;  %v227_v28 = vld [vmem:[#allocation9] sm:$0xff]  ;;  %v253_v37 = vld [vmem:[#allocation9 + $0xd0] sm:$0xff]  ;;  %s6370_s27 = scalar_lea.vmem %s4827_s7, 16  ;;  %s6374_s28 = scalar_lea.vmem %s4827_s7, 32 }
  0x6a   :  { %v4861_v25 = vcombine.low %v244_v22, %v252_v24  ;;  %v4862_v26 = vcombine.high %v244_v22, %v252_v24  ;;  %v235_v29 = vld [vmem:[#allocation9 + $0x40] sm:$0xff]  ;;  %v228_v30 = vld [vmem:[#allocation9 + $0x8] sm:$0xff]  ;;  %v4864_v39 = vcombine.high %v245_v36, %v253_v37  ;;  %v254_v40 = vld [vmem:[#allocation9 + $0xd8] sm:$0xff]  ;;  %538 = vmatprep.mubr.bf16.mxu1 %v6417_v41  ;;  %v4863_v42 = vcombine.low %v245_v36, %v253_v37  ;;  %p6371_p12 = scmp.ne.s32.totalorder %s4827_s7, %s6370_s27  ;;  %p6375_p13 = scmp.lt.s32.totalorder %s4827_s7, %s4827_s7 }
  0x6b   :  { %v144_v6 = vsel %vm143_vm0, %v141_v4, 0.0  ;;  %v147_v7 = vsel %vm143_vm0, %v142_v5, 0.0  ;;  %518 = vmatprep.subr.bf16.mxu1 %v4860_v23  ;;  %v4844_v31 = vcombine.high %v227_v28, %v235_v29  ;;  %v236_v32 = vld [vmem:[#allocation9 + $0x48] sm:$0xff]  ;;  %v4843_v35 = vcombine.low %v227_v28, %v235_v29  ;;  %5430 = vset.pattern.permute.xlu1 %v6417_v41  ;;  %v4839_v45 = vld [vmem:[#allocation8] ss:$0 sm:$0xff]  ;;  %v229_v51 = vld [vmem:[#allocation9 + $0x10] sm:$0xff]  ;;  %p6376_p0 = scmp.lt.s32.totalorder %s6374_s28, %s6370_s27 }
  0x6c   :  { %145 = vadd.xlane.f32.xlu0 %v144_v6  ;;  %5407 = vmatpush3.bf16.msra.mxu0 %v5433_v9  ;;  %v4845_v33 = vcombine.low %v228_v30, %v236_v32  ;;  %v4846_v34 = vcombine.high %v228_v30, %v236_v32  ;;  %v4865_v43 = vcombine.low %v246_v38, %v254_v40  ;;  %v237_v53 = vld [vmem:[#allocation9 + $0x50] sm:$0xff]  ;;  %v230_v54 = vld [vmem:[#allocation9 + $0x18] sm:$0xff]  ;;  %v247_v61 = vld [vmem:[#allocation9 + $0xa0] sm:$0xff] }
  0x6d   :  { %561 = vmatprep.subr.bf16.mxu0 %v4862_v26  ;;  %519 = vmatpush1.bf16.msra.mxu1 %v4859_v27  ;;  %v4866_v44 = vcombine.high %v246_v38, %v254_v40  ;;  %v238_v55 = vld [vmem:[#allocation9 + $0x58] sm:$0xff]  ;;  %v4848_v59 = vcombine.high %v229_v51, %v237_v53  ;;  %v255_v62 = vld [vmem:[#allocation9 + $0xe0] sm:$0xff]  ;;  %v248_v63 = vld [vmem:[#allocation9 + $0xa8] sm:$0xff]  ;;  %v4847_v1 = vcombine.low %v229_v51, %v237_v53  ;;  %p6377_p1 = por %p6376_p0, %p6375_p13 }
  0x6e   :  { %520 = vmatprep.subr.bf16.mxu1 %v4844_v31  ;;  %5431 = vset.pattern.permute.xlu0 %v6417_v41  ;;  %v4850_v60 = vcombine.high %v230_v54, %v238_v55  ;;  %v256_v0 = vld [vmem:[#allocation9 + $0xe8] sm:$0xff]  ;;  %v231_v5 = vld [vmem:[#allocation9 + $0x20] sm:$0xff]  ;;  %v4867_v9 = vcombine.low %v247_v61, %v255_v62  ;;  %v233_v21 = vld [vmem:[#allocation9 + $0x30] sm:$0xff] }
  0x6f   :  { %v4870_v4 = vcombine.high %v248_v63, %v256_v0  ;;  %v239_v6 = vld [vmem:[#allocation9 + $0x60] sm:$0xff]  ;;  %v240_v8 = vld [vmem:[#allocation9 + $0x68] sm:$0xff]  ;;  %v4869_v10 = vcombine.low %v248_v63, %v256_v0  ;;  %v241_v22 = vld [vmem:[#allocation9 + $0x70] sm:$0xff]  ;;  %p6378_p2 = pnand %p6377_p1, %p6371_p12 }
  0x70   :  { %148 = vadd.xlane.f32.xlu0 %v147_v7  ;;  %v232_v7 = vld [vmem:[#allocation9 + $0x28] sm:$0xff]  ;;  %v234_v23 = vld [vmem:[#allocation9 + $0x38] sm:$0xff]  ;;  %v4856_v27 = vcombine.high %v233_v21, %v241_v22  ;;  %v4855_v29 = vcombine.low %v233_v21, %v241_v22  ;;  %v5436_v31 = vld [vmem:[#allocation12 + $0xe4] ss:$16 sps:$4 sm:$0xff]  }
  0x71   :  { %521 = vmatpush1.bf16.msra.mxu1 %v4843_v35  ;;  %v242_v24 = vld [vmem:[#allocation9 + $0x78] sm:$0xff]  ;;  %v5439_v32 = vld [vmem:[#allocation12 + $0x2e4] ss:$16 sps:$4 sm:$0xff]   ;;  %v5440_v37 = vld [vmem:[#allocation12 + $0xc0] ss:$16 sps:$4 sm:$0xff]  }
  0x72   :  { %604 = vmatprep.subr.bf16.mxu1 %v4864_v39  ;;  %v4858_v28 = vcombine.high %v234_v23, %v242_v24  ;;  %v4857_v30 = vcombine.low %v234_v23, %v242_v24  ;;  %v5442_v35 = vld [vmem:[#allocation12 + $0xc4] ss:$16 sps:$4 sm:$0xff]   ;;  %v5443_v38 = vld [vmem:[#allocation12 + $0x2c0] ss:$16 sps:$4 sm:$0xff]  }
  0x73   :  { %v5445_v36 = vld [vmem:[#allocation12 + $0x2c4] ss:$16 sps:$4 sm:$0xff]   ;;  %v5464_v53 = vld [vmem:[#allocation12 + $0x40] ss:$16 sps:$4 sm:$0xff]  }
  0x74   :  { %v5448_v39 = vld [vmem:[#allocation12 + $0xa4] ss:$16 sps:$4 sm:$0xff]   ;;  %v5512_v21 = vld [vmem:[#allocation12 + $0x140] ss:$16 sps:$4 sm:$0xff]  }
  0x75   :  { %v5451_v40 = vld [vmem:[#allocation12 + $0x2a4] ss:$16 sps:$4 sm:$0xff]   ;;  %v5515_v22 = vld [vmem:[#allocation12 + $0x340] ss:$16 sps:$4 sm:$0xff]  }
  0x76   :  { %v5466_v51 = vld [vmem:[#allocation12 + $0x44] ss:$16 sps:$4 sm:$0xff]  }
  0x77   :  { %v5484_v63 = vld [vmem:[#allocation12 + $0x1e4] ss:$16 sps:$4 sm:$0xff]  }
  0x78   :  { %v5487_v0 = vld [vmem:[#allocation12 + $0x3e4] ss:$16 sps:$4 sm:$0xff]  }
  0x79   :  { %v5520_v23 = vld [vmem:[#allocation12 + $0x124] ss:$16 sps:$4 sm:$0xff]  }
  0x7a   :  { %v5523_v24 = vld [vmem:[#allocation12 + $0x324] ss:$16 sps:$4 sm:$0xff]  }
  0xf5   :  { %v146_v11 = vpop.xlane.xlu0 %145 }
  0xf6   :  { %v150_v12 = vmax.f32 %v146_v11, 1e-24  ;;  %v4852_v11 = vcombine.high %v231_v5, %v239_v6 }
  0xf8   :  { %6202 = vrsqrt.f32 %v150_v12  ;;  %v4854_v12 = vcombine.high %v232_v7, %v240_v8 }
  0xf9   :  { %v149_v13 = vpop.xlane.xlu0 %148 }
  0xfa   :  { %v151_v14 = vmax.f32 %v149_v13, 1e-24  ;;  %v249_v13 = vld [vmem:[#allocation9 + $0xb0] sm:$0xff] }
  0xfc   :  { %6204 = vrsqrt.f32 %v151_v14  ;;  %v257_v14 = vld [vmem:[#allocation9 + $0xf0] sm:$0xff] }
 0x105   :  { %v6203_v15 = vpop.eup %6202 }
 0x106   :  { %v154_v17 = vmul.f32 %v6203_v15, %v5399_v2  ;;  %v4849_v2 = vcombine.low %v230_v54, %v238_v55  ;;  %v250_v15 = vld [vmem:[#allocation9 + $0xb8] sm:$0xff]  ;;  %v5467_v54 = vld [vmem:[#allocation12 + $0x240] ss:$16 sps:$4 sm:$0xff]   ;;  %v5472_v55 = vld [vmem:[#allocation12 + $0x24] ss:$16 sps:$4 sm:$0xff]  }
 0x109   :  { %v6205_v16 = vpop.eup %6204 }
 0x10a   :  { %v155_v18 = vmul.f32 %v6205_v16, %v5400_v3  ;;  %v4868_v3 = vcombine.high %v247_v61, %v255_v62  ;;  %v258_v16 = vld [vmem:[#allocation9 + $0xf8] sm:$0xff]  ;;  %v5476_v61 = vld [vmem:[#allocation12] ss:$16 sps:$4 sm:$0xff]  }
 0x10b   :  { %v4874_v20 = vcombine.high %v250_v15, %v258_v16  ;;  %v4873_v26 = vcombine.low %v250_v15, %v258_v16  ;;  %v5479_v62 = vld [vmem:[#allocation12 + $0x200] ss:$16 sps:$4 sm:$0xff]   ;;  %v5508_v15 = vld [vmem:[#allocation12 + $0x164] ss:$16 sps:$4 sm:$0xff]  }
 0x10c   :  { %v156_v19 = vpack.c.bf16 %v155_v18, %v154_v17  ;;  %v4851_v17 = vcombine.low %v231_v5, %v239_v6  ;;  %v4853_v18 = vcombine.low %v232_v7, %v240_v8  ;;  %v5488_v5 = vld [vmem:[#allocation12 + $0x1c0] ss:$16 sps:$4 sm:$0xff]   ;;  %v5496_v7 = vld [vmem:[#allocation12 + $0x1a4] ss:$16 sps:$4 sm:$0xff]  }
 0x10d   :  { %v5491_v6 = vld [vmem:[#allocation12 + $0x3c0] ss:$16 sps:$4 sm:$0xff]   ;;  %v5499_v8 = vld [vmem:[#allocation12 + $0x3a4] ss:$16 sps:$4 sm:$0xff]  }
 0x10e   :  { %5409 = vmatmul.mubr.msk.bf16.vlgmr.msra.gmra.mxu0 %vm143_vm0, %v156_v19  ;;  %v4872_v19 = vcombine.high %v249_v13, %v257_v14  ;;  %v5511_v16 = vld [vmem:[#allocation12 + $0x364] ss:$16 sps:$4 sm:$0xff]  }
 0x10f   :  { %562 = vmatpush1.bf16.msra.mxu0 %v4861_v25  ;;  %581 = vmatprep.mubr.bf16.mxu0 %v6417_v41  ;;  %v4871_v25 = vcombine.low %v249_v13, %v257_v14  ;;  %v5500_v13 = vld [vmem:[#allocation12 + $0x180] ss:$16 sps:$4 sm:$0xff]  }
 0x110   :  { %563 = vmatprep.subr.bf16.mxu0 %v4846_v34  ;;  %v5437_v34 = vld [vmem:[#allocation12 + $0x2e0] ss:$16 sps:$4 sm:$0xff]  }
 0x111   :  { %v5503_v14 = vld [vmem:[#allocation12 + $0x380] ss:$16 sps:$4 sm:$0xff]  }
 0x113   :  { %564 = vmatpush1.bf16.msra.mxu0 %v4845_v33  ;;  %v5434_v33 = vld [vmem:[#allocation12 + $0xe0] ss:$16 sps:$4 sm:$0xff]  }
 0x114   :  { %647 = vmatprep.subr.bf16.mxu0 %v4866_v44  ;;  %v5457_v44 = vld [vmem:[#allocation12 + $0x284] ss:$16 sps:$4 sm:$0xff]  }
 0x1ce   :  { %v217_v46 = vpop.f32.mrf.mxu0 }
 0x1cf   :  { %v218_v48 = vadd.f32 %v4839_v45, %v217_v46  ;;  %v5455_v46 = vld [vmem:[#allocation12 + $0x280] ss:$16 sps:$4 sm:$0xff]  }
 0x1d0   :  { %v5410_v47 = vpop.f32.mrf.mxu0 }
 0x1d1   :  { %v224_v56 = vmax.f32 %v218_v48, 0.0  ;;  %v5460_v47 = vld [vmem:[#allocation12 + $0x64] ss:$16 sps:$4 sm:$0xff]  }
 0x1d2   :  { %v220_v49 = vpop.f32.mrf.mxu0  ;;  %v5463_v48 = vld [vmem:[#allocation12 + $0x264] ss:$16 sps:$4 sm:$0xff]  }
 0x1d3   :  { %v221_v50 = vadd.f32 %v4839_v45, %v220_v49  ;;  %v5452_v45 = vld [vmem:[#allocation12 + $0x80] ss:$16 sps:$4 sm:$0xff]  }
 0x1d4   :  { %v5411_v52 = vpop.f32.mrf.mxu0  ;;  %v5458_v49 = vld [vmem:[#allocation12 + $0x60] ss:$16 sps:$4 sm:$0xff]  }
 0x1d5   :  { %v225_v57 = vmax.f32 %v221_v50, 0.0  ;;  %v5461_v50 = vld [vmem:[#allocation12 + $0x260] ss:$16 sps:$4 sm:$0xff]   ;;  %v5469_v52 = vld [vmem:[#allocation12 + $0x244] ss:$16 sps:$4 sm:$0xff]  }
 0x1d7   :  { %v6511_v58 = vpack.c.bf16 %v225_v57, %v224_v56  ;;  %v5475_v56 = vld [vmem:[#allocation12 + $0x224] ss:$16 sps:$4 sm:$0xff]   ;;  %v5470_v57 = vld [vmem:[#allocation12 + $0x20] ss:$16 sps:$4 sm:$0xff]  }
 0x1d9   :  { %4875 = vmatmul.mubr.msk.bf16.vlgmr.msra.gmra.mxu1 %vm143_vm0, %v6511_v58  ;;  %4876 = vmatmul.mubr.msk.bf16.vlgmr.msra.gmra.mxu0 %vm143_vm0, %v6511_v58 }
 0x1da   :  { %605 = vmatpush1.bf16.msra.mxu1 %v4863_v42  ;;  %648 = vmatpush1.bf16.msra.mxu0 %v4865_v43  ;;  %v5449_v42 = vld [vmem:[#allocation12 + $0x2a0] ss:$16 sps:$4 sm:$0xff]   ;;  %v5454_v43 = vld [vmem:[#allocation12 + $0x84] ss:$16 sps:$4 sm:$0xff]  }
 0x1db   :  { %606 = vmatprep.subr.bf16.mxu1 %v4848_v59  ;;  %649 = vmatprep.subr.bf16.mxu0 %v4850_v60  ;;  %v5478_v59 = vld [vmem:[#allocation12 + $0x4] ss:$16 sps:$4 sm:$0xff]  }
 0x1dc   :  { %624 = vmatprep.mubr.bf16.mxu1 %v6417_v41  ;;  %667 = vmatprep.mubr.bf16.mxu0 %v6417_v41  ;;  %v5481_v60 = vld [vmem:[#allocation12 + $0x204] ss:$16 sps:$4 sm:$0xff]  }
 0x1de   :  { %607 = vmatpush1.bf16.msra.mxu1 %v4847_v1  ;;  %650 = vmatpush1.bf16.msra.mxu0 %v4849_v2  ;;  %v5482_v1 = vld [vmem:[#allocation12 + $0x1e0] ss:$16 sps:$4 sm:$0xff]  }
 0x1df   :  { %690 = vmatprep.subr.bf16.mxu1 %v4868_v3  ;;  %733 = vmatprep.subr.bf16.mxu0 %v4870_v4  ;;  %v5485_v2 = vld [vmem:[#allocation12 + $0x3e0] ss:$16 sps:$4 sm:$0xff]   ;;  %v5490_v3 = vld [vmem:[#allocation12 + $0x1c4] ss:$16 sps:$4 sm:$0xff]  }
 0x1e0   :  { %v5493_v4 = vld [vmem:[#allocation12 + $0x3c4] ss:$16 sps:$4 sm:$0xff]  }
 0x1e1   :  { %4877 = vmatmul.mubr.msk.bf16.vlgmr.msra.gmra.mxu1 %vm143_vm0, %v6511_v58  ;;  %4878 = vmatmul.mubr.msk.bf16.vlgmr.msra.gmra.mxu0 %vm143_vm0, %v6511_v58 }
 0x1e2   :  { %691 = vmatpush1.bf16.msra.mxu1 %v4867_v9  ;;  %734 = vmatpush1.bf16.msra.mxu0 %v4869_v10  ;;  %v5494_v9 = vld [vmem:[#allocation12 + $0x1a0] ss:$16 sps:$4 sm:$0xff]  }
 0x1e3   :  { %692 = vmatprep.subr.bf16.mxu1 %v4852_v11  ;;  %735 = vmatprep.subr.bf16.mxu0 %v4854_v12  ;;  %v5497_v10 = vld [vmem:[#allocation12 + $0x3a0] ss:$16 sps:$4 sm:$0xff]   ;;  %v5502_v11 = vld [vmem:[#allocation12 + $0x184] ss:$16 sps:$4 sm:$0xff]  }
 0x1e4   :  { %710 = vmatprep.mubr.bf16.mxu1 %v6417_v41  ;;  %753 = vmatprep.mubr.bf16.mxu0 %v6417_v41  ;;  %v5505_v12 = vld [vmem:[#allocation12 + $0x384] ss:$16 sps:$4 sm:$0xff]  }
 0x1e6   :  { %693 = vmatpush1.bf16.msra.mxu1 %v4851_v17  ;;  %736 = vmatpush1.bf16.msra.mxu0 %v4853_v18  ;;  %v5506_v17 = vld [vmem:[#allocation12 + $0x160] ss:$16 sps:$4 sm:$0xff]  }
 0x1e7   :  { %776 = vmatprep.subr.bf16.mxu1 %v4872_v19  ;;  %819 = vmatprep.subr.bf16.mxu0 %v4874_v20  ;;  %v5509_v18 = vld [vmem:[#allocation12 + $0x360] ss:$16 sps:$4 sm:$0xff]   ;;  %v5514_v19 = vld [vmem:[#allocation12 + $0x144] ss:$16 sps:$4 sm:$0xff]  }
 0x1e8   :  { %v5517_v20 = vld [vmem:[#allocation12 + $0x344] ss:$16 sps:$4 sm:$0xff]  }
 0x1e9   :  { %4879 = vmatmul.mubr.msk.bf16.vlgmr.msra.gmra.mxu1 %vm143_vm0, %v6511_v58  ;;  %4880 = vmatmul.mubr.msk.bf16.vlgmr.msra.gmra.mxu0 %vm143_vm0, %v6511_v58 }
 0x1ea   :  { %777 = vmatpush1.bf16.msra.mxu1 %v4871_v25  ;;  %820 = vmatpush1.bf16.msra.mxu0 %v4873_v26  ;;  %v5518_v25 = vld [vmem:[#allocation12 + $0x120] ss:$16 sps:$4 sm:$0xff]  }
 0x1eb   :  { %778 = vmatprep.subr.bf16.mxu1 %v4856_v27  ;;  %821 = vmatprep.subr.bf16.mxu0 %v4858_v28  ;;  %v5521_v26 = vld [vmem:[#allocation12 + $0x320] ss:$16 sps:$4 sm:$0xff]   ;;  %v5526_v27 = vld [vmem:[#allocation12 + $0x104] ss:$16 sps:$4 sm:$0xff]  }
 0x1ec   :  { %796 = vmatprep.mubr.bf16.mxu1 %v6417_v41  ;;  %839 = vmatprep.mubr.bf16.mxu0 %v6417_v41  ;;  %v5446_v41 = vld [vmem:[#allocation12 + $0xa0] ss:$16 sps:$4 sm:$0xff]   ;;  %v5529_v28 = vld [vmem:[#allocation12 + $0x304] ss:$16 sps:$4 sm:$0xff]  }
 0x1ee   :  { %779 = vmatpush1.bf16.msra.mxu1 %v4855_v29  ;;  %822 = vmatpush1.bf16.msra.mxu0 %v4857_v30  ;;  %v263_v29 = vlaneseq  ;;  %v5524_v30 = vld [vmem:[#allocation12 + $0x100] ss:$16 sps:$4 sm:$0xff]  }
 0x1ef   :  { %3992 = vmatprep.subr.bf16.mxu1 %v5436_v31  ;;  %4035 = vmatprep.subr.bf16.mxu0 %v5439_v32  ;;  %v5527_v31 = vld [vmem:[#allocation12 + $0x300] ss:$16 sps:$4 sm:$0xff]   ;;  %v5532_v32 = vld [vmem:[#allocation12 + $0x4e4] ss:$16 sps:$4 sm:$0xff]  }
 0x1f1   :  { %4881 = vmatmul.mubr.msk.bf16.vlgmr.msra.gmra.mxu1 %vm143_vm0, %v6511_v58  ;;  %4882 = vmatmul.mubr.msk.bf16.vlgmr.msra.gmra.mxu0 %vm143_vm0, %v6511_v58  ;;  %v5473_v58 = vld [vmem:[#allocation12 + $0x220] ss:$16 sps:$4 sm:$0xff]  }
 0x1f2   :  { %3993 = vmatpush1.bf16.msra.mxu1 %v5434_v33  ;;  %4036 = vmatpush1.bf16.msra.mxu0 %v5437_v34  ;;  %v5535_v33 = vld [vmem:[#allocation12 + $0x6e4] ss:$16 sps:$4 sm:$0xff]   ;;  %v6535_v34 = vshrl.u32 %v263_v29, 7 }
 0x1f3   :  { %3994 = vmatprep.subr.bf16.mxu1 %v5442_v35  ;;  %4037 = vmatprep.subr.bf16.mxu0 %v5445_v36 }
 0x1f4   :  { %v281_v35 = vsub.s32 4, %v6535_v34  ;;  %v289_v36 = vsub.s32 6, %v6535_v34 }
 0x1f6   :  { %3995 = vmatpush1.bf16.msra.mxu1 %v5440_v37  ;;  %4038 = vmatpush1.bf16.msra.mxu0 %v5443_v38  ;;  %v6539_v37 = vld [vmem:[#allocation11 + $0x8] sm:$0xff]  ;;  %v285_v38 = vsub.s32 5, %v6535_v34 }
 0x1f7   :  { %3996 = vmatprep.subr.bf16.mxu1 %v5448_v39  ;;  %4039 = vmatprep.subr.bf16.mxu0 %v5451_v40  ;;  %v293_v39 = vsub.s32 7, %v6535_v34  ;;  %v6546_v40 = vrot.slane %v6539_v37, %v281_v35 }
 0x1fa   :  { %3997 = vmatpush1.bf16.msra.mxu1 %v5446_v41  ;;  %4040 = vmatpush1.bf16.msra.mxu0 %v5449_v42  ;;  %v6551_v41 = vrot.slane %v6539_v37, %v289_v36  ;;  %v6554_v42 = vrot.slane %v6539_v37, %v285_v38 }
 0x1fb   :  { %3998 = vmatprep.subr.bf16.mxu1 %v5454_v43  ;;  %4041 = vmatprep.subr.bf16.mxu0 %v5457_v44  ;;  %v6557_v43 = vrot.slane %v6539_v37, %v293_v39  ;;  %v6560_v44 = vsub.s32 1, %v6535_v34 }
 0x1fe   :  { %3999 = vmatpush1.bf16.msra.mxu1 %v5452_v45  ;;  %4042 = vmatpush1.bf16.msra.mxu0 %v5455_v46  ;;  %v6563_v45 = vsub.s32 3, %v6535_v34  ;;  %v6566_v46 = vsub.s32 0, %v6535_v34 }
 0x1ff   :  { %4000 = vmatprep.subr.bf16.mxu1 %v5460_v47  ;;  %4043 = vmatprep.subr.bf16.mxu0 %v5463_v48  ;;  %v6569_v47 = vsub.s32 2, %v6535_v34  ;;  %v6571_v48 = vld [vmem:[#allocation11] sm:$0xff] }
 0x202   :  { %4001 = vmatpush1.bf16.msra.mxu1 %v5458_v49  ;;  %4044 = vmatpush1.bf16.msra.mxu0 %v5461_v50 }
 0x203   :  { %4002 = vmatprep.subr.bf16.mxu1 %v5466_v51  ;;  %4045 = vmatprep.subr.bf16.mxu0 %v5469_v52  ;;  %v270_v51 = vrot.slane %v6571_v48, %v6560_v44  ;;  %v278_v52 = vrot.slane %v6571_v48, %v6563_v45 }
 0x206   :  { %4003 = vmatpush1.bf16.msra.mxu1 %v5464_v53  ;;  %4046 = vmatpush1.bf16.msra.mxu0 %v5467_v54  ;;  %v266_v53 = vrot.slane %v6571_v48, %v6566_v46  ;;  %v274_v54 = vrot.slane %v6571_v48, %v6569_v47 }
 0x207   :  { %4004 = vmatprep.subr.bf16.mxu1 %v5472_v55  ;;  %4047 = vmatprep.subr.bf16.mxu0 %v5475_v56 }
 0x20a   :  { %4005 = vmatpush1.bf16.msra.mxu1 %v5470_v57  ;;  %4048 = vmatpush1.bf16.msra.mxu0 %v5473_v58 }
 0x20b   :  { %4006 = vmatprep.subr.bf16.mxu1 %v5478_v59  ;;  %4049 = vmatprep.subr.bf16.mxu0 %v5481_v60 }
 0x20e   :  { %4007 = vmatpush1.bf16.msra.mxu1 %v5476_v61  ;;  %4050 = vmatpush1.bf16.msra.mxu0 %v5479_v62 }
 0x20f   :  { %4008 = vmatprep.subr.bf16.mxu1 %v5484_v63  ;;  %4051 = vmatprep.subr.bf16.mxu0 %v5487_v0 }
 0x212   :  { %4009 = vmatpush2.bf16.msra.mxu1 %v5482_v1  ;;  %4052 = vmatpush2.bf16.msra.mxu0 %v5485_v2 }
 0x213   :  { %4010 = vmatprep.subr.bf16.mxu1 %v5490_v3  ;;  %4053 = vmatprep.subr.bf16.mxu0 %v5493_v4 }
 0x216   :  { %4011 = vmatpush2.bf16.msra.mxu1 %v5488_v5  ;;  %4054 = vmatpush2.bf16.msra.mxu0 %v5491_v6 }
 0x217   :  { %4012 = vmatprep.subr.bf16.mxu1 %v5496_v7  ;;  %4055 = vmatprep.subr.bf16.mxu0 %v5499_v8 }
 0x21a   :  { %4013 = vmatpush2.bf16.msra.mxu1 %v5494_v9  ;;  %4056 = vmatpush2.bf16.msra.mxu0 %v5497_v10  ;;  %v286_v9 = vrot.slane %v6571_v48, %v285_v38  ;;  %v294_v10 = vrot.slane %v6571_v48, %v293_v39 }
 0x21b   :  { %4014 = vmatprep.subr.bf16.mxu1 %v5502_v11  ;;  %4057 = vmatprep.subr.bf16.mxu0 %v5505_v12 }
 0x21e   :  { %4015 = vmatpush2.bf16.msra.mxu1 %v5500_v13  ;;  %4058 = vmatpush2.bf16.msra.mxu0 %v5503_v14 }
 0x21f   :  { %4016 = vmatprep.subr.bf16.mxu1 %v5508_v15  ;;  %4059 = vmatprep.subr.bf16.mxu0 %v5511_v16 }
 0x222   :  { %4017 = vmatpush2.bf16.msra.mxu1 %v5506_v17  ;;  %4060 = vmatpush2.bf16.msra.mxu0 %v5509_v18 }
 0x223   :  { %4018 = vmatprep.subr.bf16.mxu1 %v5514_v19  ;;  %4061 = vmatprep.subr.bf16.mxu0 %v5517_v20 }
 0x226   :  { %4019 = vmatpush2.bf16.msra.mxu1 %v5512_v21  ;;  %4062 = vmatpush2.bf16.msra.mxu0 %v5515_v22  ;;  %v5530_v21 = vld [vmem:[#allocation12 + $0x4e0] ss:$16 sps:$4 sm:$0xff]  }
 0x227   :  { %4020 = vmatprep.subr.bf16.mxu1 %v5520_v23  ;;  %4063 = vmatprep.subr.bf16.mxu0 %v5523_v24  ;;  %v5533_v22 = vld [vmem:[#allocation12 + $0x6e0] ss:$16 sps:$4 sm:$0xff]  }
 0x22a   :  { %4021 = vmatpush2.bf16.msra.mxu1 %v5518_v25  ;;  %4064 = vmatpush2.bf16.msra.mxu0 %v5521_v26 }
 0x22b   :  { %4022 = vmatprep.subr.bf16.mxu1 %v5526_v27  ;;  %4065 = vmatprep.subr.bf16.mxu0 %v5529_v28  ;;  %v5538_v27 = vld [vmem:[#allocation12 + $0x4c4] ss:$16 sps:$4 sm:$0xff]  }
 0x22c   :  { %v5541_v28 = vld [vmem:[#allocation12 + $0x6c4] ss:$16 sps:$4 sm:$0xff]  }
 0x22e   :  { %4023 = vmatpush2.bf16.msra.mxu1 %v5524_v30  ;;  %4066 = vmatpush2.bf16.msra.mxu0 %v5527_v31 }
 0x22f   :  { %4078 = vmatprep.subr.bf16.mxu1 %v5532_v32  ;;  %4121 = vmatprep.subr.bf16.mxu0 %v5535_v33  ;;  %v298_v33 = vrot.slane %v6539_v37, %v6566_v46 }
 0x299   :  { %v540_v49 = vpop.f32.mrf.mxu1  ;;  %v583_v50 = vpop.f32.mrf.mxu0 }
 0x29a   :  { %v541_v63 = vadd.f32 %v540_v49, %v266_v53  ;;  %v584_v0 = vadd.f32 %v583_v50, %v274_v54  ;;  %v306_v49 = vrot.slane %v6539_v37, %v6569_v47  ;;  %v5536_v50 = vld [vmem:[#allocation12 + $0x4c0] ss:$16 sps:$4 sm:$0xff]  }
 0x29b   :  { %v542_v55 = vpop.f32.mrf.mxu1  ;;  %v585_v56 = vpop.f32.mrf.mxu0 }
 0x29c   :  { %v543_v59 = vadd.f32 %v542_v55, %v270_v51  ;;  %v586_v60 = vadd.f32 %v585_v56, %v278_v52  ;;  %v850_v15 = vmax.f32 %v541_v63, 0.0  ;;  %v852_v16 = vmax.f32 %v584_v0, 0.0 }
 0x29d   :  { %v544_v57 = vpop.f32.mrf.mxu1  ;;  %v587_v58 = vpop.f32.mrf.mxu0 }
 0x29e   :  { %v545_v61 = vadd.f32 %v544_v57, %v266_v53  ;;  %v588_v62 = vadd.f32 %v587_v58, %v274_v54  ;;  %v851_v11 = vmax.f32 %v543_v59, 0.0  ;;  %v853_v12 = vmax.f32 %v586_v60, 0.0  ;;  %v5539_v53 = vld [vmem:[#allocation12 + $0x6c0] ss:$16 sps:$4 sm:$0xff]   ;;  %v5544_v54 = vld [vmem:[#allocation12 + $0x4a4] ss:$16 sps:$4 sm:$0xff]  }
 0x29f   :  { %v546_v1 = vpop.f32.mrf.mxu1  ;;  %v589_v2 = vpop.f32.mrf.mxu0  ;;  %v5547_v59 = vld [vmem:[#allocation12 + $0x6a4] ss:$16 sps:$4 sm:$0xff]  }
 0x2a0   :  { %v547_v3 = vadd.f32 %v546_v1, %v270_v51  ;;  %v590_v4 = vadd.f32 %v589_v2, %v278_v52  ;;  %v866_v5 = vmax.f32 %v545_v61, 0.0  ;;  %v868_v6 = vmax.f32 %v588_v62, 0.0  ;;  %v5542_v2 = vld [vmem:[#allocation12 + $0x4a0] ss:$16 sps:$4 sm:$0xff]  }
 0x2a1   :  { %v6581_v7 = vpop.f32.mrf.mxu1  ;;  %v6583_v8 = vpop.f32.mrf.mxu0 }
 0x2a2   :  { %v867_v13 = vmax.f32 %v547_v3, 0.0  ;;  %v869_v14 = vmax.f32 %v590_v4, 0.0  ;;  %v6591_v23 = vpack.c.bf16 %v866_v5, %v850_v15  ;;  %v6593_v24 = vpack.c.bf16 %v868_v6, %v852_v16  ;;  %v5545_v5 = vld [vmem:[#allocation12 + $0x6a0] ss:$16 sps:$4 sm:$0xff]   ;;  %v5550_v6 = vld [vmem:[#allocation12 + $0x484] ss:$16 sps:$4 sm:$0xff]  }
 0x2a3   :  { %v628_v17 = vpop.f32.mrf.mxu1  ;;  %v671_v18 = vpop.f32.mrf.mxu0 }
 0x2a4   :  { %v6587_v19 = vpack.c.bf16 %v867_v13, %v851_v11  ;;  %v6589_v20 = vpack.c.bf16 %v869_v14, %v853_v12  ;;  %v629_v29 = vadd.f32 %v628_v17, %v286_v9  ;;  %v672_v30 = vadd.f32 %v671_v18, %v294_v10  ;;  %v5553_v11 = vld [vmem:[#allocation12 + $0x684] ss:$16 sps:$4 sm:$0xff]   ;;  %v5548_v18 = vld [vmem:[#allocation12 + $0x480] ss:$16 sps:$4 sm:$0xff]  }
 0x2a5   :  { %v6595_v25 = vpop.f32.mrf.mxu1  ;;  %v6597_v26 = vpop.f32.mrf.mxu0 }
 0x2a6   :  { %4024 = vmatprep.mubr.bf16.mxu1 %v6587_v19  ;;  %4067 = vmatprep.mubr.bf16.mxu0 %v6589_v20  ;;  %v855_v55 = vmax.f32 %v629_v29, 0.0  ;;  %v857_v56 = vmax.f32 %v672_v30, 0.0 }
 0x2a7   :  { %v632_v31 = vpop.f32.mrf.mxu1  ;;  %v675_v32 = vpop.f32.mrf.mxu0  ;;  %4025 = vmatmul.mubr.bf16.vlgmr.msra.gmra.mxu1 %v6591_v23  ;;  %4068 = vmatmul.mubr.bf16.vlgmr.msra.gmra.mxu0 %v6593_v24 }
 0x2a8   :  { %v633_v38 = vadd.f32 %v632_v31, %v286_v9  ;;  %v676_v39 = vadd.f32 %v675_v32, %v294_v10  ;;  %4079 = vmatpush1.bf16.msra.mxu1 %v5530_v21  ;;  %4122 = vmatpush1.bf16.msra.mxu0 %v5533_v22  ;;  %v5559_v31 = vld [vmem:[#allocation12 + $0x664] ss:$16 sps:$4 sm:$0xff]  }
 0x2a9   :  { %v712_v51 = vpop.f32.mrf.mxu1  ;;  %v755_v52 = vpop.f32.mrf.mxu0  ;;  %4080 = vmatprep.subr.bf16.mxu1 %v5538_v27  ;;  %4123 = vmatprep.subr.bf16.mxu0 %v5541_v28  ;;  %v5551_v27 = vld [vmem:[#allocation12 + $0x680] ss:$16 sps:$4 sm:$0xff]   ;;  %v5556_v28 = vld [vmem:[#allocation12 + $0x464] ss:$16 sps:$4 sm:$0xff]  }
 0x2aa   :  { %v871_v57 = vmax.f32 %v633_v38, 0.0  ;;  %v873_v58 = vmax.f32 %v676_v39, 0.0  ;;  %v713_v0 = vadd.f32 %v712_v51, %v298_v33  ;;  %v756_v1 = vadd.f32 %v755_v52, %v306_v49  ;;  %v5557_v52 = vld [vmem:[#allocation12 + $0x660] ss:$16 sps:$4 sm:$0xff]  }
 0x2ab   :  { %v6607_v60 = vpop.f32.mrf.mxu1  ;;  %v6609_v61 = vpop.f32.mrf.mxu0 }
 0x2ac   :  { %v6611_v62 = vpack.c.bf16 %v871_v57, %v855_v55  ;;  %v6613_v63 = vpack.c.bf16 %v873_v58, %v857_v56  ;;  %4081 = vmatpush1.bf16.msra.mxu1 %v5536_v50  ;;  %4124 = vmatpush1.bf16.msra.mxu0 %v5539_v53  ;;  %v858_v14 = vmax.f32 %v713_v0, 0.0  ;;  %v860_v15 = vmax.f32 %v756_v1, 0.0  ;;  %v5562_v53 = vld [vmem:[#allocation12 + $0x444] ss:$16 sps:$4 sm:$0xff]   ;;  %v5560_v1 = vld [vmem:[#allocation12 + $0x440] ss:$16 sps:$4 sm:$0xff]  }
 0x2ad   :  { %v716_v3 = vpop.f32.mrf.mxu1  ;;  %v759_v4 = vpop.f32.mrf.mxu0  ;;  %4082 = vmatprep.subr.bf16.mxu1 %v5544_v54  ;;  %4125 = vmatprep.subr.bf16.mxu0 %v5547_v59  ;;  %v5565_v56 = vld [vmem:[#allocation12 + $0x644] ss:$16 sps:$4 sm:$0xff]  }
 0x2ae   :  { %v717_v9 = vadd.f32 %v716_v3, %v298_v33  ;;  %v760_v10 = vadd.f32 %v759_v4, %v306_v49  ;;  %4110 = vmatprep.mubr.bf16.mxu1 %v6611_v62  ;;  %4153 = vmatprep.mubr.bf16.mxu0 %v6613_v63  ;;  %v5554_v49 = vld [vmem:[#allocation12 + $0x460] ss:$16 sps:$4 sm:$0xff]   ;;  %v5568_v3 = vld [vmem:[#allocation12 + $0x424] ss:$16 sps:$4 sm:$0xff]  }
 0x2af   :  { %v6617_v12 = vpop.f32.mrf.mxu1  ;;  %v6619_v13 = vpop.f32.mrf.mxu0 }
 0x2b0   :  { %v874_v16 = vmax.f32 %v717_v9, 0.0  ;;  %v876_v17 = vmax.f32 %v760_v10, 0.0  ;;  %4083 = vmatpush1.bf16.msra.mxu1 %v5542_v2  ;;  %4126 = vmatpush1.bf16.msra.mxu0 %v5545_v5  ;;  %v5563_v2 = vld [vmem:[#allocation12 + $0x640] ss:$16 sps:$4 sm:$0xff]   ;;  %v5574_v9 = vld [vmem:[#allocation12 + $0x404] ss:$16 sps:$4 sm:$0xff]  }
 0x2b1   :  { %v798_v21 = vpop.f32.mrf.mxu1  ;;  %v841_v22 = vpop.f32.mrf.mxu0  ;;  %4084 = vmatprep.subr.bf16.mxu1 %v5550_v6  ;;  %4127 = vmatprep.subr.bf16.mxu0 %v5553_v11  ;;  %v5569_v6 = vld [vmem:[#allocation12 + $0x620] ss:$16 sps:$4 sm:$0xff]   ;;  %v5577_v10 = vld [vmem:[#allocation12 + $0x604] ss:$16 sps:$4 sm:$0xff]  }
 0x2b2   :  { %v6621_v29 = vpack.c.bf16 %v874_v16, %v858_v14  ;;  %v6623_v30 = vpack.c.bf16 %v876_v17, %v860_v15  ;;  %v799_v32 = vadd.f32 %v798_v21, %v6546_v40  ;;  %v842_v33 = vadd.f32 %v841_v22, %v6551_v41  ;;  %v5572_v11 = vld [vmem:[#allocation12 + $0x400] ss:$16 sps:$4 sm:$0xff]   ;;  %v5580_v15 = vld [vmem:[#allocation12 + $0x5e4] ss:$16 sps:$4 sm:$0xff]  }
 0x2b3   :  { %v6627_v38 = vpop.f32.mrf.mxu1  ;;  %v6629_v39 = vpop.f32.mrf.mxu0  ;;  %v5575_v14 = vld [vmem:[#allocation12 + $0x600] ss:$16 sps:$4 sm:$0xff]   ;;  %v5583_v16 = vld [vmem:[#allocation12 + $0x7e4] ss:$16 sps:$4 sm:$0xff]  }
 0x2b4   :  { %4085 = vmatpush1.bf16.msra.mxu1 %v5548_v18  ;;  %4128 = vmatpush1.bf16.msra.mxu0 %v5551_v27  ;;  %v862_v57 = vmax.f32 %v799_v32, 0.0  ;;  %v864_v58 = vmax.f32 %v842_v33, 0.0  ;;  %v5578_v17 = vld [vmem:[#allocation12 + $0x5e0] ss:$16 sps:$4 sm:$0xff]   ;;  %v5586_v21 = vld [vmem:[#allocation12 + $0x5c4] ss:$16 sps:$4 sm:$0xff]  }
 0x2b5   :  { %v802_v50 = vpop.f32.mrf.mxu1  ;;  %v845_v51 = vpop.f32.mrf.mxu0  ;;  %4086 = vmatprep.subr.bf16.mxu1 %v5556_v28  ;;  %4129 = vmatprep.subr.bf16.mxu0 %v5559_v31  ;;  %v5581_v18 = vld [vmem:[#allocation12 + $0x7e0] ss:$16 sps:$4 sm:$0xff]   ;;  %v5589_v22 = vld [vmem:[#allocation12 + $0x7c4] ss:$16 sps:$4 sm:$0xff]  }
 0x2b6   :  { %v803_v54 = vadd.f32 %v802_v50, %v6546_v40  ;;  %v846_v55 = vadd.f32 %v845_v51, %v6551_v41  ;;  %v5571_v40 = vld [vmem:[#allocation12 + $0x624] ss:$16 sps:$4 sm:$0xff]   ;;  %v5566_v41 = vld [vmem:[#allocation12 + $0x420] ss:$16 sps:$4 sm:$0xff]  }
 0x2b7   :  { %v5584_v27 = vld [vmem:[#allocation12 + $0x5c0] ss:$16 sps:$4 sm:$0xff]   ;;  %v5592_v31 = vld [vmem:[#allocation12 + $0x5a4] ss:$16 sps:$4 sm:$0xff]  }
 0x2b8   :  { %v878_v59 = vmax.f32 %v803_v54, 0.0  ;;  %v880_v0 = vmax.f32 %v846_v55, 0.0  ;;  %4087 = vmatpush1.bf16.msra.mxu1 %v5554_v49  ;;  %4130 = vmatpush1.bf16.msra.mxu0 %v5557_v52  ;;  %v5587_v28 = vld [vmem:[#allocation12 + $0x7c0] ss:$16 sps:$4 sm:$0xff]   ;;  %v5595_v32 = vld [vmem:[#allocation12 + $0x7a4] ss:$16 sps:$4 sm:$0xff]  }
 0x2b9   :  { %4088 = vmatprep.subr.bf16.mxu1 %v5562_v53  ;;  %4131 = vmatprep.subr.bf16.mxu0 %v5565_v56  ;;  %v5590_v33 = vld [vmem:[#allocation12 + $0x5a0] ss:$16 sps:$4 sm:$0xff]   ;;  %v5598_v50 = vld [vmem:[#allocation12 + $0x584] ss:$16 sps:$4 sm:$0xff]  }
 0x2ba   :  { %v6633_v4 = vpack.c.bf16 %v878_v59, %v862_v57  ;;  %v6635_v5 = vpack.c.bf16 %v880_v0, %v864_v58  ;;  %v5593_v49 = vld [vmem:[#allocation12 + $0x7a0] ss:$16 sps:$4 sm:$0xff]   ;;  %v5601_v51 = vld [vmem:[#allocation12 + $0x784] ss:$16 sps:$4 sm:$0xff]  }
 0x2bb   :  { %v5596_v52 = vld [vmem:[#allocation12 + $0x580] ss:$16 sps:$4 sm:$0xff]   ;;  %v5604_v54 = vld [vmem:[#allocation12 + $0x564] ss:$16 sps:$4 sm:$0xff]  }
 0x2bc   :  { %4089 = vmatpush1.bf16.msra.mxu1 %v5560_v1  ;;  %4132 = vmatpush1.bf16.msra.mxu0 %v5563_v2  ;;  %v5599_v53 = vld [vmem:[#allocation12 + $0x780] ss:$16 sps:$4 sm:$0xff]   ;;  %v5607_v55 = vld [vmem:[#allocation12 + $0x764] ss:$16 sps:$4 sm:$0xff]  }
 0x2bd   :  { %4090 = vmatprep.subr.bf16.mxu1 %v5568_v3  ;;  %4133 = vmatprep.subr.bf16.mxu0 %v5571_v40  ;;  %v5602_v56 = vld [vmem:[#allocation12 + $0x560] ss:$16 sps:$4 sm:$0xff]   ;;  %v5610_v58 = vld [vmem:[#allocation12 + $0x544] ss:$16 sps:$4 sm:$0xff]   ;;  %v282_v40 = vrot.slane %v6571_v48, %v281_v35  ;;  %v310_v35 = vrot.slane %v6539_v37, %v6563_v45 }
 0x2be   :  { %v5605_v57 = vld [vmem:[#allocation12 + $0x760] ss:$16 sps:$4 sm:$0xff]   ;;  %v5613_v59 = vld [vmem:[#allocation12 + $0x744] ss:$16 sps:$4 sm:$0xff]  }
 0x2bf   :  { %v5608_v0 = vld [vmem:[#allocation12 + $0x540] ss:$16 sps:$4 sm:$0xff]   ;;  %v5616_v2 = vld [vmem:[#allocation12 + $0x524] ss:$16 sps:$4 sm:$0xff]  }
 0x2c0   :  { %4091 = vmatpush1.bf16.msra.mxu1 %v5566_v41  ;;  %4134 = vmatpush1.bf16.msra.mxu0 %v5569_v6  ;;  %v5611_v1 = vld [vmem:[#allocation12 + $0x740] ss:$16 sps:$4 sm:$0xff]   ;;  %v5619_v3 = vld [vmem:[#allocation12 + $0x724] ss:$16 sps:$4 sm:$0xff]   ;;  %v290_v41 = vrot.slane %v6571_v48, %v289_v36  ;;  %v627_v36 = vadd.f32 %v6581_v7, %v282_v40 }
 0x2c1   :  { %4092 = vmatprep.subr.bf16.mxu1 %v5574_v9  ;;  %4135 = vmatprep.subr.bf16.mxu0 %v5577_v10  ;;  %v5614_v6 = vld [vmem:[#allocation12 + $0x520] ss:$16 sps:$4 sm:$0xff]   ;;  %v631_v9 = vadd.f32 %v6595_v25, %v282_v40  ;;  %v302_v10 = vrot.slane %v6539_v37, %v6560_v44  ;;  %v5631_v7 = vld [vmem:[#allocation12 + $0xae4] ss:$16 sps:$4 sm:$0xff]  }
 0x2c2   :  { %v670_v25 = vadd.f32 %v6583_v8, %v290_v41  ;;  %v5647_v40 = vld [vmem:[#allocation12 + $0xa80] ss:$16 sps:$4 sm:$0xff]  }
 0x2c3   :  { %v719_v48 = vadd.f32 %v6617_v12, %v302_v10 }
 0x2c4   :  { %4093 = vmatpush1.bf16.msra.mxu1 %v5572_v11  ;;  %4136 = vmatpush1.bf16.msra.mxu0 %v5575_v14  ;;  %v5617_v11 = vld [vmem:[#allocation12 + $0x720] ss:$16 sps:$4 sm:$0xff]   ;;  %v5622_v14 = vld [vmem:[#allocation12 + $0x504] ss:$16 sps:$4 sm:$0xff]  }
 0x2c5   :  { %4094 = vmatprep.subr.bf16.mxu1 %v5580_v15  ;;  %4137 = vmatprep.subr.bf16.mxu0 %v5583_v16  ;;  %v674_v15 = vadd.f32 %v6597_v26, %v290_v41  ;;  %v5625_v16 = vld [vmem:[#allocation12 + $0x704] ss:$16 sps:$4 sm:$0xff]   ;;  %v5623_v26 = vld [vmem:[#allocation12 + $0x700] ss:$16 sps:$4 sm:$0xff]   ;;  %v875_v12 = vmax.f32 %v719_v48, 0.0 }
 0x2c6   :  { %v5652_v41 = vld [vmem:[#allocation12 + $0x864] ss:$16 sps:$4 sm:$0xff]   ;;  %v5662_v48 = vld [vmem:[#allocation12 + $0x820] ss:$16 sps:$4 sm:$0xff]  }
 0x2c7   :  { %v872_v37 = vmax.f32 %v674_v15, 0.0  ;;  %v5656_v15 = vld [vmem:[#allocation12 + $0x840] ss:$16 sps:$4 sm:$0xff]  }
 0x2c8   :  { %4095 = vmatpush2.bf16.msra.mxu1 %v5578_v17  ;;  %4138 = vmatpush2.bf16.msra.mxu0 %v5581_v18  ;;  %v762_v17 = vadd.f32 %v6619_v13, %v310_v35  ;;  %v5620_v18 = vld [vmem:[#allocation12 + $0x500] ss:$16 sps:$4 sm:$0xff]  }
 0x2c9   :  { %4096 = vmatprep.subr.bf16.mxu1 %v5586_v21  ;;  %4139 = vmatprep.subr.bf16.mxu0 %v5589_v22  ;;  %v870_v21 = vmax.f32 %v631_v9, 0.0  ;;  %v715_v22 = vadd.f32 %v6607_v60, %v302_v10  ;;  %v5626_v13 = vld [vmem:[#allocation12 + $0x8e0] ss:$16 sps:$4 sm:$0xff]  }
 0x2ca   :  { %v877_v8 = vmax.f32 %v762_v17, 0.0  ;;  %v5629_v60 = vld [vmem:[#allocation12 + $0xae0] ss:$16 sps:$4 sm:$0xff]   ;;  %v5670_v17 = vld [vmem:[#allocation12 + $0x804] ss:$16 sps:$4 sm:$0xff]  }
 0x2cb   :  { %v5650_v9 = vld [vmem:[#allocation12 + $0x860] ss:$16 sps:$4 sm:$0xff]  }
 0x2cc   :  { %4097 = vmatpush2.bf16.msra.mxu1 %v5584_v27  ;;  %4140 = vmatpush2.bf16.msra.mxu0 %v5587_v28  ;;  %v5628_v27 = vld [vmem:[#allocation12 + $0x8e4] ss:$16 sps:$4 sm:$0xff]   ;;  %v758_v28 = vadd.f32 %v6609_v61, %v310_v35  ;;  %v5653_v10 = vld [vmem:[#allocation12 + $0xa60] ss:$16 sps:$4 sm:$0xff]  }
 0x2cd   :  { %4098 = vmatprep.subr.bf16.mxu1 %v5592_v31  ;;  %4141 = vmatprep.subr.bf16.mxu0 %v5595_v32  ;;  %v854_v31 = vmax.f32 %v627_v36, 0.0  ;;  %v856_v32 = vmax.f32 %v670_v25, 0.0  ;;  %v5659_v35 = vld [vmem:[#allocation12 + $0xa40] ss:$16 sps:$4 sm:$0xff]   ;;  %v5667_v36 = vld [vmem:[#allocation12 + $0xa24] ss:$16 sps:$4 sm:$0xff]  }
 0x2ce   :  { %v5665_v25 = vld [vmem:[#allocation12 + $0xa20] ss:$16 sps:$4 sm:$0xff]  }
 0x2d0   :  { %4099 = vmatpush2.bf16.msra.mxu1 %v5590_v33  ;;  %4142 = vmatpush2.bf16.msra.mxu0 %v5593_v49  ;;  %v6655_v33 = vpack.c.bf16 %v870_v21, %v854_v31  ;;  %v859_v49 = vmax.f32 %v715_v22, 0.0  ;;  %v5668_v21 = vld [vmem:[#allocation12 + $0x800] ss:$16 sps:$4 sm:$0xff]   ;;  %v5685_v31 = vld [vmem:[#allocation12 + $0xbc4] ss:$16 sps:$4 sm:$0xff]  }
 0x2d1   :  { %4100 = vmatprep.subr.bf16.mxu1 %v5598_v50  ;;  %4143 = vmatprep.subr.bf16.mxu0 %v5601_v51  ;;  %v6657_v50 = vpack.c.bf16 %v872_v37, %v856_v32  ;;  %v861_v51 = vmax.f32 %v758_v28, 0.0  ;;  %v5671_v22 = vld [vmem:[#allocation12 + $0xa00] ss:$16 sps:$4 sm:$0xff]  }
 0x2d2   :  { %v6659_v61 = vpack.c.bf16 %v875_v12, %v859_v49  ;;  %v5674_v37 = vld [vmem:[#allocation12 + $0x9e0] ss:$16 sps:$4 sm:$0xff]  }
 0x2d3   :  { %v5677_v28 = vld [vmem:[#allocation12 + $0xbe0] ss:$16 sps:$4 sm:$0xff]  }
 0x2d4   :  { %4101 = vmatpush2.bf16.msra.mxu1 %v5596_v52  ;;  %4144 = vmatpush2.bf16.msra.mxu0 %v5599_v53  ;;  %v5634_v52 = vld [vmem:[#allocation12 + $0x8c4] ss:$16 sps:$4 sm:$0xff]   ;;  %v5680_v12 = vld [vmem:[#allocation12 + $0x9c0] ss:$16 sps:$4 sm:$0xff]  }
 0x2d5   :  { %4102 = vmatprep.subr.bf16.mxu1 %v5604_v54  ;;  %4145 = vmatprep.subr.bf16.mxu0 %v5607_v55  ;;  %v5637_v53 = vld [vmem:[#allocation12 + $0xac4] ss:$16 sps:$4 sm:$0xff]   ;;  %v6662_v54 = vpack.c.bf16 %v877_v8, %v861_v51  ;;  %v5632_v55 = vld [vmem:[#allocation12 + $0x8c0] ss:$16 sps:$4 sm:$0xff]  }
 0x2d6   :  { %v5683_v32 = vld [vmem:[#allocation12 + $0xbc0] ss:$16 sps:$4 sm:$0xff]   ;;  %v5688_v8 = vld [vmem:[#allocation12 + $0x9a4] ss:$16 sps:$4 sm:$0xff]  }
 0x2d7   :  { %v5686_v49 = vld [vmem:[#allocation12 + $0x9a0] ss:$16 sps:$4 sm:$0xff]   ;;  %v5694_v51 = vld [vmem:[#allocation12 + $0x984] ss:$16 sps:$4 sm:$0xff]  }
 0x2d8   :  { %4103 = vmatpush2.bf16.msra.mxu1 %v5602_v56  ;;  %4146 = vmatpush2.bf16.msra.mxu0 %v5605_v57  ;;  %v5635_v56 = vld [vmem:[#allocation12 + $0xac0] ss:$16 sps:$4 sm:$0xff]   ;;  %v5640_v57 = vld [vmem:[#allocation12 + $0x8a4] ss:$16 sps:$4 sm:$0xff]  }
 0x2d9   :  { %4104 = vmatprep.subr.bf16.mxu1 %v5610_v58  ;;  %4147 = vmatprep.subr.bf16.mxu0 %v5613_v59  ;;  %v5643_v58 = vld [vmem:[#allocation12 + $0xaa4] ss:$16 sps:$4 sm:$0xff]   ;;  %v5638_v59 = vld [vmem:[#allocation12 + $0x8a0] ss:$16 sps:$4 sm:$0xff]  }
 0x2dc   :  { %4105 = vmatpush2.bf16.msra.mxu1 %v5608_v0  ;;  %4148 = vmatpush2.bf16.msra.mxu0 %v5611_v1  ;;  %v5641_v0 = vld [vmem:[#allocation12 + $0xaa0] ss:$16 sps:$4 sm:$0xff]   ;;  %v5646_v1 = vld [vmem:[#allocation12 + $0x884] ss:$16 sps:$4 sm:$0xff]  }
 0x2dd   :  { %4106 = vmatprep.subr.bf16.mxu1 %v5616_v2  ;;  %4149 = vmatprep.subr.bf16.mxu0 %v5619_v3  ;;  %v5649_v2 = vld [vmem:[#allocation12 + $0xa84] ss:$16 sps:$4 sm:$0xff]   ;;  %v5644_v3 = vld [vmem:[#allocation12 + $0x880] ss:$16 sps:$4 sm:$0xff]  }
 0x2e0   :  { %4107 = vmatpush2.bf16.msra.mxu1 %v5614_v6  ;;  %4150 = vmatpush2.bf16.msra.mxu0 %v5617_v11  ;;  %v5655_v6 = vld [vmem:[#allocation12 + $0xa64] ss:$16 sps:$4 sm:$0xff]  }
 0x2e1   :  { %4108 = vmatprep.subr.bf16.mxu1 %v5622_v14  ;;  %4151 = vmatprep.subr.bf16.mxu0 %v5625_v16  ;;  %v5658_v11 = vld [vmem:[#allocation12 + $0x844] ss:$16 sps:$4 sm:$0xff]  }
 0x2e2   :  { %v5661_v14 = vld [vmem:[#allocation12 + $0xa44] ss:$16 sps:$4 sm:$0xff]  }
 0x2e3   :  { %v5664_v16 = vld [vmem:[#allocation12 + $0x824] ss:$16 sps:$4 sm:$0xff]  }
 0x2e4   :  { %4109 = vmatpush2.bf16.msra.mxu1 %v5620_v18  ;;  %4152 = vmatpush2.bf16.msra.mxu0 %v5623_v26  ;;  %v5673_v18 = vld [vmem:[#allocation12 + $0xa04] ss:$16 sps:$4 sm:$0xff]  }
 0x2e5   :  { %4164 = vmatprep.subr.bf16.mxu1 %v5628_v27  ;;  %4207 = vmatprep.subr.bf16.mxu0 %v5631_v7  ;;  %v5676_v26 = vld [vmem:[#allocation12 + $0x9e4] ss:$16 sps:$4 sm:$0xff]  }
 0x2e6   :  { %v5679_v27 = vld [vmem:[#allocation12 + $0xbe4] ss:$16 sps:$4 sm:$0xff]  }
 0x2e7   :  { %4111 = vmatmul.mubr.bf16.vlgmr.msra.gmra.mxu1 %v6655_v33  ;;  %4154 = vmatmul.mubr.bf16.vlgmr.msra.gmra.mxu0 %v6657_v50  ;;  %v5682_v7 = vld [vmem:[#allocation12 + $0x9c4] ss:$16 sps:$4 sm:$0xff]  }
 0x2e8   :  { %4165 = vmatpush1.bf16.msra.mxu1 %v5626_v13  ;;  %4196 = vmatprep.mubr.bf16.mxu1 %v6659_v61  ;;  %v5691_v13 = vld [vmem:[#allocation12 + $0xba4] ss:$16 sps:$4 sm:$0xff]  }
 0x2e9   :  { %4208 = vmatpush1.bf16.msra.mxu0 %v5629_v60  ;;  %4239 = vmatprep.mubr.bf16.mxu0 %v6662_v54  ;;  %v5689_v60 = vld [vmem:[#allocation12 + $0xba0] ss:$16 sps:$4 sm:$0xff]  }
 0x2ea   :  { %4166 = vmatprep.subr.bf16.mxu1 %v5634_v52  ;;  %4209 = vmatprep.subr.bf16.mxu0 %v5637_v53  ;;  %v5697_v52 = vld [vmem:[#allocation12 + $0xb84] ss:$16 sps:$4 sm:$0xff]   ;;  %v5692_v53 = vld [vmem:[#allocation12 + $0x980] ss:$16 sps:$4 sm:$0xff]  }
 0x2ec   :  { %4167 = vmatpush1.bf16.msra.mxu1 %v5632_v55  ;;  %v5695_v55 = vld [vmem:[#allocation12 + $0xb80] ss:$16 sps:$4 sm:$0xff]  }
 0x2ed   :  { %4210 = vmatpush1.bf16.msra.mxu0 %v5635_v56  ;;  %4168 = vmatprep.subr.bf16.mxu1 %v5640_v57  ;;  %v5700_v56 = vld [vmem:[#allocation12 + $0x964] ss:$16 sps:$4 sm:$0xff]  }
 0x2ee   :  { %4211 = vmatprep.subr.bf16.mxu0 %v5643_v58  ;;  %v5703_v57 = vld [vmem:[#allocation12 + $0xb64] ss:$16 sps:$4 sm:$0xff]   ;;  %v5698_v58 = vld [vmem:[#allocation12 + $0x960] ss:$16 sps:$4 sm:$0xff]  }
 0x2f0   :  { %4169 = vmatpush1.bf16.msra.mxu1 %v5638_v59  ;;  %v5701_v59 = vld [vmem:[#allocation12 + $0xb60] ss:$16 sps:$4 sm:$0xff]  }
 0x2f1   :  { %4212 = vmatpush1.bf16.msra.mxu0 %v5641_v0  ;;  %4170 = vmatprep.subr.bf16.mxu1 %v5646_v1  ;;  %v5706_v0 = vld [vmem:[#allocation12 + $0x944] ss:$16 sps:$4 sm:$0xff]  }
 0x2f2   :  { %4213 = vmatprep.subr.bf16.mxu0 %v5649_v2  ;;  %v5709_v1 = vld [vmem:[#allocation12 + $0xb44] ss:$16 sps:$4 sm:$0xff]   ;;  %v5704_v2 = vld [vmem:[#allocation12 + $0x940] ss:$16 sps:$4 sm:$0xff]  }
 0x2f4   :  { %4171 = vmatpush1.bf16.msra.mxu1 %v5644_v3  ;;  %v5707_v3 = vld [vmem:[#allocation12 + $0xb40] ss:$16 sps:$4 sm:$0xff]  }
 0x2f5   :  { %4214 = vmatpush1.bf16.msra.mxu0 %v5647_v40  ;;  %4172 = vmatprep.subr.bf16.mxu1 %v5652_v41  ;;  %v5712_v40 = vld [vmem:[#allocation12 + $0x924] ss:$16 sps:$4 sm:$0xff]  }
 0x2f6   :  { %4215 = vmatprep.subr.bf16.mxu0 %v5655_v6  ;;  %v5715_v41 = vld [vmem:[#allocation12 + $0xb24] ss:$16 sps:$4 sm:$0xff]   ;;  %v804_v6 = vpop.f32.mrf.mxu1 }
 0x2f8   :  { %4173 = vmatpush1.bf16.msra.mxu1 %v5650_v9  ;;  %v5710_v9 = vld [vmem:[#allocation12 + $0x920] ss:$16 sps:$4 sm:$0xff]  }
 0x2f9   :  { %4216 = vmatpush1.bf16.msra.mxu0 %v5653_v10  ;;  %4174 = vmatprep.subr.bf16.mxu1 %v5658_v11  ;;  %v847_v10 = vpop.f32.mrf.mxu0  ;;  %v5713_v11 = vld [vmem:[#allocation12 + $0xb20] ss:$16 sps:$4 sm:$0xff]  }
 0x2fa   :  { %4217 = vmatprep.subr.bf16.mxu0 %v5661_v14  ;;  %v5718_v14 = vld [vmem:[#allocation12 + $0x904] ss:$16 sps:$4 sm:$0xff]  }
 0x2fc   :  { %4175 = vmatpush1.bf16.msra.mxu1 %v5656_v15  ;;  %v5721_v15 = vld [vmem:[#allocation12 + $0xb04] ss:$16 sps:$4 sm:$0xff]  }
 0x2fd   :  { %4218 = vmatpush1.bf16.msra.mxu0 %v5659_v35  ;;  %4176 = vmatprep.subr.bf16.mxu1 %v5664_v16  ;;  %v805_v35 = vadd.f32 %v804_v6, %v6554_v42  ;;  %v848_v16 = vadd.f32 %v847_v10, %v6557_v43  ;;  %v5761_v6 = vld [vmem:[#allocation12 + $0xe20] ss:$16 sps:$4 sm:$0xff]   ;;  %v5769_v10 = vld [vmem:[#allocation12 + $0xe04] ss:$16 sps:$4 sm:$0xff]  }
 0x2fe   :  { %4219 = vmatprep.subr.bf16.mxu0 %v5667_v36  ;;  %v5716_v36 = vld [vmem:[#allocation12 + $0x900] ss:$16 sps:$4 sm:$0xff]  }
 0x300   :  { %4177 = vmatpush1.bf16.msra.mxu1 %v5662_v48  ;;  %v801_v48 = vadd.f32 %v6627_v38, %v6554_v42  ;;  %v5730_v42 = vld [vmem:[#allocation12 + $0xcc4] ss:$16 sps:$4 sm:$0xff]  }
 0x301   :  { %4220 = vmatpush1.bf16.msra.mxu0 %v5665_v25  ;;  %4178 = vmatprep.subr.bf16.mxu1 %v5670_v17  ;;  %v5719_v25 = vld [vmem:[#allocation12 + $0xb00] ss:$16 sps:$4 sm:$0xff]   ;;  %v5724_v17 = vld [vmem:[#allocation12 + $0xce4] ss:$16 sps:$4 sm:$0xff]  }
 0x302   :  { %4221 = vmatprep.subr.bf16.mxu0 %v5673_v18  ;;  %v844_v18 = vadd.f32 %v6629_v39, %v6557_v43  ;;  %v5728_v43 = vld [vmem:[#allocation12 + $0xcc0] ss:$16 sps:$4 sm:$0xff]  }
 0x303   :  { %v5731_v39 = vld [vmem:[#allocation12 + $0xec0] ss:$16 sps:$4 sm:$0xff]  }
 0x304   :  { %4179 = vmatpush1.bf16.msra.mxu1 %v5668_v21  ;;  %v5727_v21 = vld [vmem:[#allocation12 + $0xee4] ss:$16 sps:$4 sm:$0xff]  }
 0x305   :  { %4222 = vmatpush1.bf16.msra.mxu0 %v5671_v22  ;;  %4180 = vmatprep.subr.bf16.mxu1 %v5676_v26  ;;  %v879_v22 = vmax.f32 %v805_v35, 0.0  ;;  %v881_v26 = vmax.f32 %v848_v16, 0.0  ;;  %v5775_v35 = vld [vmem:[#allocation12 + $0xfe4] ss:$16 sps:$4 sm:$0xff]   ;;  %v5770_v16 = vld [vmem:[#allocation12 + $0xde0] ss:$16 sps:$4 sm:$0xff]  }
 0x306   :  { %4223 = vmatprep.subr.bf16.mxu0 %v5679_v27  ;;  %v5722_v27 = vld [vmem:[#allocation12 + $0xce0] ss:$16 sps:$4 sm:$0xff]  }
 0x308   :  { %4181 = vmatpush2.bf16.msra.mxu1 %v5674_v37  ;;  %v863_v37 = vmax.f32 %v801_v48, 0.0  ;;  %v5778_v48 = vld [vmem:[#allocation12 + $0xdc4] ss:$16 sps:$4 sm:$0xff]  }
 0x309   :  { %4224 = vmatpush2.bf16.msra.mxu0 %v5677_v28  ;;  %4182 = vmatprep.subr.bf16.mxu1 %v5682_v7  ;;  %v5725_v28 = vld [vmem:[#allocation12 + $0xee0] ss:$16 sps:$4 sm:$0xff]   ;;  %v865_v7 = vmax.f32 %v844_v18, 0.0 }
 0x30a   :  { %4225 = vmatprep.subr.bf16.mxu0 %v5685_v31  ;;  %v6673_v38 = vpack.c.bf16 %v879_v22, %v863_v37  ;;  %v5733_v31 = vld [vmem:[#allocation12 + $0xec4] ss:$16 sps:$4 sm:$0xff]   ;;  %v5779_v18 = vld [vmem:[#allocation12 + $0xfc0] ss:$16 sps:$4 sm:$0xff]  }
 0x30b   :  { %v5787_v22 = vld [vmem:[#allocation12 + $0xfa4] ss:$16 sps:$4 sm:$0xff]  }
 0x30c   :  { %4183 = vmatpush2.bf16.msra.mxu1 %v5680_v12  ;;  %v6676_v12 = vpack.c.bf16 %v881_v26, %v865_v7  ;;  %v5782_v26 = vld [vmem:[#allocation12 + $0xda0] ss:$16 sps:$4 sm:$0xff]   ;;  %v5790_v37 = vld [vmem:[#allocation12 + $0xd84] ss:$16 sps:$4 sm:$0xff]  }
 0x30d   :  { %4226 = vmatpush2.bf16.msra.mxu0 %v5683_v32  ;;  %4184 = vmatprep.subr.bf16.mxu1 %v5688_v8  ;;  %v5736_v32 = vld [vmem:[#allocation12 + $0xca4] ss:$16 sps:$4 sm:$0xff]   ;;  %v5788_v7 = vld [vmem:[#allocation12 + $0xd80] ss:$16 sps:$4 sm:$0xff]  }
 0x30e   :  { %4227 = vmatprep.subr.bf16.mxu0 %v5691_v13  ;;  %v5739_v8 = vld [vmem:[#allocation12 + $0xea4] ss:$16 sps:$4 sm:$0xff]   ;;  %v5734_v13 = vld [vmem:[#allocation12 + $0xca0] ss:$16 sps:$4 sm:$0xff]  }
 0x310   :  { %4185 = vmatpush2.bf16.msra.mxu1 %v5686_v49  ;;  %v5737_v49 = vld [vmem:[#allocation12 + $0xea0] ss:$16 sps:$4 sm:$0xff]  }
 0x311   :  { %4228 = vmatpush2.bf16.msra.mxu0 %v5689_v60  ;;  %4186 = vmatprep.subr.bf16.mxu1 %v5694_v51  ;;  %v5742_v60 = vld [vmem:[#allocation12 + $0xc84] ss:$16 sps:$4 sm:$0xff]  }
 0x312   :  { %4229 = vmatprep.subr.bf16.mxu0 %v5697_v52  ;;  %v5745_v51 = vld [vmem:[#allocation12 + $0xe84] ss:$16 sps:$4 sm:$0xff]   ;;  %v5740_v52 = vld [vmem:[#allocation12 + $0xc80] ss:$16 sps:$4 sm:$0xff]  }
 0x314   :  { %4187 = vmatpush2.bf16.msra.mxu1 %v5692_v53  ;;  %v5743_v53 = vld [vmem:[#allocation12 + $0xe80] ss:$16 sps:$4 sm:$0xff]  }
 0x315   :  { %4230 = vmatpush2.bf16.msra.mxu0 %v5695_v55  ;;  %4188 = vmatprep.subr.bf16.mxu1 %v5700_v56  ;;  %v5748_v55 = vld [vmem:[#allocation12 + $0xc64] ss:$16 sps:$4 sm:$0xff]  }
 0x316   :  { %4231 = vmatprep.subr.bf16.mxu0 %v5703_v57  ;;  %v5751_v56 = vld [vmem:[#allocation12 + $0xe64] ss:$16 sps:$4 sm:$0xff]   ;;  %v5746_v57 = vld [vmem:[#allocation12 + $0xc60] ss:$16 sps:$4 sm:$0xff]  }
 0x318   :  { %4189 = vmatpush2.bf16.msra.mxu1 %v5698_v58  ;;  %v5749_v58 = vld [vmem:[#allocation12 + $0xe60] ss:$16 sps:$4 sm:$0xff]  }
 0x319   :  { %4232 = vmatpush2.bf16.msra.mxu0 %v5701_v59  ;;  %4190 = vmatprep.subr.bf16.mxu1 %v5706_v0  ;;  %v5754_v59 = vld [vmem:[#allocation12 + $0xc44] ss:$16 sps:$4 sm:$0xff]  }
 0x31a   :  { %4233 = vmatprep.subr.bf16.mxu0 %v5709_v1  ;;  %v5757_v0 = vld [vmem:[#allocation12 + $0xe44] ss:$16 sps:$4 sm:$0xff]   ;;  %v5752_v1 = vld [vmem:[#allocation12 + $0xc40] ss:$16 sps:$4 sm:$0xff]  }
 0x31c   :  { %4191 = vmatpush2.bf16.msra.mxu1 %v5704_v2  ;;  %v5755_v2 = vld [vmem:[#allocation12 + $0xe40] ss:$16 sps:$4 sm:$0xff]  }
 0x31d   :  { %4234 = vmatpush2.bf16.msra.mxu0 %v5707_v3  ;;  %4192 = vmatprep.subr.bf16.mxu1 %v5712_v40  ;;  %v5760_v3 = vld [vmem:[#allocation12 + $0xc24] ss:$16 sps:$4 sm:$0xff]  }
 0x31e   :  { %4235 = vmatprep.subr.bf16.mxu0 %v5715_v41  ;;  %v5763_v40 = vld [vmem:[#allocation12 + $0xe24] ss:$16 sps:$4 sm:$0xff]   ;;  %v5758_v41 = vld [vmem:[#allocation12 + $0xc20] ss:$16 sps:$4 sm:$0xff]  }
 0x320   :  { %4193 = vmatpush2.bf16.msra.mxu1 %v5710_v9  ;;  %v5766_v9 = vld [vmem:[#allocation12 + $0xc04] ss:$16 sps:$4 sm:$0xff]  }
 0x321   :  { %4236 = vmatpush2.bf16.msra.mxu0 %v5713_v11  ;;  %4194 = vmatprep.subr.bf16.mxu1 %v5718_v14  ;;  %v5764_v11 = vld [vmem:[#allocation12 + $0xc00] ss:$16 sps:$4 sm:$0xff]  }
 0x322   :  { %4237 = vmatprep.subr.bf16.mxu0 %v5721_v15  ;;  %v5767_v14 = vld [vmem:[#allocation12 + $0xe00] ss:$16 sps:$4 sm:$0xff]   ;;  %v5772_v15 = vld [vmem:[#allocation12 + $0xde4] ss:$16 sps:$4 sm:$0xff]  }
 0x324   :  { %4195 = vmatpush2.bf16.msra.mxu1 %v5716_v36  ;;  %v5773_v36 = vld [vmem:[#allocation12 + $0xfe0] ss:$16 sps:$4 sm:$0xff]  }
 0x325   :  { %4238 = vmatpush2.bf16.msra.mxu0 %v5719_v25  ;;  %4250 = vmatprep.subr.bf16.mxu1 %v5724_v17  ;;  %v5781_v25 = vld [vmem:[#allocation12 + $0xfc4] ss:$16 sps:$4 sm:$0xff]   ;;  %v5776_v17 = vld [vmem:[#allocation12 + $0xdc0] ss:$16 sps:$4 sm:$0xff]  }
 0x326   :  { %4293 = vmatprep.subr.bf16.mxu0 %v5727_v21  ;;  %v5784_v21 = vld [vmem:[#allocation12 + $0xda4] ss:$16 sps:$4 sm:$0xff]  }
 0x327   :  { %4197 = vmatmul.mubr.bf16.vlgmr.msra.gmra.mxu1 %v6621_v29 }
 0x328   :  { %4240 = vmatmul.mubr.bf16.vlgmr.msra.gmra.mxu0 %v6623_v30  ;;  %4251 = vmatpush1.bf16.msra.mxu1 %v5722_v27  ;;  %v5785_v27 = vld [vmem:[#allocation12 + $0xfa0] ss:$16 sps:$4 sm:$0xff]  }
 0x329   :  { %4282 = vmatprep.mubr.bf16.mxu1 %v6673_v38  ;;  %4294 = vmatpush1.bf16.msra.mxu0 %v5725_v28  ;;  %v5793_v28 = vld [vmem:[#allocation12 + $0xf84] ss:$16 sps:$4 sm:$0xff]  }
 0x32a   :  { %4325 = vmatprep.mubr.bf16.mxu0 %v6676_v12  ;;  %4252 = vmatprep.subr.bf16.mxu1 %v5730_v42  ;;  %v5791_v42 = vld [vmem:[#allocation12 + $0xf80] ss:$16 sps:$4 sm:$0xff]  }
 0x32b   :  { %4295 = vmatprep.subr.bf16.mxu0 %v5733_v31  ;;  %v5796_v31 = vld [vmem:[#allocation12 + $0xd64] ss:$16 sps:$4 sm:$0xff]  }
 0x32c   :  { %4253 = vmatpush1.bf16.msra.mxu1 %v5728_v43  ;;  %v5799_v43 = vld [vmem:[#allocation12 + $0xf64] ss:$16 sps:$4 sm:$0xff]  }
 0x32d   :  { %4296 = vmatpush1.bf16.msra.mxu0 %v5731_v39  ;;  %4254 = vmatprep.subr.bf16.mxu1 %v5736_v32  ;;  %v5794_v39 = vld [vmem:[#allocation12 + $0xd60] ss:$16 sps:$4 sm:$0xff]  }
 0x32e   :  { %4297 = vmatprep.subr.bf16.mxu0 %v5739_v8  ;;  %v5797_v32 = vld [vmem:[#allocation12 + $0xf60] ss:$16 sps:$4 sm:$0xff]   ;;  %v5802_v8 = vld [vmem:[#allocation12 + $0xd44] ss:$16 sps:$4 sm:$0xff]  }
 0x330   :  { %4255 = vmatpush1.bf16.msra.mxu1 %v5734_v13  ;;  %v5805_v13 = vld [vmem:[#allocation12 + $0xf44] ss:$16 sps:$4 sm:$0xff]  }
 0x331   :  { %4298 = vmatpush1.bf16.msra.mxu0 %v5737_v49  ;;  %4256 = vmatprep.subr.bf16.mxu1 %v5742_v60  ;;  %v5800_v49 = vld [vmem:[#allocation12 + $0xd40] ss:$16 sps:$4 sm:$0xff]  }
 0x332   :  { %4299 = vmatprep.subr.bf16.mxu0 %v5745_v51  ;;  %v5803_v60 = vld [vmem:[#allocation12 + $0xf40] ss:$16 sps:$4 sm:$0xff]   ;;  %v5808_v51 = vld [vmem:[#allocation12 + $0xd24] ss:$16 sps:$4 sm:$0xff]  }
 0x334   :  { %4257 = vmatpush1.bf16.msra.mxu1 %v5740_v52  ;;  %v5811_v52 = vld [vmem:[#allocation12 + $0xf24] ss:$16 sps:$4 sm:$0xff]  }
 0x335   :  { %4300 = vmatpush1.bf16.msra.mxu0 %v5743_v53  ;;  %4258 = vmatprep.subr.bf16.mxu1 %v5748_v55  ;;  %v5806_v53 = vld [vmem:[#allocation12 + $0xd20] ss:$16 sps:$4 sm:$0xff]  }
 0x336   :  { %4301 = vmatprep.subr.bf16.mxu0 %v5751_v56  ;;  %v5809_v55 = vld [vmem:[#allocation12 + $0xf20] ss:$16 sps:$4 sm:$0xff]   ;;  %v5814_v56 = vld [vmem:[#allocation12 + $0xd04] ss:$16 sps:$4 sm:$0xff]  }
 0x338   :  { %4259 = vmatpush1.bf16.msra.mxu1 %v5746_v57  ;;  %v5817_v57 = vld [vmem:[#allocation12 + $0xf04] ss:$16 sps:$4 sm:$0xff]  }
 0x339   :  { %4302 = vmatpush1.bf16.msra.mxu0 %v5749_v58  ;;  %4260 = vmatprep.subr.bf16.mxu1 %v5754_v59  ;;  %v5812_v58 = vld [vmem:[#allocation12 + $0xd00] ss:$16 sps:$4 sm:$0xff]  }
 0x33a   :  { %4303 = vmatprep.subr.bf16.mxu0 %v5757_v0  ;;  %v5815_v59 = vld [vmem:[#allocation12 + $0xf00] ss:$16 sps:$4 sm:$0xff]   ;;  %v5820_v0 = vld [vmem:[#allocation12 + $0xec] ss:$16 sps:$4 sm:$0xff]  }
 0x33c   :  { %4261 = vmatpush1.bf16.msra.mxu1 %v5752_v1  ;;  %v5823_v1 = vld [vmem:[#allocation12 + $0x2ec] ss:$16 sps:$4 sm:$0xff]  }
 0x33d   :  { %4304 = vmatpush1.bf16.msra.mxu0 %v5755_v2  ;;  %4262 = vmatprep.subr.bf16.mxu1 %v5760_v3  ;;  %v5818_v2 = vld [vmem:[#allocation12 + $0xe8] ss:$16 sps:$4 sm:$0xff]  }
 0x33e   :  { %4305 = vmatprep.subr.bf16.mxu0 %v5763_v40  ;;  %v5821_v3 = vld [vmem:[#allocation12 + $0x2e8] ss:$16 sps:$4 sm:$0xff]   ;;  %v5826_v40 = vld [vmem:[#allocation12 + $0xcc] ss:$16 sps:$4 sm:$0xff]  }
 0x340   :  { %4263 = vmatpush1.bf16.msra.mxu1 %v5758_v41  ;;  %v5829_v41 = vld [vmem:[#allocation12 + $0x2cc] ss:$16 sps:$4 sm:$0xff]  }
 0x341   :  { %4306 = vmatpush1.bf16.msra.mxu0 %v5761_v6  ;;  %4264 = vmatprep.subr.bf16.mxu1 %v5766_v9  ;;  %v5824_v6 = vld [vmem:[#allocation12 + $0xc8] ss:$16 sps:$4 sm:$0xff]  }
 0x342   :  { %4307 = vmatprep.subr.bf16.mxu0 %v5769_v10  ;;  %v5827_v9 = vld [vmem:[#allocation12 + $0x2c8] ss:$16 sps:$4 sm:$0xff]   ;;  %v5832_v10 = vld [vmem:[#allocation12 + $0xac] ss:$16 sps:$4 sm:$0xff]  }
 0x344   :  { %4265 = vmatpush1.bf16.msra.mxu1 %v5764_v11  ;;  %v5835_v11 = vld [vmem:[#allocation12 + $0x2ac] ss:$16 sps:$4 sm:$0xff]  }
 0x345   :  { %4308 = vmatpush1.bf16.msra.mxu0 %v5767_v14  ;;  %4266 = vmatprep.subr.bf16.mxu1 %v5772_v15  ;;  %v5830_v14 = vld [vmem:[#allocation12 + $0xa8] ss:$16 sps:$4 sm:$0xff]  }
 0x346   :  { %4309 = vmatprep.subr.bf16.mxu0 %v5775_v35  ;;  %v5833_v15 = vld [vmem:[#allocation12 + $0x2a8] ss:$16 sps:$4 sm:$0xff]   ;;  %v5838_v35 = vld [vmem:[#allocation12 + $0x8c] ss:$16 sps:$4 sm:$0xff]  }
 0x348   :  { %4267 = vmatpush2.bf16.msra.mxu1 %v5770_v16  ;;  %v5841_v16 = vld [vmem:[#allocation12 + $0x28c] ss:$16 sps:$4 sm:$0xff]  }
 0x349   :  { %4310 = vmatpush2.bf16.msra.mxu0 %v5773_v36  ;;  %4268 = vmatprep.subr.bf16.mxu1 %v5778_v48  ;;  %v5836_v36 = vld [vmem:[#allocation12 + $0x88] ss:$16 sps:$4 sm:$0xff]   ;;  %v5844_v48 = vld [vmem:[#allocation12 + $0x6c] ss:$16 sps:$4 sm:$0xff]  }
 0x34a   :  { %4311 = vmatprep.subr.bf16.mxu0 %v5781_v25  ;;  %v5847_v25 = vld [vmem:[#allocation12 + $0x26c] ss:$16 sps:$4 sm:$0xff]  }
 0x34c   :  { %4269 = vmatpush2.bf16.msra.mxu1 %v5776_v17  ;;  %v5845_v17 = vld [vmem:[#allocation12 + $0x268] ss:$16 sps:$4 sm:$0xff]  }
 0x34d   :  { %4312 = vmatpush2.bf16.msra.mxu0 %v5779_v18  ;;  %4270 = vmatprep.subr.bf16.mxu1 %v5784_v21  ;;  %v5850_v18 = vld [vmem:[#allocation12 + $0x4c] ss:$16 sps:$4 sm:$0xff]  }
 0x34e   :  { %4313 = vmatprep.subr.bf16.mxu0 %v5787_v22  ;;  %v5853_v21 = vld [vmem:[#allocation12 + $0x24c] ss:$16 sps:$4 sm:$0xff]   ;;  %v5848_v22 = vld [vmem:[#allocation12 + $0x48] ss:$16 sps:$4 sm:$0xff]  }
 0x350   :  { %4271 = vmatpush2.bf16.msra.mxu1 %v5782_v26  ;;  %v5851_v26 = vld [vmem:[#allocation12 + $0x248] ss:$16 sps:$4 sm:$0xff]  }
 0x351   :  { %4314 = vmatpush2.bf16.msra.mxu0 %v5785_v27  ;;  %4272 = vmatprep.subr.bf16.mxu1 %v5790_v37  ;;  %v5856_v27 = vld [vmem:[#allocation12 + $0x2c] ss:$16 sps:$4 sm:$0xff]  }
 0x352   :  { %4315 = vmatprep.subr.bf16.mxu0 %v5793_v28  ;;  %v5859_v37 = vld [vmem:[#allocation12 + $0x22c] ss:$16 sps:$4 sm:$0xff]   ;;  %v5854_v28 = vld [vmem:[#allocation12 + $0x28] ss:$16 sps:$4 sm:$0xff]  }
 0x354   :  { %4273 = vmatpush2.bf16.msra.mxu1 %v5788_v7  ;;  %v5857_v7 = vld [vmem:[#allocation12 + $0x228] ss:$16 sps:$4 sm:$0xff]  }
 0x355   :  { %4316 = vmatpush2.bf16.msra.mxu0 %v5791_v42  ;;  %4274 = vmatprep.subr.bf16.mxu1 %v5796_v31  ;;  %v5862_v42 = vld [vmem:[#allocation12 + $0xc] ss:$16 sps:$4 sm:$0xff]  }
 0x356   :  { %4317 = vmatprep.subr.bf16.mxu0 %v5799_v43  ;;  %v5865_v31 = vld [vmem:[#allocation12 + $0x20c] ss:$16 sps:$4 sm:$0xff]   ;;  %v5860_v43 = vld [vmem:[#allocation12 + $0x8] ss:$16 sps:$4 sm:$0xff]  }
 0x358   :  { %4275 = vmatpush2.bf16.msra.mxu1 %v5794_v39  ;;  %v5863_v39 = vld [vmem:[#allocation12 + $0x208] ss:$16 sps:$4 sm:$0xff]  }
 0x359   :  { %4318 = vmatpush2.bf16.msra.mxu0 %v5797_v32  ;;  %4276 = vmatprep.subr.bf16.mxu1 %v5802_v8  ;;  %v5868_v32 = vld [vmem:[#allocation12 + $0x1ec] ss:$16 sps:$4 sm:$0xff]  }
 0x35a   :  { %4319 = vmatprep.subr.bf16.mxu0 %v5805_v13  ;;  %v5871_v8 = vld [vmem:[#allocation12 + $0x3ec] ss:$16 sps:$4 sm:$0xff]   ;;  %v5866_v13 = vld [vmem:[#allocation12 + $0x1e8] ss:$16 sps:$4 sm:$0xff]  }
 0x35c   :  { %4277 = vmatpush2.bf16.msra.mxu1 %v5800_v49  ;;  %v5869_v49 = vld [vmem:[#allocation12 + $0x3e8] ss:$16 sps:$4 sm:$0xff]  }
 0x35d   :  { %4320 = vmatpush2.bf16.msra.mxu0 %v5803_v60  ;;  %4278 = vmatprep.subr.bf16.mxu1 %v5808_v51  ;;  %v5874_v60 = vld [vmem:[#allocation12 + $0x1cc] ss:$16 sps:$4 sm:$0xff]  }
 0x35e   :  { %4321 = vmatprep.subr.bf16.mxu0 %v5811_v52  ;;  %v5877_v51 = vld [vmem:[#allocation12 + $0x3cc] ss:$16 sps:$4 sm:$0xff]   ;;  %v5872_v52 = vld [vmem:[#allocation12 + $0x1c8] ss:$16 sps:$4 sm:$0xff]  }
 0x360   :  { %4279 = vmatpush2.bf16.msra.mxu1 %v5806_v53  ;;  %v5875_v53 = vld [vmem:[#allocation12 + $0x3c8] ss:$16 sps:$4 sm:$0xff]  }
 0x361   :  { %4322 = vmatpush2.bf16.msra.mxu0 %v5809_v55  ;;  %4280 = vmatprep.subr.bf16.mxu1 %v5814_v56  ;;  %v5880_v55 = vld [vmem:[#allocation12 + $0x1ac] ss:$16 sps:$4 sm:$0xff]  }
 0x362   :  { %4323 = vmatprep.subr.bf16.mxu0 %v5817_v57  ;;  %v5883_v56 = vld [vmem:[#allocation12 + $0x3ac] ss:$16 sps:$4 sm:$0xff]   ;;  %v5878_v57 = vld [vmem:[#allocation12 + $0x1a8] ss:$16 sps:$4 sm:$0xff]  }
 0x364   :  { %4281 = vmatpush2.bf16.msra.mxu1 %v5812_v58  ;;  %v5881_v58 = vld [vmem:[#allocation12 + $0x3a8] ss:$16 sps:$4 sm:$0xff]  }
 0x365   :  { %4324 = vmatpush2.bf16.msra.mxu0 %v5815_v59  ;;  %4336 = vmatprep.subr.bf16.mxu1 %v5820_v0  ;;  %v5886_v59 = vld [vmem:[#allocation12 + $0x18c] ss:$16 sps:$4 sm:$0xff]  }
 0x366   :  { %4379 = vmatprep.subr.bf16.mxu0 %v5823_v1  ;;  %v5889_v0 = vld [vmem:[#allocation12 + $0x38c] ss:$16 sps:$4 sm:$0xff]   ;;  %v5884_v1 = vld [vmem:[#allocation12 + $0x188] ss:$16 sps:$4 sm:$0xff]  }
 0x367   :  { %4283 = vmatmul.mubr.bf16.vlgmr.msra.gmra.mxu1 %v6633_v4 }
 0x368   :  { %4326 = vmatmul.mubr.bf16.vlgmr.msra.gmra.mxu0 %v6635_v5  ;;  %4337 = vmatpush1.bf16.msra.mxu1 %v5818_v2  ;;  %v5887_v2 = vld [vmem:[#allocation12 + $0x388] ss:$16 sps:$4 sm:$0xff]  }
 0x369   :  { %4368 = vmatprep.mubr.bf16.mxu1 %v6587_v19  ;;  %4380 = vmatpush1.bf16.msra.mxu0 %v5821_v3  ;;  %v5839_v19 = vld [vmem:[#allocation12 + $0x288] ss:$16 sps:$4 sm:$0xff]   ;;  %v5892_v3 = vld [vmem:[#allocation12 + $0x16c] ss:$16 sps:$4 sm:$0xff]  }
 0x36a   :  { %4411 = vmatprep.mubr.bf16.mxu0 %v6589_v20  ;;  %4338 = vmatprep.subr.bf16.mxu1 %v5826_v40  ;;  %v5842_v20 = vld [vmem:[#allocation12 + $0x68] ss:$16 sps:$4 sm:$0xff]   ;;  %v5895_v40 = vld [vmem:[#allocation12 + $0x36c] ss:$16 sps:$4 sm:$0xff]  }
 0x36b   :  { %4381 = vmatprep.subr.bf16.mxu0 %v5829_v41  ;;  %v5890_v41 = vld [vmem:[#allocation12 + $0x168] ss:$16 sps:$4 sm:$0xff]  }
 0x36c   :  { %4339 = vmatpush1.bf16.msra.mxu1 %v5824_v6  ;;  %v5893_v6 = vld [vmem:[#allocation12 + $0x368] ss:$16 sps:$4 sm:$0xff]  }
 0x36d   :  { %4382 = vmatpush1.bf16.msra.mxu0 %v5827_v9  ;;  %4340 = vmatprep.subr.bf16.mxu1 %v5832_v10  ;;  %v5898_v9 = vld [vmem:[#allocation12 + $0x14c] ss:$16 sps:$4 sm:$0xff]  }
 0x36e   :  { %4383 = vmatprep.subr.bf16.mxu0 %v5835_v11  ;;  %v5901_v10 = vld [vmem:[#allocation12 + $0x34c] ss:$16 sps:$4 sm:$0xff]   ;;  %v5896_v11 = vld [vmem:[#allocation12 + $0x148] ss:$16 sps:$4 sm:$0xff]  }
 0x370   :  { %4341 = vmatpush1.bf16.msra.mxu1 %v5830_v14  ;;  %v5899_v14 = vld [vmem:[#allocation12 + $0x348] ss:$16 sps:$4 sm:$0xff]  }
 0x371   :  { %4384 = vmatpush1.bf16.msra.mxu0 %v5833_v15  ;;  %4342 = vmatprep.subr.bf16.mxu1 %v5838_v35  ;;  %v5904_v15 = vld [vmem:[#allocation12 + $0x12c] ss:$16 sps:$4 sm:$0xff]  }
 0x372   :  { %4385 = vmatprep.subr.bf16.mxu0 %v5841_v16  ;;  %v5907_v35 = vld [vmem:[#allocation12 + $0x32c] ss:$16 sps:$4 sm:$0xff]   ;;  %v5902_v16 = vld [vmem:[#allocation12 + $0x128] ss:$16 sps:$4 sm:$0xff]  }
 0x374   :  { %4343 = vmatpush1.bf16.msra.mxu1 %v5836_v36  ;;  %v5905_v36 = vld [vmem:[#allocation12 + $0x328] ss:$16 sps:$4 sm:$0xff]  }
 0x375   :  { %4386 = vmatpush1.bf16.msra.mxu0 %v5839_v19  ;;  %4344 = vmatprep.subr.bf16.mxu1 %v5844_v48  ;;  %v5910_v19 = vld [vmem:[#allocation12 + $0x10c] ss:$16 sps:$4 sm:$0xff]  }
 0x376   :  { %4387 = vmatprep.subr.bf16.mxu0 %v5847_v25  ;;  %v5913_v48 = vld [vmem:[#allocation12 + $0x30c] ss:$16 sps:$4 sm:$0xff]   ;;  %v5908_v25 = vld [vmem:[#allocation12 + $0x108] ss:$16 sps:$4 sm:$0xff]  }
 0x378   :  { %4345 = vmatpush1.bf16.msra.mxu1 %v5842_v20  ;;  %v5911_v20 = vld [vmem:[#allocation12 + $0x308] ss:$16 sps:$4 sm:$0xff]  }
 0x379   :  { %4388 = vmatpush1.bf16.msra.mxu0 %v5845_v17  ;;  %4346 = vmatprep.subr.bf16.mxu1 %v5850_v18  ;;  %v5916_v17 = vld [vmem:[#allocation12 + $0x4ec] ss:$16 sps:$4 sm:$0xff]  }
 0x37a   :  { %4389 = vmatprep.subr.bf16.mxu0 %v5853_v21  ;;  %v5919_v18 = vld [vmem:[#allocation12 + $0x6ec] ss:$16 sps:$4 sm:$0xff]   ;;  %v5914_v21 = vld [vmem:[#allocation12 + $0x4e8] ss:$16 sps:$4 sm:$0xff]  }
 0x37c   :  { %4347 = vmatpush1.bf16.msra.mxu1 %v5848_v22  ;;  %v5917_v22 = vld [vmem:[#allocation12 + $0x6e8] ss:$16 sps:$4 sm:$0xff]  }
 0x37d   :  { %4390 = vmatpush1.bf16.msra.mxu0 %v5851_v26  ;;  %4348 = vmatprep.subr.bf16.mxu1 %v5856_v27  ;;  %v5922_v26 = vld [vmem:[#allocation12 + $0x4cc] ss:$16 sps:$4 sm:$0xff]  }
 0x37e   :  { %4391 = vmatprep.subr.bf16.mxu0 %v5859_v37  ;;  %v5925_v27 = vld [vmem:[#allocation12 + $0x6cc] ss:$16 sps:$4 sm:$0xff]   ;;  %v5920_v37 = vld [vmem:[#allocation12 + $0x4c8] ss:$16 sps:$4 sm:$0xff]  }
 0x380   :  { %4349 = vmatpush1.bf16.msra.mxu1 %v5854_v28  ;;  %v5923_v28 = vld [vmem:[#allocation12 + $0x6c8] ss:$16 sps:$4 sm:$0xff]  }
 0x381   :  { %4392 = vmatpush1.bf16.msra.mxu0 %v5857_v7  ;;  %4350 = vmatprep.subr.bf16.mxu1 %v5862_v42  ;;  %v5928_v7 = vld [vmem:[#allocation12 + $0x4ac] ss:$16 sps:$4 sm:$0xff]  }
 0x382   :  { %4393 = vmatprep.subr.bf16.mxu0 %v5865_v31  ;;  %v5931_v42 = vld [vmem:[#allocation12 + $0x6ac] ss:$16 sps:$4 sm:$0xff]   ;;  %v5926_v31 = vld [vmem:[#allocation12 + $0x4a8] ss:$16 sps:$4 sm:$0xff]  }
 0x384   :  { %4351 = vmatpush1.bf16.msra.mxu1 %v5860_v43  ;;  %v5934_v43 = vld [vmem:[#allocation12 + $0x48c] ss:$16 sps:$4 sm:$0xff]  }
 0x385   :  { %4394 = vmatpush1.bf16.msra.mxu0 %v5863_v39  ;;  %4352 = vmatprep.subr.bf16.mxu1 %v5868_v32  ;;  %v5932_v39 = vld [vmem:[#allocation12 + $0x488] ss:$16 sps:$4 sm:$0xff]   ;;  %v5940_v32 = vld [vmem:[#allocation12 + $0x46c] ss:$16 sps:$4 sm:$0xff]  }
 0x386   :  { %4395 = vmatprep.subr.bf16.mxu0 %v5871_v8  ;;  %v5943_v8 = vld [vmem:[#allocation12 + $0x66c] ss:$16 sps:$4 sm:$0xff]  }
 0x388   :  { %4353 = vmatpush2.bf16.msra.mxu1 %v5866_v13  ;;  %v5941_v13 = vld [vmem:[#allocation12 + $0x668] ss:$16 sps:$4 sm:$0xff]  }
 0x389   :  { %4396 = vmatpush2.bf16.msra.mxu0 %v5869_v49  ;;  %4354 = vmatprep.subr.bf16.mxu1 %v5874_v60  ;;  %v5946_v49 = vld [vmem:[#allocation12 + $0x44c] ss:$16 sps:$4 sm:$0xff]  }
 0x38a   :  { %4397 = vmatprep.subr.bf16.mxu0 %v5877_v51  ;;  %v5949_v60 = vld [vmem:[#allocation12 + $0x64c] ss:$16 sps:$4 sm:$0xff]   ;;  %v5944_v51 = vld [vmem:[#allocation12 + $0x448] ss:$16 sps:$4 sm:$0xff]  }
 0x38c   :  { %4355 = vmatpush2.bf16.msra.mxu1 %v5872_v52  ;;  %v5947_v52 = vld [vmem:[#allocation12 + $0x648] ss:$16 sps:$4 sm:$0xff]  }
 0x38d   :  { %4398 = vmatpush2.bf16.msra.mxu0 %v5875_v53  ;;  %4356 = vmatprep.subr.bf16.mxu1 %v5880_v55  ;;  %v5952_v53 = vld [vmem:[#allocation12 + $0x42c] ss:$16 sps:$4 sm:$0xff]  }
 0x38e   :  { %4399 = vmatprep.subr.bf16.mxu0 %v5883_v56  ;;  %v5955_v55 = vld [vmem:[#allocation12 + $0x62c] ss:$16 sps:$4 sm:$0xff]   ;;  %v5950_v56 = vld [vmem:[#allocation12 + $0x428] ss:$16 sps:$4 sm:$0xff]  }
 0x390   :  { %4357 = vmatpush2.bf16.msra.mxu1 %v5878_v57  ;;  %v5953_v57 = vld [vmem:[#allocation12 + $0x628] ss:$16 sps:$4 sm:$0xff]  }
 0x391   :  { %4400 = vmatpush2.bf16.msra.mxu0 %v5881_v58  ;;  %4358 = vmatprep.subr.bf16.mxu1 %v5886_v59  ;;  %v5958_v58 = vld [vmem:[#allocation12 + $0x40c] ss:$16 sps:$4 sm:$0xff]  }
 0x392   :  { %4401 = vmatprep.subr.bf16.mxu0 %v5889_v0  ;;  %v5961_v59 = vld [vmem:[#allocation12 + $0x60c] ss:$16 sps:$4 sm:$0xff]   ;;  %v5956_v0 = vld [vmem:[#allocation12 + $0x408] ss:$16 sps:$4 sm:$0xff]  }
 0x394   :  { %4359 = vmatpush2.bf16.msra.mxu1 %v5884_v1  ;;  %v5959_v1 = vld [vmem:[#allocation12 + $0x608] ss:$16 sps:$4 sm:$0xff]  }
 0x395   :  { %4402 = vmatpush2.bf16.msra.mxu0 %v5887_v2  ;;  %4360 = vmatprep.subr.bf16.mxu1 %v5892_v3  ;;  %v5964_v2 = vld [vmem:[#allocation12 + $0x5ec] ss:$16 sps:$4 sm:$0xff]  }
 0x396   :  { %4403 = vmatprep.subr.bf16.mxu0 %v5895_v40  ;;  %v5967_v3 = vld [vmem:[#allocation12 + $0x7ec] ss:$16 sps:$4 sm:$0xff]   ;;  %v5962_v40 = vld [vmem:[#allocation12 + $0x5e8] ss:$16 sps:$4 sm:$0xff]  }
 0x398   :  { %4361 = vmatpush2.bf16.msra.mxu1 %v5890_v41  ;;  %v5965_v41 = vld [vmem:[#allocation12 + $0x7e8] ss:$16 sps:$4 sm:$0xff]  }
 0x399   :  { %4404 = vmatpush2.bf16.msra.mxu0 %v5893_v6  ;;  %4362 = vmatprep.subr.bf16.mxu1 %v5898_v9  ;;  %v5970_v6 = vld [vmem:[#allocation12 + $0x5cc] ss:$16 sps:$4 sm:$0xff]  }
 0x39a   :  { %4405 = vmatprep.subr.bf16.mxu0 %v5901_v10  ;;  %v5973_v9 = vld [vmem:[#allocation12 + $0x7cc] ss:$16 sps:$4 sm:$0xff]   ;;  %v5968_v10 = vld [vmem:[#allocation12 + $0x5c8] ss:$16 sps:$4 sm:$0xff]  }
 0x39c   :  { %4363 = vmatpush2.bf16.msra.mxu1 %v5896_v11  ;;  %v5971_v11 = vld [vmem:[#allocation12 + $0x7c8] ss:$16 sps:$4 sm:$0xff]  }
 0x39d   :  { %4406 = vmatpush2.bf16.msra.mxu0 %v5899_v14  ;;  %4364 = vmatprep.subr.bf16.mxu1 %v5904_v15  ;;  %v5976_v14 = vld [vmem:[#allocation12 + $0x5ac] ss:$16 sps:$4 sm:$0xff]  }
 0x39e   :  { %4407 = vmatprep.subr.bf16.mxu0 %v5907_v35  ;;  %v5979_v15 = vld [vmem:[#allocation12 + $0x7ac] ss:$16 sps:$4 sm:$0xff]   ;;  %v5974_v35 = vld [vmem:[#allocation12 + $0x5a8] ss:$16 sps:$4 sm:$0xff]  }
 0x3a0   :  { %4365 = vmatpush2.bf16.msra.mxu1 %v5902_v16  ;;  %v5977_v16 = vld [vmem:[#allocation12 + $0x7a8] ss:$16 sps:$4 sm:$0xff]  }
 0x3a1   :  { %4408 = vmatpush2.bf16.msra.mxu0 %v5905_v36  ;;  %4366 = vmatprep.subr.bf16.mxu1 %v5910_v19  ;;  %v5982_v36 = vld [vmem:[#allocation12 + $0x58c] ss:$16 sps:$4 sm:$0xff]  }
 0x3a2   :  { %4409 = vmatprep.subr.bf16.mxu0 %v5913_v48  ;;  %v5985_v19 = vld [vmem:[#allocation12 + $0x78c] ss:$16 sps:$4 sm:$0xff]   ;;  %v5980_v48 = vld [vmem:[#allocation12 + $0x588] ss:$16 sps:$4 sm:$0xff]  }
 0x3a4   :  { %4367 = vmatpush2.bf16.msra.mxu1 %v5908_v25  ;;  %v5983_v25 = vld [vmem:[#allocation12 + $0x788] ss:$16 sps:$4 sm:$0xff]  }
 0x3a5   :  { %4410 = vmatpush2.bf16.msra.mxu0 %v5911_v20  ;;  %4422 = vmatprep.subr.bf16.mxu1 %v5916_v17  ;;  %v5988_v20 = vld [vmem:[#allocation12 + $0x56c] ss:$16 sps:$4 sm:$0xff]  }
 0x3a6   :  { %4465 = vmatprep.subr.bf16.mxu0 %v5919_v18  ;;  %v5991_v17 = vld [vmem:[#allocation12 + $0x76c] ss:$16 sps:$4 sm:$0xff]   ;;  %v5986_v18 = vld [vmem:[#allocation12 + $0x568] ss:$16 sps:$4 sm:$0xff]  }
 0x3a7   :  { %4369 = vmatmul.mubr.bf16.vlgmr.msra.gmra.mxu1 %v6591_v23  ;;  %v5929_v23 = vld [vmem:[#allocation12 + $0x6a8] ss:$16 sps:$4 sm:$0xff]  }
 0x3a8   :  { %4412 = vmatmul.mubr.bf16.vlgmr.msra.gmra.mxu0 %v6593_v24  ;;  %4423 = vmatpush1.bf16.msra.mxu1 %v5914_v21  ;;  %v5937_v24 = vld [vmem:[#allocation12 + $0x68c] ss:$16 sps:$4 sm:$0xff]   ;;  %v5989_v21 = vld [vmem:[#allocation12 + $0x768] ss:$16 sps:$4 sm:$0xff]  }
 0x3a9   :  { %4454 = vmatprep.mubr.bf16.mxu1 %v6611_v62  ;;  %4466 = vmatpush1.bf16.msra.mxu0 %v5917_v22  ;;  %v5935_v62 = vld [vmem:[#allocation12 + $0x688] ss:$16 sps:$4 sm:$0xff]   ;;  %v5994_v22 = vld [vmem:[#allocation12 + $0x54c] ss:$16 sps:$4 sm:$0xff]  }
 0x3aa   :  { %4497 = vmatprep.mubr.bf16.mxu0 %v6613_v63  ;;  %4424 = vmatprep.subr.bf16.mxu1 %v5922_v26  ;;  %v5938_v63 = vld [vmem:[#allocation12 + $0x468] ss:$16 sps:$4 sm:$0xff]   ;;  %v5997_v26 = vld [vmem:[#allocation12 + $0x74c] ss:$16 sps:$4 sm:$0xff]  }
 0x3ab   :  { %4467 = vmatprep.subr.bf16.mxu0 %v5925_v27  ;;  %v5992_v27 = vld [vmem:[#allocation12 + $0x548] ss:$16 sps:$4 sm:$0xff]  }
 0x3ac   :  { %4425 = vmatpush1.bf16.msra.mxu1 %v5920_v37  ;;  %v5995_v37 = vld [vmem:[#allocation12 + $0x748] ss:$16 sps:$4 sm:$0xff]  }
 0x3ad   :  { %4468 = vmatpush1.bf16.msra.mxu0 %v5923_v28  ;;  %4426 = vmatprep.subr.bf16.mxu1 %v5928_v7  ;;  %v6000_v28 = vld [vmem:[#allocation12 + $0x52c] ss:$16 sps:$4 sm:$0xff]  }
 0x3ae   :  { %4469 = vmatprep.subr.bf16.mxu0 %v5931_v42  ;;  %v6003_v7 = vld [vmem:[#allocation12 + $0x72c] ss:$16 sps:$4 sm:$0xff]   ;;  %v5998_v42 = vld [vmem:[#allocation12 + $0x528] ss:$16 sps:$4 sm:$0xff]  }
 0x3b0   :  { %4427 = vmatpush1.bf16.msra.mxu1 %v5926_v31  ;;  %v6001_v31 = vld [vmem:[#allocation12 + $0x728] ss:$16 sps:$4 sm:$0xff]  }
 0x3b1   :  { %4470 = vmatpush1.bf16.msra.mxu0 %v5929_v23  ;;  %4428 = vmatprep.subr.bf16.mxu1 %v5934_v43  ;;  %v6006_v23 = vld [vmem:[#allocation12 + $0x50c] ss:$16 sps:$4 sm:$0xff]  }
 0x3b2   :  { %4471 = vmatprep.subr.bf16.mxu0 %v5937_v24  ;;  %v6009_v43 = vld [vmem:[#allocation12 + $0x70c] ss:$16 sps:$4 sm:$0xff]   ;;  %v6004_v24 = vld [vmem:[#allocation12 + $0x508] ss:$16 sps:$4 sm:$0xff]  }
 0x3b4   :  { %4429 = vmatpush1.bf16.msra.mxu1 %v5932_v39  ;;  %v6007_v39 = vld [vmem:[#allocation12 + $0x708] ss:$16 sps:$4 sm:$0xff]  }
 0x3b5   :  { %4472 = vmatpush1.bf16.msra.mxu0 %v5935_v62  ;;  %4430 = vmatprep.subr.bf16.mxu1 %v5940_v32  ;;  %v6012_v62 = vld [vmem:[#allocation12 + $0x8ec] ss:$16 sps:$4 sm:$0xff]  }
 0x3b6   :  { %4473 = vmatprep.subr.bf16.mxu0 %v5943_v8  ;;  %v6015_v32 = vld [vmem:[#allocation12 + $0xaec] ss:$16 sps:$4 sm:$0xff]   ;;  %v6010_v8 = vld [vmem:[#allocation12 + $0x8e8] ss:$16 sps:$4 sm:$0xff]  }
 0x3b8   :  { %4431 = vmatpush1.bf16.msra.mxu1 %v5938_v63  ;;  %v6013_v63 = vld [vmem:[#allocation12 + $0xae8] ss:$16 sps:$4 sm:$0xff]  }
 0x3b9   :  { %4474 = vmatpush1.bf16.msra.mxu0 %v5941_v13  ;;  %4432 = vmatprep.subr.bf16.mxu1 %v5946_v49  ;;  %v6018_v13 = vld [vmem:[#allocation12 + $0x8cc] ss:$16 sps:$4 sm:$0xff]  }
 0x3ba   :  { %4475 = vmatprep.subr.bf16.mxu0 %v5949_v60  ;;  %v6021_v49 = vld [vmem:[#allocation12 + $0xacc] ss:$16 sps:$4 sm:$0xff]   ;;  %v6016_v60 = vld [vmem:[#allocation12 + $0x8c8] ss:$16 sps:$4 sm:$0xff]  }
 0x3bc   :  { %4433 = vmatpush1.bf16.msra.mxu1 %v5944_v51  ;;  %v6019_v51 = vld [vmem:[#allocation12 + $0xac8] ss:$16 sps:$4 sm:$0xff]  }
 0x3bd   :  { %4476 = vmatpush1.bf16.msra.mxu0 %v5947_v52  ;;  %4434 = vmatprep.subr.bf16.mxu1 %v5952_v53  ;;  %v6024_v52 = vld [vmem:[#allocation12 + $0x8ac] ss:$16 sps:$4 sm:$0xff]  }
 0x3be   :  { %4477 = vmatprep.subr.bf16.mxu0 %v5955_v55  ;;  %v6027_v53 = vld [vmem:[#allocation12 + $0xaac] ss:$16 sps:$4 sm:$0xff]   ;;  %v6022_v55 = vld [vmem:[#allocation12 + $0x8a8] ss:$16 sps:$4 sm:$0xff]  }
 0x3c0   :  { %4435 = vmatpush1.bf16.msra.mxu1 %v5950_v56  ;;  %v6030_v56 = vld [vmem:[#allocation12 + $0x88c] ss:$16 sps:$4 sm:$0xff]  }
 0x3c1   :  { %4478 = vmatpush1.bf16.msra.mxu0 %v5953_v57  ;;  %4436 = vmatprep.subr.bf16.mxu1 %v5958_v58  ;;  %v6028_v57 = vld [vmem:[#allocation12 + $0x888] ss:$16 sps:$4 sm:$0xff]   ;;  %v6036_v58 = vld [vmem:[#allocation12 + $0x86c] ss:$16 sps:$4 sm:$0xff]  }
 0x3c2   :  { %4479 = vmatprep.subr.bf16.mxu0 %v5961_v59  ;;  %v6039_v59 = vld [vmem:[#allocation12 + $0xa6c] ss:$16 sps:$4 sm:$0xff]  }
 0x3c4   :  { %4437 = vmatpush1.bf16.msra.mxu1 %v5956_v0  ;;  %v6037_v0 = vld [vmem:[#allocation12 + $0xa68] ss:$16 sps:$4 sm:$0xff]  }
 0x3c5   :  { %4480 = vmatpush1.bf16.msra.mxu0 %v5959_v1  ;;  %4438 = vmatprep.subr.bf16.mxu1 %v5964_v2  ;;  %v6042_v1 = vld [vmem:[#allocation12 + $0x84c] ss:$16 sps:$4 sm:$0xff]  }
 0x3c6   :  { %4481 = vmatprep.subr.bf16.mxu0 %v5967_v3  ;;  %v6045_v2 = vld [vmem:[#allocation12 + $0xa4c] ss:$16 sps:$4 sm:$0xff]   ;;  %v6040_v3 = vld [vmem:[#allocation12 + $0x848] ss:$16 sps:$4 sm:$0xff]  }
 0x3c8   :  { %4439 = vmatpush2.bf16.msra.mxu1 %v5962_v40  ;;  %v6043_v40 = vld [vmem:[#allocation12 + $0xa48] ss:$16 sps:$4 sm:$0xff]  }
 0x3c9   :  { %4482 = vmatpush2.bf16.msra.mxu0 %v5965_v41  ;;  %4440 = vmatprep.subr.bf16.mxu1 %v5970_v6  ;;  %v6048_v41 = vld [vmem:[#allocation12 + $0x82c] ss:$16 sps:$4 sm:$0xff]  }
 0x3ca   :  { %4483 = vmatprep.subr.bf16.mxu0 %v5973_v9  ;;  %v6051_v6 = vld [vmem:[#allocation12 + $0xa2c] ss:$16 sps:$4 sm:$0xff]   ;;  %v6046_v9 = vld [vmem:[#allocation12 + $0x828] ss:$16 sps:$4 sm:$0xff]  }
 0x3cc   :  { %4441 = vmatpush2.bf16.msra.mxu1 %v5968_v10  ;;  %v6049_v10 = vld [vmem:[#allocation12 + $0xa28] ss:$16 sps:$4 sm:$0xff]  }
 0x3cd   :  { %4484 = vmatpush2.bf16.msra.mxu0 %v5971_v11  ;;  %4442 = vmatprep.subr.bf16.mxu1 %v5976_v14  ;;  %v6054_v11 = vld [vmem:[#allocation12 + $0x80c] ss:$16 sps:$4 sm:$0xff]  }
 0x3ce   :  { %4485 = vmatprep.subr.bf16.mxu0 %v5979_v15  ;;  %v6057_v14 = vld [vmem:[#allocation12 + $0xa0c] ss:$16 sps:$4 sm:$0xff]   ;;  %v6052_v15 = vld [vmem:[#allocation12 + $0x808] ss:$16 sps:$4 sm:$0xff]  }
 0x3d0   :  { %4443 = vmatpush2.bf16.msra.mxu1 %v5974_v35  ;;  %v6055_v35 = vld [vmem:[#allocation12 + $0xa08] ss:$16 sps:$4 sm:$0xff]  }
 0x3d1   :  { %4486 = vmatpush2.bf16.msra.mxu0 %v5977_v16  ;;  %4444 = vmatprep.subr.bf16.mxu1 %v5982_v36  ;;  %v6060_v16 = vld [vmem:[#allocation12 + $0x9ec] ss:$16 sps:$4 sm:$0xff]  }
 0x3d2   :  { %4487 = vmatprep.subr.bf16.mxu0 %v5985_v19  ;;  %v6063_v36 = vld [vmem:[#allocation12 + $0xbec] ss:$16 sps:$4 sm:$0xff]   ;;  %v6058_v19 = vld [vmem:[#allocation12 + $0x9e8] ss:$16 sps:$4 sm:$0xff]  }
 0x3d4   :  { %4445 = vmatpush2.bf16.msra.mxu1 %v5980_v48  ;;  %v6061_v48 = vld [vmem:[#allocation12 + $0xbe8] ss:$16 sps:$4 sm:$0xff]  }
 0x3d5   :  { %4488 = vmatpush2.bf16.msra.mxu0 %v5983_v25  ;;  %4446 = vmatprep.subr.bf16.mxu1 %v5988_v20  ;;  %v6066_v25 = vld [vmem:[#allocation12 + $0x9cc] ss:$16 sps:$4 sm:$0xff]  }
 0x3d6   :  { %4489 = vmatprep.subr.bf16.mxu0 %v5991_v17  ;;  %v6069_v20 = vld [vmem:[#allocation12 + $0xbcc] ss:$16 sps:$4 sm:$0xff]   ;;  %v6064_v17 = vld [vmem:[#allocation12 + $0x9c8] ss:$16 sps:$4 sm:$0xff]  }
 0x3d8   :  { %4447 = vmatpush2.bf16.msra.mxu1 %v5986_v18  ;;  %v6067_v18 = vld [vmem:[#allocation12 + $0xbc8] ss:$16 sps:$4 sm:$0xff]  }
 0x3d9   :  { %4490 = vmatpush2.bf16.msra.mxu0 %v5989_v21  ;;  %4448 = vmatprep.subr.bf16.mxu1 %v5994_v22  ;;  %v6072_v21 = vld [vmem:[#allocation12 + $0x9ac] ss:$16 sps:$4 sm:$0xff]  }
 0x3da   :  { %4491 = vmatprep.subr.bf16.mxu0 %v5997_v26  ;;  %v6075_v22 = vld [vmem:[#allocation12 + $0xbac] ss:$16 sps:$4 sm:$0xff]   ;;  %v6070_v26 = vld [vmem:[#allocation12 + $0x9a8] ss:$16 sps:$4 sm:$0xff]  }
 0x3dc   :  { %4449 = vmatpush2.bf16.msra.mxu1 %v5992_v27  ;;  %v6073_v27 = vld [vmem:[#allocation12 + $0xba8] ss:$16 sps:$4 sm:$0xff]  }
 0x3dd   :  { %4492 = vmatpush2.bf16.msra.mxu0 %v5995_v37  ;;  %4450 = vmatprep.subr.bf16.mxu1 %v6000_v28  ;;  %v6078_v37 = vld [vmem:[#allocation12 + $0x98c] ss:$16 sps:$4 sm:$0xff]  }
 0x3de   :  { %4493 = vmatprep.subr.bf16.mxu0 %v6003_v7  ;;  %v6081_v28 = vld [vmem:[#allocation12 + $0xb8c] ss:$16 sps:$4 sm:$0xff]   ;;  %v6076_v7 = vld [vmem:[#allocation12 + $0x988] ss:$16 sps:$4 sm:$0xff]  }
 0x3e0   :  { %4451 = vmatpush2.bf16.msra.mxu1 %v5998_v42  ;;  %v6079_v42 = vld [vmem:[#allocation12 + $0xb88] ss:$16 sps:$4 sm:$0xff]  }
 0x3e1   :  { %4494 = vmatpush2.bf16.msra.mxu0 %v6001_v31  ;;  %4452 = vmatprep.subr.bf16.mxu1 %v6006_v23  ;;  %v6084_v31 = vld [vmem:[#allocation12 + $0x96c] ss:$16 sps:$4 sm:$0xff]  }
 0x3e2   :  { %4495 = vmatprep.subr.bf16.mxu0 %v6009_v43  ;;  %v6087_v23 = vld [vmem:[#allocation12 + $0xb6c] ss:$16 sps:$4 sm:$0xff]   ;;  %v6082_v43 = vld [vmem:[#allocation12 + $0x968] ss:$16 sps:$4 sm:$0xff]  }
 0x3e4   :  { %4453 = vmatpush2.bf16.msra.mxu1 %v6004_v24  ;;  %v6085_v24 = vld [vmem:[#allocation12 + $0xb68] ss:$16 sps:$4 sm:$0xff]  }
 0x3e5   :  { %4496 = vmatpush2.bf16.msra.mxu0 %v6007_v39  ;;  %4508 = vmatprep.subr.bf16.mxu1 %v6012_v62  ;;  %v6090_v39 = vld [vmem:[#allocation12 + $0x94c] ss:$16 sps:$4 sm:$0xff]  }
 0x3e6   :  { %4551 = vmatprep.subr.bf16.mxu0 %v6015_v32  ;;  %v6093_v62 = vld [vmem:[#allocation12 + $0xb4c] ss:$16 sps:$4 sm:$0xff]   ;;  %v6088_v32 = vld [vmem:[#allocation12 + $0x948] ss:$16 sps:$4 sm:$0xff]  }
 0x3e7   :  { %4455 = vmatmul.mubr.bf16.vlgmr.msra.gmra.mxu1 %v6655_v33  ;;  %v6025_v33 = vld [vmem:[#allocation12 + $0xaa8] ss:$16 sps:$4 sm:$0xff]  }
 0x3e8   :  { %4498 = vmatmul.mubr.bf16.vlgmr.msra.gmra.mxu0 %v6657_v50  ;;  %4509 = vmatpush1.bf16.msra.mxu1 %v6010_v8  ;;  %v6033_v50 = vld [vmem:[#allocation12 + $0xa8c] ss:$16 sps:$4 sm:$0xff]   ;;  %v6091_v8 = vld [vmem:[#allocation12 + $0xb48] ss:$16 sps:$4 sm:$0xff]  }
 0x3e9   :  { %4540 = vmatprep.mubr.bf16.mxu1 %v6659_v61  ;;  %4552 = vmatpush1.bf16.msra.mxu0 %v6013_v63  ;;  %v6031_v61 = vld [vmem:[#allocation12 + $0xa88] ss:$16 sps:$4 sm:$0xff]   ;;  %v6096_v63 = vld [vmem:[#allocation12 + $0x92c] ss:$16 sps:$4 sm:$0xff]  }
 0x3ea   :  { %4583 = vmatprep.mubr.bf16.mxu0 %v6662_v54  ;;  %4510 = vmatprep.subr.bf16.mxu1 %v6018_v13  ;;  %v6034_v54 = vld [vmem:[#allocation12 + $0x868] ss:$16 sps:$4 sm:$0xff]   ;;  %v6099_v13 = vld [vmem:[#allocation12 + $0xb2c] ss:$16 sps:$4 sm:$0xff]  }
 0x3eb   :  { %4553 = vmatprep.subr.bf16.mxu0 %v6021_v49  ;;  %v6094_v49 = vld [vmem:[#allocation12 + $0x928] ss:$16 sps:$4 sm:$0xff]  }
 0x3ec   :  { %4511 = vmatpush1.bf16.msra.mxu1 %v6016_v60  ;;  %v6097_v60 = vld [vmem:[#allocation12 + $0xb28] ss:$16 sps:$4 sm:$0xff]  }
 0x3ed   :  { %4554 = vmatpush1.bf16.msra.mxu0 %v6019_v51  ;;  %4512 = vmatprep.subr.bf16.mxu1 %v6024_v52  ;;  %v6102_v51 = vld [vmem:[#allocation12 + $0x90c] ss:$16 sps:$4 sm:$0xff]   ;;  %v6693_v52 = vpop.f32.mrf.mxu1 }
 0x3ee   :  { %4555 = vmatprep.subr.bf16.mxu0 %v6027_v53  ;;  %v6105_v53 = vld [vmem:[#allocation12 + $0xb0c] ss:$16 sps:$4 sm:$0xff]  }
 0x3f0   :  { %4513 = vmatpush1.bf16.msra.mxu1 %v6022_v55  ;;  %v6100_v55 = vld [vmem:[#allocation12 + $0x908] ss:$16 sps:$4 sm:$0xff]  }
 0x3f1   :  { %4556 = vmatpush1.bf16.msra.mxu0 %v6025_v33  ;;  %4514 = vmatprep.subr.bf16.mxu1 %v6030_v56  ;;  %v6103_v33 = vld [vmem:[#allocation12 + $0xb08] ss:$16 sps:$4 sm:$0xff]   ;;  %v6108_v56 = vld [vmem:[#allocation12 + $0xcec] ss:$16 sps:$4 sm:$0xff]  }
 0x3f2   :  { %4557 = vmatprep.subr.bf16.mxu0 %v6033_v50  ;;  %v6695_v50 = vpop.f32.mrf.mxu1 }
 0x3f4   :  { %4515 = vmatpush1.bf16.msra.mxu1 %v6028_v57  ;;  %v6111_v57 = vld [vmem:[#allocation12 + $0xeec] ss:$16 sps:$4 sm:$0xff]  }
 0x3f5   :  { %4558 = vmatpush1.bf16.msra.mxu0 %v6031_v61  ;;  %4516 = vmatprep.subr.bf16.mxu1 %v6036_v58  ;;  %v6697_v61 = vpop.f32.mrf.mxu0  ;;  %v6106_v58 = vld [vmem:[#allocation12 + $0xce8] ss:$16 sps:$4 sm:$0xff]  }
 0x3f6   :  { %4559 = vmatprep.subr.bf16.mxu0 %v6039_v59  ;;  %v6109_v59 = vld [vmem:[#allocation12 + $0xee8] ss:$16 sps:$4 sm:$0xff]  }
 0x3f8   :  { %4517 = vmatpush1.bf16.msra.mxu1 %v6034_v54  ;;  %v6699_v54 = vpop.f32.mrf.mxu1 }
 0x3f9   :  { %4560 = vmatpush1.bf16.msra.mxu0 %v6037_v0  ;;  %4518 = vmatprep.subr.bf16.mxu1 %v6042_v1  ;;  %v6114_v0 = vld [vmem:[#allocation12 + $0xccc] ss:$16 sps:$4 sm:$0xff]  }
 0x3fa   :  { %4561 = vmatprep.subr.bf16.mxu0 %v6045_v2  ;;  %v6117_v1 = vld [vmem:[#allocation12 + $0xecc] ss:$16 sps:$4 sm:$0xff]   ;;  %v6702_v2 = vpop.f32.mrf.mxu0 }
 0x3fc   :  { %4519 = vmatpush1.bf16.msra.mxu1 %v6040_v3  ;;  %v6112_v3 = vld [vmem:[#allocation12 + $0xcc8] ss:$16 sps:$4 sm:$0xff]  }
 0x3fd   :  { %4562 = vmatpush1.bf16.msra.mxu0 %v6043_v40  ;;  %4520 = vmatprep.subr.bf16.mxu1 %v6048_v41  ;;  %v6115_v40 = vld [vmem:[#allocation12 + $0xec8] ss:$16 sps:$4 sm:$0xff]   ;;  %v6120_v41 = vld [vmem:[#allocation12 + $0xcac] ss:$16 sps:$4 sm:$0xff]  }
 0x3fe   :  { %4563 = vmatprep.subr.bf16.mxu0 %v6051_v6  ;;  %v6706_v6 = vpop.f32.mrf.mxu1 }
 0x400   :  { %4521 = vmatpush1.bf16.msra.mxu1 %v6046_v9  ;;  %v6123_v9 = vld [vmem:[#allocation12 + $0xeac] ss:$16 sps:$4 sm:$0xff]  }
 0x401   :  { %4564 = vmatpush1.bf16.msra.mxu0 %v6049_v10  ;;  %4522 = vmatprep.subr.bf16.mxu1 %v6054_v11  ;;  %v6711_v10 = vpop.f32.mrf.mxu1  ;;  %v6121_v11 = vld [vmem:[#allocation12 + $0xea8] ss:$16 sps:$4 sm:$0xff]  }
 0x402   :  { %4565 = vmatprep.subr.bf16.mxu0 %v6057_v14  ;;  %v6129_v14 = vld [vmem:[#allocation12 + $0xe8c] ss:$16 sps:$4 sm:$0xff]  }
 0x404   :  { %4523 = vmatpush1.bf16.msra.mxu1 %v6052_v15 }
 0x405   :  { %4566 = vmatpush1.bf16.msra.mxu0 %v6055_v35  ;;  %4524 = vmatprep.subr.bf16.mxu1 %v6060_v16  ;;  %v6715_v35 = vpop.f32.mrf.mxu1  ;;  %v6127_v16 = vld [vmem:[#allocation12 + $0xe88] ss:$16 sps:$4 sm:$0xff]  }
 0x406   :  { %4567 = vmatprep.subr.bf16.mxu0 %v6063_v36  ;;  %v6132_v36 = vld [vmem:[#allocation12 + $0xc6c] ss:$16 sps:$4 sm:$0xff]  }
 0x408   :  { %4525 = vmatpush2.bf16.msra.mxu1 %v6058_v19 }
 0x409   :  { %4568 = vmatpush2.bf16.msra.mxu0 %v6061_v48  ;;  %4526 = vmatprep.subr.bf16.mxu1 %v6066_v25  ;;  %v6135_v48 = vld [vmem:[#allocation12 + $0xe6c] ss:$16 sps:$4 sm:$0xff]   ;;  %v6719_v25 = vpop.f32.mrf.mxu1 }
 0x40a   :  { %4569 = vmatprep.subr.bf16.mxu0 %v6069_v20  ;;  %v6130_v20 = vld [vmem:[#allocation12 + $0xc68] ss:$16 sps:$4 sm:$0xff]  }
 0x40c   :  { %4527 = vmatpush2.bf16.msra.mxu1 %v6064_v17  ;;  %v6133_v17 = vld [vmem:[#allocation12 + $0xe68] ss:$16 sps:$4 sm:$0xff]  }
 0x40d   :  { %4570 = vmatpush2.bf16.msra.mxu0 %v6067_v18  ;;  %4528 = vmatprep.subr.bf16.mxu1 %v6072_v21  ;;  %v6138_v18 = vld [vmem:[#allocation12 + $0xc4c] ss:$16 sps:$4 sm:$0xff]  }
 0x40e   :  { %4571 = vmatprep.subr.bf16.mxu0 %v6075_v22  ;;  %v6141_v22 = vld [vmem:[#allocation12 + $0xe4c] ss:$16 sps:$4 sm:$0xff]  }
 0x410   :  { %4529 = vmatpush2.bf16.msra.mxu1 %v6070_v26  ;;  %v4118_v26 = vpop.f32.mrf.mxu1 }
 0x411   :  { %4572 = vmatpush2.bf16.msra.mxu0 %v6073_v27  ;;  %4530 = vmatprep.subr.bf16.mxu1 %v6078_v37  ;;  %v6136_v27 = vld [vmem:[#allocation12 + $0xc48] ss:$16 sps:$4 sm:$0xff]  }
 0x412   :  { %4573 = vmatprep.subr.bf16.mxu0 %v6081_v28  ;;  %v6139_v37 = vld [vmem:[#allocation12 + $0xe48] ss:$16 sps:$4 sm:$0xff]   ;;  %v6144_v28 = vld [vmem:[#allocation12 + $0xc2c] ss:$16 sps:$4 sm:$0xff]  }
 0x414   :  { %4531 = vmatpush2.bf16.msra.mxu1 %v6076_v7 }
 0x415   :  { %4574 = vmatpush2.bf16.msra.mxu0 %v6079_v42  ;;  %4532 = vmatprep.subr.bf16.mxu1 %v6084_v31  ;;  %v6725_v42 = vpop.f32.mrf.mxu1  ;;  %v6147_v31 = vld [vmem:[#allocation12 + $0xe2c] ss:$16 sps:$4 sm:$0xff]  }
 0x416   :  { %4575 = vmatprep.subr.bf16.mxu0 %v6087_v23  ;;  %v6142_v23 = vld [vmem:[#allocation12 + $0xc28] ss:$16 sps:$4 sm:$0xff]  }
 0x418   :  { %4533 = vmatpush2.bf16.msra.mxu1 %v6082_v43  ;;  %v6145_v43 = vld [vmem:[#allocation12 + $0xe28] ss:$16 sps:$4 sm:$0xff]  }
 0x419   :  { %4576 = vmatpush2.bf16.msra.mxu0 %v6085_v24  ;;  %4534 = vmatprep.subr.bf16.mxu1 %v6090_v39  ;;  %v6150_v24 = vld [vmem:[#allocation12 + $0xc0c] ss:$16 sps:$4 sm:$0xff]  }
 0x41a   :  { %4577 = vmatprep.subr.bf16.mxu0 %v6093_v62  ;;  %v6727_v62 = vpop.f32.mrf.mxu1 }
 0x41c   :  { %4535 = vmatpush2.bf16.msra.mxu1 %v6088_v32  ;;  %v6153_v32 = vld [vmem:[#allocation12 + $0xe0c] ss:$16 sps:$4 sm:$0xff]  }
 0x41d   :  { %4578 = vmatpush2.bf16.msra.mxu0 %v6091_v8  ;;  %4536 = vmatprep.subr.bf16.mxu1 %v6096_v63  ;;  %v6148_v63 = vld [vmem:[#allocation12 + $0xc08] ss:$16 sps:$4 sm:$0xff]  }
 0x41e   :  { %4579 = vmatprep.subr.bf16.mxu0 %v6099_v13  ;;  %v6151_v13 = vld [vmem:[#allocation12 + $0xe08] ss:$16 sps:$4 sm:$0xff]  }
 0x420   :  { %4537 = vmatpush2.bf16.msra.mxu1 %v6094_v49  ;;  %v6156_v49 = vld [vmem:[#allocation12 + $0xdec] ss:$16 sps:$4 sm:$0xff]  }
 0x421   :  { %4580 = vmatpush2.bf16.msra.mxu0 %v6097_v60  ;;  %4538 = vmatprep.subr.bf16.mxu1 %v6102_v51  ;;  %v6731_v60 = vld [vmem:[#allocation14] sm:$0xf]  ;;  %v6733_v51 = vpop.f32.mrf.mxu1 }
 0x422   :  { %4581 = vmatprep.subr.bf16.mxu0 %v6105_v53  ;;  %v6159_v53 = vld [vmem:[#allocation12 + $0xfec] ss:$16 sps:$4 sm:$0xff]  }
 0x424   :  { %4539 = vmatpush2.bf16.msra.mxu1 %v6100_v55  ;;  %v1419_v55 = vrot.slane %v6731_v60, %v6560_v44 }
 0x425   :  { %4582 = vmatpush2.bf16.msra.mxu0 %v6103_v33  ;;  %4594 = vmatprep.subr.bf16.mxu1 %v6108_v56  ;;  %v6154_v56 = vld [vmem:[#allocation12 + $0xde8] ss:$16 sps:$4 sm:$0xff]  }
 0x426   :  { %4637 = vmatprep.subr.bf16.mxu0 %v6111_v57  ;;  %v4033_v57 = vadd.f32 %v6706_v6, %v1419_v55 }
 0x427   :  { %4541 = vmatmul.mubr.bf16.vlgmr.msra.gmra.mxu1 %v6621_v29  ;;  %v6709_v29 = vpop.f32.mrf.mxu0 }
 0x428   :  { %4584 = vmatmul.mubr.bf16.vlgmr.msra.gmra.mxu0 %v6623_v30  ;;  %4595 = vmatpush1.bf16.msra.mxu1 %v6106_v58  ;;  %v6118_v30 = vld [vmem:[#allocation12 + $0xca8] ss:$16 sps:$4 sm:$0xff]  }
 0x429   :  { %4626 = vmatprep.mubr.bf16.mxu1 %v6673_v38  ;;  %4638 = vmatpush1.bf16.msra.mxu0 %v6109_v59  ;;  %v6126_v38 = vld [vmem:[#allocation12 + $0xc8c] ss:$16 sps:$4 sm:$0xff]   ;;  %v6713_v15 = vpop.f32.mrf.mxu0  ;;  %v6157_v58 = vld [vmem:[#allocation12 + $0xfe8] ss:$16 sps:$4 sm:$0xff]  }
 0x42a   :  { %4669 = vmatprep.mubr.bf16.mxu0 %v6676_v12  ;;  %4596 = vmatprep.subr.bf16.mxu1 %v6114_v0  ;;  %v6124_v12 = vld [vmem:[#allocation12 + $0xc88] ss:$16 sps:$4 sm:$0xff]   ;;  %v6162_v59 = vld [vmem:[#allocation12 + $0xdcc] ss:$16 sps:$4 sm:$0xff]   ;;  %v1415_v0 = vrot.slane %v6731_v60, %v6566_v46  ;;  %v4076_v6 = vadd.f32 %v6713_v15, %v4033_v57 }
 0x42b   :  { %4639 = vmatprep.subr.bf16.mxu0 %v6117_v1  ;;  %v6717_v19 = vpop.f32.mrf.mxu0  ;;  %v4204_v1 = vpop.f32.mrf.mxu1  ;;  %v6169_v15 = vld [vmem:[#allocation12 + $0xfa8] ss:$16 sps:$4 sm:$0xff]  }
 0x42c   :  { %4597 = vmatpush1.bf16.msra.mxu1 %v6112_v3  ;;  %v6165_v3 = vld [vmem:[#allocation12 + $0xfcc] ss:$16 sps:$4 sm:$0xff]   ;;  %v4031_v44 = vadd.f32 %v6699_v54, %v1415_v0 }
 0x42d   :  { %4640 = vmatpush1.bf16.msra.mxu0 %v6115_v40  ;;  %4598 = vmatprep.subr.bf16.mxu1 %v6120_v41  ;;  %v6721_v21 = vpop.f32.mrf.mxu0  ;;  %v4029_v40 = vadd.f32 %v6695_v50, %v1419_v55  ;;  %v4119_v50 = vadd.f32 %v4118_v26, %v4076_v6 }
 0x42e   :  { %4641 = vmatprep.subr.bf16.mxu0 %v6123_v9  ;;  %v6744_v9 = vpop.f32.mrf.mxu1  ;;  %v4074_v54 = vadd.f32 %v6709_v29, %v4031_v44 }
 0x42f   :  { %v6723_v7 = vpop.f32.mrf.mxu0 }
 0x430   :  { %4599 = vmatpush1.bf16.msra.mxu1 %v6118_v30  ;;  %v6160_v30 = vld [vmem:[#allocation12 + $0xdc8] ss:$16 sps:$4 sm:$0xff]  }
 0x431   :  { %4642 = vmatpush1.bf16.msra.mxu0 %v6121_v11  ;;  %4600 = vmatprep.subr.bf16.mxu1 %v6126_v38  ;;  %v4161_v39 = vpop.f32.mrf.mxu0  ;;  %v6163_v11 = vld [vmem:[#allocation12 + $0xfc8] ss:$16 sps:$4 sm:$0xff]   ;;  %v6168_v38 = vld [vmem:[#allocation12 + $0xdac] ss:$16 sps:$4 sm:$0xff]  }
 0x432   :  { %4643 = vmatprep.subr.bf16.mxu0 %v6129_v14  ;;  %v4027_v14 = vadd.f32 %v6693_v52, %v1415_v0  ;;  %v4117_v52 = vadd.f32 %v6719_v25, %v4074_v54  ;;  %v4162_v26 = vadd.f32 %v4161_v39, %v4119_v50  ;;  %v6183_v25 = vld [vmem:[#allocation12 + $0xf6c] ss:$16 sps:$4 sm:$0xff]   ;;  %v6199_v54 = vld [vmem:[#allocation12 + $0xf08] ss:$16 sps:$4 sm:$0xff]  }
 0x433   :  { %v6729_v8 = vpop.f32.mrf.mxu0  ;;  %v6192_v0 = vld [vmem:[#allocation12 + $0xd2c] ss:$16 sps:$4 sm:$0xff]  }
 0x434   :  { %4601 = vmatpush1.bf16.msra.mxu1 %v6124_v12  ;;  %v6171_v12 = vld [vmem:[#allocation12 + $0xfac] ss:$16 sps:$4 sm:$0xff]  }
 0x435   :  { %4644 = vmatpush1.bf16.msra.mxu0 %v6127_v16  ;;  %4602 = vmatprep.subr.bf16.mxu1 %v6132_v36  ;;  %v6737_v33 = vpop.f32.mrf.mxu0  ;;  %v4072_v16 = vadd.f32 %v6702_v2, %v4029_v40  ;;  %v6177_v2 = vld [vmem:[#allocation12 + $0xf8c] ss:$16 sps:$4 sm:$0xff]  }
 0x436   :  { %4645 = vmatprep.subr.bf16.mxu0 %v6135_v48  ;;  %v4286_v48 = vpop.f32.mrf.mxu1 }
 0x437   :  { %v4245_v41 = vpop.f32.mrf.mxu0 }
 0x438   :  { %4603 = vmatpush1.bf16.msra.mxu1 %v6130_v20  ;;  %v6166_v20 = vld [vmem:[#allocation12 + $0xda8] ss:$16 sps:$4 sm:$0xff]  }
 0x439   :  { %4646 = vmatpush1.bf16.msra.mxu0 %v6133_v17  ;;  %4604 = vmatprep.subr.bf16.mxu1 %v6138_v18  ;;  %v4247_v36 = vpop.f32.mrf.mxu0  ;;  %v4115_v17 = vadd.f32 %v6715_v35, %v4072_v16  ;;  %v6174_v18 = vld [vmem:[#allocation12 + $0xd8c] ss:$16 sps:$4 sm:$0xff]   ;;  %v4205_v35 = vadd.f32 %v4204_v1, %v4162_v26 }
 0x43a   :  { %4647 = vmatprep.subr.bf16.mxu0 %v6141_v22  ;;  %v4070_v22 = vadd.f32 %v6697_v61, %v4027_v14  ;;  %v4160_v61 = vadd.f32 %v6723_v7, %v4117_v52  ;;  %v6201_v14 = vld [vmem:[#allocation12 + $0xf0c] ss:$16 sps:$4 sm:$0xff]  }
 0x43c   :  { %4605 = vmatpush1.bf16.msra.mxu1 %v6136_v27  ;;  %v4327_v27 = vpop.f32.mrf.mxu0  ;;  %v4113_v29 = vadd.f32 %v6711_v10, %v4070_v22  ;;  %v4203_v10 = vadd.f32 %v6733_v51, %v4160_v61  ;;  %v5395_v22 = vld.sshfl [vmem:[#allocation15] sm:$0x33 pattern:$0x75316420] }
 0x43d   :  { %4648 = vmatpush1.bf16.msra.mxu0 %v6139_v37  ;;  %4606 = vmatprep.subr.bf16.mxu1 %v6144_v28  ;;  %v4288_v37 = vpop.f32.mrf.mxu1  ;;  %v6172_v28 = vld [vmem:[#allocation12 + $0xd88] ss:$16 sps:$4 sm:$0xff]   ;;  %v4711_v52 = vcombine.high %v5395_v22, %v5395_v22 }
 0x43e   :  { %4649 = vmatprep.subr.bf16.mxu0 %v6147_v31  ;;  %v4158_v31 = vadd.f32 %v6721_v21, %v4115_v17  ;;  %v4156_v39 = vadd.f32 %v6717_v19, %v4113_v29  ;;  %v4248_v21 = vadd.f32 %v4247_v36, %v4205_v35  ;;  %v6184_v19 = vld [vmem:[#allocation12 + $0xd48] ss:$16 sps:$4 sm:$0xff]   ;;  %v6418_v17 = vmov 1966171168  }
 0x440   :  { %4607 = vmatpush1.bf16.msra.mxu1 %v6142_v23  ;;  %v6175_v23 = vld [vmem:[#allocation12 + $0xf88] ss:$16 sps:$4 sm:$0xff]   ;;  %v4199_v55 = vadd.f32 %v6725_v42, %v4156_v39  ;;  %v6195_v42 = vld [vmem:[#allocation12 + $0xf2c] ss:$16 sps:$4 sm:$0xff]  }
 0x441   :  { %4650 = vmatpush1.bf16.msra.mxu0 %v6145_v43  ;;  %4608 = vmatprep.subr.bf16.mxu1 %v6150_v24  ;;  %v6180_v43 = vld [vmem:[#allocation12 + $0xd6c] ss:$16 sps:$4 sm:$0xff]   ;;  %v4329_v24 = vpop.f32.mrf.mxu0 }
 0x442   :  { %4651 = vmatprep.subr.bf16.mxu0 %v6153_v32  ;;  %v4201_v32 = vadd.f32 %v6727_v62, %v4158_v31  ;;  %v4242_v1 = vadd.f32 %v6729_v8, %v4199_v55  ;;  %v6196_v8 = vld [vmem:[#allocation12 + $0xd08] ss:$16 sps:$4 sm:$0xff]  }
 0x443   :  { %v4331_v7 = vpop.f32.mrf.mxu0 }
 0x444   :  { %4609 = vmatpush1.bf16.msra.mxu1 %v6148_v63  ;;  %v4290_v63 = vpop.f32.mrf.mxu1  ;;  %v4244_v57 = vadd.f32 %v6737_v33, %v4201_v32  ;;  %v6190_v33 = vld [vmem:[#allocation12 + $0xd28] ss:$16 sps:$4 sm:$0xff]  }
 0x445   :  { %4652 = vmatpush1.bf16.msra.mxu0 %v6151_v13  ;;  %4610 = vmatprep.subr.bf16.mxu1 %v6156_v49  ;;  %v6178_v13 = vld [vmem:[#allocation12 + $0xd68] ss:$16 sps:$4 sm:$0xff]   ;;  %v4291_v62 = vadd.f32 %v4290_v63, %v4248_v21  ;;  %v4333_v40 = vpop.f32.mrf.mxu0 }
 0x446   :  { %4653 = vmatprep.subr.bf16.mxu0 %v6159_v53  ;;  %v6181_v49 = vld [vmem:[#allocation12 + $0xf68] ss:$16 sps:$4 sm:$0xff]   ;;  %v6186_v53 = vld [vmem:[#allocation12 + $0xd4c] ss:$16 sps:$4 sm:$0xff]   ;;  %v4287_v51 = vadd.f32 %v4286_v48, %v4244_v57 }
 0x447   :  { %v4334_v44 = vadd.f32 %v4333_v40, %v4291_v62 }
 0x448   :  { %4611 = vmatpush2.bf16.msra.mxu1 %v6154_v56  ;;  %v6189_v56 = vld [vmem:[#allocation12 + $0xf4c] ss:$16 sps:$4 sm:$0xff]   ;;  %v4330_v6 = vadd.f32 %v4329_v24, %v4287_v51 }
 0x449   :  { %4654 = vmatpush2.bf16.msra.mxu0 %v6157_v58  ;;  %4612 = vmatprep.subr.bf16.mxu1 %v6162_v59  ;;  %v4246_v58 = vadd.f32 %v4245_v41, %v4203_v10  ;;  %v6187_v59 = vld [vmem:[#allocation12 + $0xf48] ss:$16 sps:$4 sm:$0xff]   ;;  %v1427_v10 = vrot.slane %v6731_v60, %v6563_v45 }
 0x44a   :  { %4655 = vmatprep.subr.bf16.mxu0 %v6165_v3  ;;  %v6193_v41 = vld [vmem:[#allocation12 + $0xf28] ss:$16 sps:$4 sm:$0xff]   ;;  %v4681_v50 = vmax.f32 %v4330_v6, 0.0 }
 0x44b   :  { %v4289_v3 = vadd.f32 %v4288_v37, %v4246_v58  ;;  %v4693_v37 = vld [vmem:[#allocation2] sm:$0x1] }
 0x44c   :  { %4613 = vmatpush2.bf16.msra.mxu1 %v6160_v30  ;;  %v4285_v30 = vadd.f32 %v6744_v9, %v4242_v1  ;;  %4696 = vperm.xlu1 %5430, %v4693_v37  }
 0x44d   :  { %4656 = vmatpush2.bf16.msra.mxu0 %v6163_v11  ;;  %4614 = vmatprep.subr.bf16.mxu1 %v6168_v38  ;;  %v6198_v11 = vld [vmem:[#allocation12 + $0xd0c] ss:$16 sps:$4 sm:$0xff]   ;;  %v4332_v38 = vadd.f32 %v4331_v7, %v4289_v3 }
 0x44e   :  { %4657 = vmatprep.subr.bf16.mxu0 %v6171_v12  ;;  %v4685_v12 = vmax.f32 %v4334_v44, 0.0  ;;  %v4328_v16 = vadd.f32 %v4327_v27, %v4285_v30 }
 0x44f   :  { %v4684_v36 = vmax.f32 %v4332_v38, 0.0 }
 0x450   :  { %4615 = vmatpush2.bf16.msra.mxu1 %v6166_v20  ;;  %v4689_v9 = vpack.c.bf16 %v4685_v12, %v4681_v50  ;;  %v4680_v48 = vmax.f32 %v4328_v16, 0.0 }
 0x451   :  { %4658 = vmatpush2.bf16.msra.mxu0 %v6169_v15  ;;  %4616 = vmatprep.subr.bf16.mxu1 %v6174_v18  ;;  %v4713_v15 = vunpack.c.l.s4 %v6418_v17 }
 0x452   :  { %4659 = vmatprep.subr.bf16.mxu0 %v6177_v2  ;;  %v4688_v20 = vpack.c.bf16 %v4684_v36, %v4680_v48 }
 0x453   :  { %v4714_v18 = vunpack.c.0.s8 %v4713_v15 }
 0x454   :  { %4617 = vmatpush2.bf16.msra.mxu1 %v6172_v28 }
 0x455   :  { %4660 = vmatpush2.bf16.msra.mxu0 %v6175_v23  ;;  %4618 = vmatprep.subr.bf16.mxu1 %v6180_v43  ;;  %v4717_v27 = vsub.s32 %v4714_v18, %v6535_v34 }
 0x456   :  { %4661 = vmatprep.subr.bf16.mxu0 %v6183_v25 }
 0x457   :  { %v4725_v2 = vrot.slane %v4711_v52, %v4717_v27  ;;  %v6766_v26 = vrot.slane %v5395_v22, %v4717_v27 }
 0x458   :  { %4619 = vmatpush2.bf16.msra.mxu1 %v6178_v13  ;;  %v1423_v13 = vrot.slane %v6731_v60, %v6569_v47 }
 0x459   :  { %4662 = vmatpush2.bf16.msra.mxu0 %v6181_v49  ;;  %4620 = vmatprep.subr.bf16.mxu1 %v6186_v53  ;;  %v4727_v29 = vcombine.high %v4725_v2, %v4725_v2 }
 0x45a   :  { %4663 = vmatprep.subr.bf16.mxu0 %v6189_v56 }
 0x45c   :  { %4621 = vmatpush2.bf16.msra.mxu1 %v6184_v19 }
 0x45d   :  { %4664 = vmatpush2.bf16.msra.mxu0 %v6187_v59  ;;  %4622 = vmatprep.subr.bf16.mxu1 %v6192_v0 }
 0x45e   :  { %4665 = vmatprep.subr.bf16.mxu0 %v6195_v42 }
 0x460   :  { %4623 = vmatpush2.bf16.msra.mxu1 %v6190_v33 }
 0x461   :  { %4666 = vmatpush2.bf16.msra.mxu0 %v6193_v41  ;;  %4624 = vmatprep.subr.bf16.mxu1 %v6198_v11 }
 0x462   :  { %4667 = vmatprep.subr.bf16.mxu0 %v6201_v14 }
 0x464   :  { %4625 = vmatpush2.bf16.msra.mxu1 %v6196_v8 }
 0x465   :  { %4668 = vmatpush2.bf16.msra.mxu0 %v6199_v54  ;;  %4746 = vmatprep.subr.bf16.mxu1 %v4689_v9 }
 0x467   :  { %4627 = vmatmul.mubr.bf16.vlgmr.msra.gmra.mxu1 %v6633_v4  ;;  %v4370_v4 = vpop.f32.mrf.mxu1 }
 0x468   :  { %4670 = vmatmul.mubr.bf16.vlgmr.msra.gmra.mxu0 %v6635_v5  ;;  %4747 = vmatpush1.bf16.xpose.msra.mxu1 %v4688_v20  ;;  %v4413_v5 = vpop.f32.mrf.mxu0  ;;  %v4371_v55 = vadd.f32 %v4370_v4, %v1423_v13 }
 0x469   :  { %4764 = vmatprep.mubr.bf16.mxu1 %v4725_v2  ;;  %4804 = vmatprep.mubr.bf16.mxu0 %v4727_v29  ;;  %v4372_v28 = vpop.f32.mrf.mxu1 }
 0x46a   :  { %v4415_v31 = vpop.f32.mrf.mxu0  ;;  %v4373_v49 = vadd.f32 %v4372_v28, %v1427_v10  ;;  %v4414_v19 = vadd.f32 %v4413_v5, %v4371_v55 }
 0x46b   :  { %v4374_v35 = vpop.f32.mrf.mxu1 }
 0x46c   :  { %v4417_v23 = vpop.f32.mrf.mxu0  ;;  %v4375_v56 = vadd.f32 %v4374_v35, %v1423_v13  ;;  %v4416_v62 = vadd.f32 %v4415_v31, %v4373_v49 }
 0x46d   :  { %v4376_v43 = vpop.f32.mrf.mxu1 }
 0x46e   :  { %v4419_v61 = vpop.f32.mrf.mxu0  ;;  %v4377_v58 = vadd.f32 %v4376_v43, %v1427_v10  ;;  %v4418_v59 = vadd.f32 %v4417_v23, %v4375_v56 }
 0x46f   :  { %4765 = vmatmul.mubr.bf16.vlgmr.msra.gmra.mxu1 %v6766_v26 }
 0x470   :  { %v4420_v45 = vadd.f32 %v4419_v61, %v4377_v58 }
 0x4a7   :  { %v4456_v24 = vpop.f32.mrf.mxu1 }
 0x4a8   :  { %v4499_v34 = vpop.f32.mrf.mxu0  ;;  %v4457_v3 = vadd.f32 %v4456_v24, %v4414_v19 }
 0x4a9   :  { %v4458_v25 = vpop.f32.mrf.mxu1 }
 0x4aa   :  { %v4501_v32 = vpop.f32.mrf.mxu0  ;;  %v4459_v0 = vadd.f32 %v4458_v25, %v4416_v62  ;;  %v4500_v30 = vadd.f32 %v4499_v34, %v4457_v3  ;;  %v4726_v25 = vcombine.high %v6766_v26, %v6766_v26 }
 0x4ab   :  { %v4460_v39 = vpop.f32.mrf.mxu1 }
 0x4ac   :  { %v4503_v63 = vpop.f32.mrf.mxu0  ;;  %v4461_v40 = vadd.f32 %v4460_v39, %v4418_v59  ;;  %v4502_v44 = vadd.f32 %v4501_v32, %v4459_v0 }
 0x4ad   :  { %v4462_v21 = vpop.f32.mrf.mxu1 }
 0x4ae   :  { %v4505_v53 = vpop.f32.mrf.mxu0  ;;  %v4463_v47 = vadd.f32 %v4462_v21, %v4420_v45  ;;  %v4504_v33 = vadd.f32 %v4503_v63, %v4461_v40 }
 0x4b0   :  { %v4506_v38 = vadd.f32 %v4505_v53, %v4463_v47 }
 0x4c7   :  { %v4697_v13 = vpop.permute.xlu1 %4696 }
 0x4c8   :  { %v4702_v21 = vrot.slane %v4697_v13, %v6566_v46 }
 0x4e7   :  { %v4542_v7 = vpop.f32.mrf.mxu1 }
 0x4e8   :  { %v4585_v57 = vpop.f32.mrf.mxu0  ;;  %v4543_v41 = vadd.f32 %v4542_v7, %v4500_v30 }
 0x4e9   :  { %v4544_v51 = vpop.f32.mrf.mxu1 }
 0x4ea   :  { %v4587_v1 = vpop.f32.mrf.mxu0  ;;  %v4545_v6 = vadd.f32 %v4544_v51, %v4502_v44  ;;  %v4586_v36 = vadd.f32 %v4585_v57, %v4543_v41 }
 0x4eb   :  { %v4546_v42 = vpop.f32.mrf.mxu1 }
 0x4ec   :  { %v4589_v60 = vpop.f32.mrf.mxu0  ;;  %v4547_v14 = vadd.f32 %v4546_v42, %v4504_v33  ;;  %v4588_v8 = vadd.f32 %v4587_v1, %v4545_v6 }
 0x4ed   :  { %v4548_v11 = vpop.f32.mrf.mxu1 }
 0x4ee   :  { %v4591_v12 = vpop.f32.mrf.mxu0  ;;  %v4549_v50 = vadd.f32 %v4548_v11, %v4506_v38  ;;  %v4590_v48 = vadd.f32 %v4589_v60, %v4547_v14 }
 0x4f0   :  { %v4592_v22 = vadd.f32 %v4591_v12, %v4549_v50 }
 0x527   :  { %v4628_v16 = vpop.f32.mrf.mxu1 }
 0x528   :  { %v4671_v54 = vpop.f32.mrf.mxu0  ;;  %v4629_v15 = vadd.f32 %v4628_v16, %v4586_v36 }
 0x529   :  { %v4630_v9 = vpop.f32.mrf.mxu1 }
 0x52a   :  { %v4631_v20 = vadd.f32 %v4630_v9, %v4588_v8  ;;  %v4673_v17 = vpop.f32.mrf.mxu0  ;;  %v4672_v5 = vadd.f32 %v4671_v54, %v4629_v15 }
 0x52b   :  { %v4632_v18 = vpop.f32.mrf.mxu1 }
 0x52c   :  { %v4633_v52 = vadd.f32 %v4632_v18, %v4590_v48  ;;  %v4675_v27 = vpop.f32.mrf.mxu0  ;;  %v4674_v29 = vadd.f32 %v4673_v17, %v4631_v20  ;;  %v4682_v61 = vmax.f32 %v4672_v5, 0.0 }
 0x52d   :  { %v4634_v2 = vpop.f32.mrf.mxu1 }
 0x52e   :  { %v4676_v37 = vadd.f32 %v4675_v27, %v4633_v52  ;;  %v4635_v4 = vadd.f32 %v4634_v2, %v4592_v22  ;;  %v4677_v28 = vpop.f32.mrf.mxu0  ;;  %v4683_v23 = vmax.f32 %v4674_v29, 0.0 }
 0x52f   :  { %v4766_v32 = vpop.f32.mrf.mxu1 }
 0x530   :  { %v4678_v31 = vadd.f32 %v4677_v28, %v4635_v4  ;;  %v4686_v35 = vmax.f32 %v4676_v37, 0.0  ;;  %v4767_v49 = vadd.f32 %v4766_v32, %v4702_v21 }
 0x531   :  { %v4768_v39 = vpop.f32.mrf.mxu1 }
 0x532   :  { %v4687_v43 = vmax.f32 %v4678_v31, 0.0  ;;  %v4690_v34 = vpack.c.bf16 %v4686_v35, %v4682_v61 }
 0x533   :  { %v4769_v10 = vpop.f32.mrf.mxu1 }
 0x534   :  { %v4691_v24 = vpack.c.bf16 %v4687_v43, %v4683_v23 }
 0x535   :  { %v4770_v63 = vpop.f32.mrf.mxu1 }
 0x536   :  { %4786 = vmatprep.subr.bf16.mxu0 %v4691_v24 }
 0x537   :  { %4787 = vmatpush1.bf16.xpose.msra.mxu0 %v4690_v34 }
 0x53e   :  { %4805 = vmatmul.mubr.bf16.vlgmr.msra.gmra.mxu0 %v4726_v25 }
 0x5fe   :  { %v4806_v53 = vpop.f32.mrf.mxu0 }
 0x5ff   :  { %v4807_v55 = vadd.f32 %v4806_v53, %v4767_v49 }
 0x600   :  { %v4808_v7 = vpop.f32.mrf.mxu0 }
 0x601   :  { %v5396_v56 = vmul.f32 -1.442695, %v4807_v55 }
 0x602   :  { %v4809_v57 = vpop.f32.mrf.mxu0 }
 0x603   :  { %6206 = vpow2.f32 %v5396_v56 }
 0x604   :  { %v4810_v62 = vpop.f32.mrf.mxu0 }
 0x610   :  { %v6207_v58 = vpop.eup %6206 }
 0x611   :  { %v4815_v19 = vadd.f32 1.0, %v6207_v58 }
 0x613   :  { %6208 = vrcp.f32 %v4815_v19 }
 0x620   :  { %v6209_v26 = vpop.eup %6208 }
 0x621   :  { %4819 = vst.msk [vmem:[#allocation17] sm:$0x1] %vm4818_vm2, %v6209_v26 }
 0x622   :  { %6381 = shalt.err (!%p6378_p2)
}
 0x623   :  { %4829 = dma.vmem_to_hbm [thread:$0]  %s4827_s7, 16, %s6788_s9, [#allocation5]  }
 0x624   :  { %6400 = dma.done.wait [#allocation5], 16  }
 0x625   :  { %6401 = vsyncadd [#allocation5], 4294967280 }
 0x626   :  { %4833 = vsyncpa [#allocation4], 1 }
 0x627   :  { %4834 = vsyncpa [#allocation7], 1 }
 0x628   :  { %4835 = vsyncpa [#allocation10], 1 }
 0x629   :  { %4836 = vsyncpa [#allocation13], 1 }
 0x62a   :  { %4837 = vsyncpa [#allocation16], 1 }
 0x62b   :  { %4838 = vsyncpa [#allocation5], 1 }

</bundles_post_ra>
